<compile_context>
chip_gen: v5e
topology: v5e:2x2
jax: 0.10.0
libtpu: 0.0.40
codegen_flags: <defaults>
</compile_context>

<pallas_src>
import math

import jax
import jax.numpy as jnp
from jax.experimental import pallas as pl
from jax.experimental.pallas import tpu as pltpu

N_RES = 32                      # spherical sampling resolution n (module default n=32)
N_RAYS = N_RES * N_RES          # 1024 rays -> lane-dense (multiple of 128 and 256)
HIDDEN = 32                     # synthetic field hidden width
OUT_DIM = 4                     # rgb(3) + density(1)
ROWS = 16                       # output slab rows: theta, phi, dx, dy, dz, rgb(3), dens, pad(7)

assert (N_RES & (N_RES - 1)) == 0, "N_RES must be a power of two for shift/mask index math"
_LOG2_N = N_RES.bit_length() - 1
_DT = (2.0 * math.pi / (N_RES - 1)) if N_RES > 1 else 0.0
_DP = (math.pi / (N_RES - 1)) if N_RES > 1 else 0.0


# ---------------------------------------------------------------------------
# Shared ray-geometry helper (runs inside the kernels)
# ---------------------------------------------------------------------------
def _ray_rows():
    """Returns (angles (2, N_RAYS) [theta; phi], dirs (3, N_RAYS) [x; y; z])."""
    row = jax.lax.broadcasted_iota(jnp.int32, (2, N_RAYS), 0)
    r = jax.lax.broadcasted_iota(jnp.int32, (2, N_RAYS), 1)
    tval = (r >> _LOG2_N).astype(jnp.float32) * _DT      # theta index = r // n
    pval = (r & (N_RES - 1)).astype(jnp.float32) * _DP   # phi index   = r % n
    angles = jnp.where(row == 0, tval, pval)             # (2, N_RAYS): [theta; phi]
    s = jnp.sin(angles)                                  # [sin theta ; sin phi]
    c = jnp.cos(angles)                                  # [cos theta ; cos phi]
    sin_t, sin_p = s[0:1, :], s[1:2, :]
    cos_t, cos_p = c[0:1, :], c[1:2, :]
    dirs = jnp.concatenate([sin_p * cos_t, sin_p * sin_t, cos_p], axis=0)  # (3, N_RAYS)
    return angles, dirs


# ---------------------------------------------------------------------------
# Fused kernel: ray-bundle sampling + stand-in NeRF field + output epilogue
# ---------------------------------------------------------------------------
def lff_fused_kernel(origins_ref,   # SMEM (B, 3) f32 camera translations
                     p1_ref,        # VMEM (HIDDEN, 8): [w1d | w1o | b1 | pad]
                     p2_ref,        # VMEM (OUT_DIM, HIDDEN+8): [w2t | b2 | pad]
                     out_ref):      # VMEM (ROWS, N_RAYS) output slab for pose b
    b = pl.program_id(0)

    angles, dirs = _ray_rows()
    out_ref[0:2, :] = angles
    out_ref[2:5, :] = dirs

    # Unpack parameters (cheap lane slices of a single VMEM tile).
    w1d = p1_ref[:, 0:3]                       # (HIDDEN, 3) direction weights
    w1o = p1_ref[:, 3:6]                       # (HIDDEN, 3) origin weights
    b1 = p1_ref[:, 6:7]                        # (HIDDEN, 1)
    w2t = p2_ref[:, 0:HIDDEN]                  # (OUT_DIM, HIDDEN)
    b2 = p2_ref[:, HIDDEN:HIDDEN + 1]          # (OUT_DIM, 1)

    # Fold the per-pose constant ray origin into the first-layer bias.
    o0 = origins_ref[b, 0]
    o1 = origins_ref[b, 1]
    o2 = origins_ref[b, 2]
    b1_eff = b1 + o0 * w1o[:, 0:1] + o1 * w1o[:, 1:2] + o2 * w1o[:, 2:3]

    # Transposed MLP: rays stay on the lane axis (lane-dense, full 1024-wide MXU pass).
    h = jnp.dot(w1d, dirs, preferred_element_type=jnp.float32) + b1_eff     # (HIDDEN, N_RAYS)
    h = jnp.maximum(h, 0.0)
    logits = jnp.dot(w2t, h, preferred_element_type=jnp.float32) + b2       # (OUT_DIM, N_RAYS)

    # Fused, overflow-free epilogue: one exp over the whole (4, N_RAYS) slab.
    e = jnp.exp(-jnp.abs(logits))
    inv1pe = 1.0 / (1.0 + e)
    sig = jnp.where(logits >= 0.0, inv1pe, e * inv1pe)                      # stable sigmoid
    out_ref[5:8, :] = sig[0:3, :]                                           # rgb
    out_ref[8:9, :] = jnp.maximum(logits[3:4, :], 0.0) + jnp.log(1.0 + e[3:4, :])  # softplus
    out_ref[9:ROWS, :] = jnp.zeros((ROWS - 9, N_RAYS), jnp.float32)         # deterministic pad


def lff_field_call(origins, p1, p2):
    """Pose-batched fused call. origins: (B, 3). Returns (B, ROWS, N_RAYS) f32 slab:
    rows = [theta, phi, dx, dy, dz, r, g, b, density, pad*7]."""
    B = origins.shape[0]
    flops = 2 * (HIDDEN * 3 + OUT_DIM * HIDDEN) * N_RAYS * B
    transcendentals = 13 * N_RAYS * B
    bytes_accessed = (B * ROWS * N_RAYS + HIDDEN * 8 + OUT_DIM * (HIDDEN + 8) + 3 * B) * 4
    return pl.pallas_call(
        lff_fused_kernel,
        out_shape=jax.ShapeDtypeStruct((B, ROWS, N_RAYS), jnp.float32),
        grid=(B,),
        in_specs=[
            pl.BlockSpec(memory_space=pltpu.MemorySpace.SMEM),            # origins (B, 3)
            pl.BlockSpec((HIDDEN, 8), lambda b: (0, 0)),                  # packed layer-1
            pl.BlockSpec((OUT_DIM, HIDDEN + 8), lambda b: (0, 0)),        # packed layer-2
        ],
        out_specs=pl.BlockSpec((None, ROWS, N_RAYS), lambda b: (b, 0, 0)),
        compiler_params=pltpu.CompilerParams(dimension_semantics=("parallel",)),
        cost_estimate=pl.CostEstimate(
            flops=flops, transcendentals=transcendentals, bytes_accessed=bytes_accessed),
    )(origins, p1, p2)


# ---------------------------------------------------------------------------
# Sampling-only kernel (ModelLFF.sample_bundle path: no field eval)
# ---------------------------------------------------------------------------
def lff_sample_kernel(out_ref):     # VMEM (8, N_RAYS): theta, phi, dx, dy, dz, pad*3
    angles, dirs = _ray_rows()
    out_ref[0:2, :] = angles
    out_ref[2:5, :] = dirs
    out_ref[5:8, :] = jnp.zeros((3, N_RAYS), jnp.float32)


def lff_sample_call():
    return pl.pallas_call(
        lff_sample_kernel,
        out_shape=jax.ShapeDtypeStruct((8, N_RAYS), jnp.float32),
    )()


# ---------------------------------------------------------------------------
# Parameters (stand-in for the external `pipeline.model` NeRF field)
# ---------------------------------------------------------------------------
def init_field_params(key):
    """Deterministic 2-layer MLP field weights (raw layout)."""
    k1, k2, k3, k4, k5 = jax.random.split(key, 5)
    w1d = jax.random.normal(k1, (HIDDEN, 3), jnp.float32) * 0.1   # direction weights
    w1o = jax.random.normal(k2, (HIDDEN, 3), jnp.float32) * 0.1   # origin weights
    b1 = jax.random.normal(k3, (HIDDEN, 1), jnp.float32) * 0.01
    w2t = jax.random.normal(k4, (OUT_DIM, HIDDEN), jnp.float32) * 0.1
    b2 = jax.random.normal(k5, (OUT_DIM, 1), jnp.float32) * 0.01
    return w1d, w1o, b1, w2t, b2


def pack_field_params(w1d, w1o, b1, w2t, b2):
    """Pack the five tiny tensors into two kernel operands."""
    p1 = jnp.zeros((HIDDEN, 8), jnp.float32)
    p1 = p1.at[:, 0:3].set(w1d).at[:, 3:6].set(w1o).at[:, 6:7].set(b1)
    p2 = jnp.zeros((OUT_DIM, HIDDEN + 8), jnp.float32)
    p2 = p2.at[:, :HIDDEN].set(w2t).at[:, HIDDEN:HIDDEN + 1].set(b2)
    return p1, p2


# ---------------------------------------------------------------------------
# Module-level wrappers (ModelLFF.forward / sample_bundle semantics)
# ---------------------------------------------------------------------------
def model_lff_forward(pose, params):
    """ModelLFF.forward for one (4,4) pose or a batch (B,4,4) of poses — one fused kernel
    launch covers ray sampling, the field MLP and the sigmoid/softplus epilogue."""
    # TODO(synk): the real `pipeline.model` (instance-NeRF field), `output_func` and
    # `labels2descriptions` are external, unspecified dependencies; a deterministic 2-layer
    # MLP field stands in and output_func is the identity over model_outputs.
    p1, p2 = params
    single = pose.ndim == 2
    poses = pose[None] if single else pose
    origins = poses[:, :3, 3]                                  # (B, 3)
    slab = lff_field_call(origins, p1, p2)                     # (B, ROWS, N_RAYS)
    theta = slab[:, 0, :]                                      # (B, N_RAYS)
    phi = slab[:, 1, :]
    rgb = jnp.swapaxes(slab[:, 5:8, :], 1, 2)                  # (B, N_RAYS, 3)
    density = jnp.swapaxes(slab[:, 8:9, :], 1, 2)              # (B, N_RAYS, 1)
    if single:
        theta, phi, rgb, density = theta[0], phi[0], rgb[0], density[0]
    return {"rgb": rgb, "density": density, "angle": (theta, phi)}


def sample_bundle(pose):
    """Pallas port of ModelLFF.sample_bundle (sampling-only kernel; no field eval)."""
    slab = lff_sample_call()                                   # (8, N_RAYS)
    theta, phi = slab[0], slab[1]
    directions = slab[2:5].T                                   # (N_RAYS, 3)
    bundle = dict(
        origins=jnp.broadcast_to(pose[:3, 3][None, :], (N_RAYS, 3)),
        directions=directions,
        pixel_area=jnp.ones((N_RAYS, 1), jnp.float32),
        camera_indices=jnp.zeros((N_RAYS, 1), jnp.int32),      # set_camera_indices(0)
    )
    return bundle, theta, phi


if __name__ == "__main__":
    key = jax.random.PRNGKey(0)
    k_pose, k_params = jax.random.split(key)

    # Batch of camera poses: identity rotation + random translation.
    B = 2
    poses = jnp.tile(jnp.eye(4, dtype=jnp.float32)[None], (B, 1, 1))
    poses = poses.at[:, :3, 3].set(jax.random.normal(k_pose, (B, 3), jnp.float32))

    raw = init_field_params(k_params)
    params = pack_field_params(*raw)

    fwd = jax.jit(model_lff_forward)
    out = fwd(poses, params)
    jax.block_until_ready(out)

    # ---------------- plain-JAX reference ----------------
    n = N_RES
    theta_l = jnp.linspace(0.0, 2.0 * math.pi, n)
    phi_l = jnp.linspace(0.0, math.pi, n)
    tg, pg = jnp.meshgrid(theta_l, phi_l, indexing="ij")
    dirs_ref = jnp.stack(
        (jnp.sin(pg) * jnp.cos(tg), jnp.sin(pg) * jnp.sin(tg), jnp.cos(pg)), axis=-1
    ).reshape(-1, 3)
    theta_flat = tg.reshape(-1)
    phi_flat = pg.reshape(-1)

    w1d, w1o, b1, w2t, b2 = raw
    theta_k, phi_k = out["angle"]
    assert out["rgb"].shape == (B, N_RAYS, 3) and out["density"].shape == (B, N_RAYS, 1)
    for b in range(B):
        origins_b = jnp.broadcast_to(poses[b, :3, 3][None, :], (N_RAYS, 3))
        h_ref = jnp.maximum(origins_b @ w1o.T + dirs_ref @ w1d.T + b1.T, 0.0)
        logits_ref = h_ref @ w2t.T + b2.T
        rgb_ref = jax.nn.sigmoid(logits_ref[:, :3])
        dens_ref = jax.nn.softplus(logits_ref[:, 3:])
        assert jnp.allclose(theta_k[b], theta_flat, atol=1e-5)
        assert jnp.allclose(phi_k[b], phi_flat, atol=1e-5)
        assert jnp.allclose(out["rgb"][b], rgb_ref, atol=1e-4)
        assert jnp.allclose(out["density"][b], dens_ref, atol=1e-4)

    # Single-pose path still works (matches batched pose 0).
    out1 = jax.jit(model_lff_forward)(poses[0], params)
    jax.block_until_ready(out1)
    assert out1["rgb"].shape == (N_RAYS, 3)
    assert jnp.allclose(out1["rgb"], out["rgb"][0], atol=1e-5)

    # Ray-bundle directions from the sampling-only kernel (no redundant field eval).
    bundle, theta_b, phi_b = sample_bundle(poses[0])
    assert jnp.allclose(bundle["directions"], dirs_ref, atol=1e-5)
    assert jnp.allclose(theta_b, theta_flat, atol=1e-5)
    assert jnp.allclose(phi_b, phi_flat, atol=1e-5)

    print("KERNEL_OK")
</pallas_src>

<mosaic_0001>
module attributes {stable_mosaic.version = 11 : i64} {
  func.func @lff_fused_kernel(%arg0: i32, %arg1: memref<2x3xf32, #tpu.memory_space<smem>>, %arg2: memref<32x8xf32, #tpu.memory_space<vmem>>, %arg3: memref<4x40xf32, #tpu.memory_space<vmem>>, %arg4: memref<1x16x1024xf32, #tpu.memory_space<vmem>>) attributes {dimension_semantics = [#tpu.dimension_semantics<parallel>], iteration_bounds = array<i64: 2>, scalar_prefetch = 0 : i64, scratch_operands = 0 : i64, tpu.core_type = #tpu.core_type<tc>, window_params = [{transform_indices = @transform_0, window_bounds = array<i64: 2, 3>}, {pipeline_mode = #tpu.pipeline_mode<synchronous>, transform_indices = @transform_1, window_bounds = array<i64: 32, 8>}, {pipeline_mode = #tpu.pipeline_mode<synchronous>, transform_indices = @transform_2, window_bounds = array<i64: 4, 40>}, {transform_indices = @transform_3, window_bounds = array<i64: 1, 16, 1024>}]} {
    %0 = tpu.iota {dimensions = array<i32: 0>} : vector<2x1024xi32>
    %1 = tpu.iota {dimensions = array<i32: 1>} : vector<2x1024xi32>
    %c5_i32 = arith.constant 5 : i32
    %2 = vector.broadcast %c5_i32 : i32 to vector<2x1024xi32>
    %3 = arith.shrsi %1, %2 : vector<2x1024xi32>
    %4 = arith.sitofp %3 : vector<2x1024xi32> to vector<2x1024xf32>
    %cst = arith.constant 0.202683404 : f32
    %5 = vector.broadcast %cst : f32 to vector<2x1024xf32>
    %6 = arith.mulf %4, %5 : vector<2x1024xf32>
    %c31_i32 = arith.constant 31 : i32
    %7 = vector.broadcast %c31_i32 : i32 to vector<2x1024xi32>
    %8 = arith.andi %1, %7 : vector<2x1024xi32>
    %9 = arith.sitofp %8 : vector<2x1024xi32> to vector<2x1024xf32>
    %cst_0 = arith.constant 0.101341702 : f32
    %10 = vector.broadcast %cst_0 : f32 to vector<2x1024xf32>
    %11 = arith.mulf %9, %10 : vector<2x1024xf32>
    %c0_i32 = arith.constant 0 : i32
    %12 = vector.broadcast %c0_i32 : i32 to vector<2x1024xi32>
    %13 = arith.cmpi eq, %0, %12 : vector<2x1024xi32>
    %14 = arith.select %13, %6, %11 : vector<2x1024xi1>, vector<2x1024xf32>
    %15 = math.sin %14 : vector<2x1024xf32>
    %16 = math.cos %14 : vector<2x1024xf32>
    %17 = vector.extract_strided_slice %15 {offsets = [0, 0], sizes = [1, 1024], strides = [1, 1]} : vector<2x1024xf32> to vector<1x1024xf32>
    %18 = vector.extract_strided_slice %15 {offsets = [1, 0], sizes = [1, 1024], strides = [1, 1]} : vector<2x1024xf32> to vector<1x1024xf32>
    %19 = vector.extract_strided_slice %16 {offsets = [0, 0], sizes = [1, 1024], strides = [1, 1]} : vector<2x1024xf32> to vector<1x1024xf32>
    %20 = vector.extract_strided_slice %16 {offsets = [1, 0], sizes = [1, 1024], strides = [1, 1]} : vector<2x1024xf32> to vector<1x1024xf32>
    %21 = arith.mulf %18, %19 : vector<1x1024xf32>
    %22 = arith.mulf %18, %17 : vector<1x1024xf32>
    %23 = tpu.concatenate %21, %22, %20 in 0 : vector<1x1024xf32>, vector<1x1024xf32>, vector<1x1024xf32> -> vector<3x1024xf32>
    %c0 = arith.constant 0 : index
    %c0_1 = arith.constant 0 : index
    %c0_2 = arith.constant 0 : index
    %24 = vector.load %arg4[%c0, %c0_1, %c0_2] : memref<1x16x1024xf32, #tpu.memory_space<vmem>>, vector<1x2x1024xf32>
    %25 = vector.shape_cast %24 : vector<1x2x1024xf32> to vector<2x1024xf32>
    %26 = vector.shape_cast %14 : vector<2x1024xf32> to vector<1x2x1024xf32>
    tpu.vector_store %arg4[%c0, %c0_1, %c0_2], %26 {strides = array<i32>} : memref<1x16x1024xf32, #tpu.memory_space<vmem>>, vector<1x2x1024xf32>,
    %c0_3 = arith.constant 0 : index
    %c2 = arith.constant 2 : index
    %c0_4 = arith.constant 0 : index
    %27 = vector.load %arg4[%c0_3, %c2, %c0_4] : memref<1x16x1024xf32, #tpu.memory_space<vmem>>, vector<1x3x1024xf32>
    %28 = vector.shape_cast %27 : vector<1x3x1024xf32> to vector<3x1024xf32>
    %29 = vector.shape_cast %23 : vector<3x1024xf32> to vector<1x3x1024xf32>
    tpu.vector_store %arg4[%c0_3, %c2, %c0_4], %29 {strides = array<i32>} : memref<1x16x1024xf32, #tpu.memory_space<vmem>>, vector<1x3x1024xf32>,
    %c0_5 = arith.constant 0 : index
    %c0_6 = arith.constant 0 : index
    %30 = vector.load %arg2[%c0_5, %c0_6] : memref<32x8xf32, #tpu.memory_space<vmem>>, vector<32x3xf32>
    %c0_7 = arith.constant 0 : index
    %c3 = arith.constant 3 : index
    %31 = vector.load %arg2[%c0_7, %c3] : memref<32x8xf32, #tpu.memory_space<vmem>>, vector<32x3xf32>
    %c0_8 = arith.constant 0 : index
    %c6 = arith.constant 6 : index
    %32 = vector.load %arg2[%c0_8, %c6] : memref<32x8xf32, #tpu.memory_space<vmem>>, vector<32x1xf32>
    %c0_9 = arith.constant 0 : index
    %c0_10 = arith.constant 0 : index
    %33 = vector.load %arg3[%c0_9, %c0_10] : memref<4x40xf32, #tpu.memory_space<vmem>>, vector<4x32xf32>
    %c0_11 = arith.constant 0 : index
    %c32 = arith.constant 32 : index
    %34 = vector.load %arg3[%c0_11, %c32] : memref<4x40xf32, #tpu.memory_space<vmem>>, vector<4x1xf32>
    %35 = arith.index_cast %arg0 : i32 to index
    %c0_12 = arith.constant 0 : index
    %36 = memref.load %arg1[%35, %c0_12] : memref<2x3xf32, #tpu.memory_space<smem>>
    %37 = arith.index_cast %arg0 : i32 to index
    %c1 = arith.constant 1 : index
    %38 = memref.load %arg1[%37, %c1] : memref<2x3xf32, #tpu.memory_space<smem>>
    %39 = arith.index_cast %arg0 : i32 to index
    %c2_13 = arith.constant 2 : index
    %40 = memref.load %arg1[%39, %c2_13] : memref<2x3xf32, #tpu.memory_space<smem>>
    %41 = vector.extract_strided_slice %31 {offsets = [0, 0], sizes = [32, 1], strides = [1, 1]} : vector<32x3xf32> to vector<32x1xf32>
    %42 = vector.broadcast %36 : f32 to vector<32x1xf32>
    %43 = arith.mulf %42, %41 : vector<32x1xf32>
    %44 = arith.addf %32, %43 : vector<32x1xf32>
    %45 = vector.extract_strided_slice %31 {offsets = [0, 1], sizes = [32, 1], strides = [1, 1]} : vector<32x3xf32> to vector<32x1xf32>
    %46 = vector.broadcast %38 : f32 to vector<32x1xf32>
    %47 = arith.mulf %46, %45 : vector<32x1xf32>
    %48 = arith.addf %44, %47 : vector<32x1xf32>
    %49 = vector.extract_strided_slice %31 {offsets = [0, 2], sizes = [32, 1], strides = [1, 1]} : vector<32x3xf32> to vector<32x1xf32>
    %50 = vector.broadcast %40 : f32 to vector<32x1xf32>
    %51 = arith.mulf %50, %49 : vector<32x1xf32>
    %52 = arith.addf %48, %51 : vector<32x1xf32>
    %cst_14 = arith.constant dense<0.000000e+00> : vector<32x1024xf32>
    %53 = tpu.matmul %30, %23, %cst_14 {dimension_numbers = #tpu.dot_dimension_numbers<[1], [0], [0], [1], [0, 0, 1, 1], [], []>} : vector<32x3xf32>, vector<3x1024xf32>, vector<32x1024xf32> -> vector<32x1024xf32>
    %54 = vector.broadcast %52 : vector<32x1xf32> to vector<32x1024xf32>
    %55 = arith.addf %53, %54 : vector<32x1024xf32>
    %cst_15 = arith.constant 0.000000e+00 : f32
    %56 = vector.broadcast %cst_15 : f32 to vector<32x1024xf32>
    %57 = arith.maximumf %55, %56 : vector<32x1024xf32>
    %cst_16 = arith.constant dense<0.000000e+00> : vector<4x1024xf32>
    %58 = tpu.matmul %33, %57, %cst_16 {dimension_numbers = #tpu.dot_dimension_numbers<[1], [0], [0], [1], [0, 0, 1, 1], [], []>} : vector<4x32xf32>, vector<32x1024xf32>, vector<4x1024xf32> -> vector<4x1024xf32>
    %59 = vector.broadcast %34 : vector<4x1xf32> to vector<4x1024xf32>
    %60 = arith.addf %58, %59 : vector<4x1024xf32>
    %61 = math.absf %60 : vector<4x1024xf32>
    %cst_17 = arith.constant 0.000000e+00 : f32
    %62 = vector.broadcast %cst_17 : f32 to vector<4x1024xf32>
    %63 = arith.subf %62, %61 : vector<4x1024xf32>
    %64 = math.exp %63 : vector<4x1024xf32>
    %cst_18 = arith.constant 1.000000e+00 : f32
    %65 = vector.broadcast %cst_18 : f32 to vector<4x1024xf32>
    %66 = arith.addf %65, %64 : vector<4x1024xf32>
    %cst_19 = arith.constant 1.000000e+00 : f32
    %67 = vector.broadcast %cst_19 : f32 to vector<4x1024xf32>
    %68 = arith.divf %67, %66 : vector<4x1024xf32>
    %cst_20 = arith.constant 0.000000e+00 : f32
    %69 = vector.broadcast %cst_20 : f32 to vector<4x1024xf32>
    %70 = arith.cmpf oge, %60, %69 : vector<4x1024xf32>
    %71 = arith.mulf %64, %68 : vector<4x1024xf32>
    %72 = arith.select %70, %68, %71 : vector<4x1024xi1>, vector<4x1024xf32>
    %73 = vector.extract_strided_slice %72 {offsets = [0, 0], sizes = [3, 1024], strides = [1, 1]} : vector<4x1024xf32> to vector<3x1024xf32>
    %c0_21 = arith.constant 0 : index
    %c5 = arith.constant 5 : index
    %c0_22 = arith.constant 0 : index
    %74 = vector.load %arg4[%c0_21, %c5, %c0_22] : memref<1x16x1024xf32, #tpu.memory_space<vmem>>, vector<1x3x1024xf32>
    %75 = vector.shape_cast %74 : vector<1x3x1024xf32> to vector<3x1024xf32>
    %76 = vector.shape_cast %73 : vector<3x1024xf32> to vector<1x3x1024xf32>
    tpu.vector_store %arg4[%c0_21, %c5, %c0_22], %76 {strides = array<i32>} : memref<1x16x1024xf32, #tpu.memory_space<vmem>>, vector<1x3x1024xf32>,
    %77 = vector.extract_strided_slice %60 {offsets = [3, 0], sizes = [1, 1024], strides = [1, 1]} : vector<4x1024xf32> to vector<1x1024xf32>
    %cst_23 = arith.constant 0.000000e+00 : f32
    %78 = vector.broadcast %cst_23 : f32 to vector<1x1024xf32>
    %79 = arith.maximumf %77, %78 : vector<1x1024xf32>
    %80 = vector.extract_strided_slice %64 {offsets = [3, 0], sizes = [1, 1024], strides = [1, 1]} : vector<4x1024xf32> to vector<1x1024xf32>
    %cst_24 = arith.constant 1.000000e+00 : f32
    %81 = vector.broadcast %cst_24 : f32 to vector<1x1024xf32>
    %82 = arith.addf %81, %80 : vector<1x1024xf32>
    %83 = math.log %82 : vector<1x1024xf32>
    %84 = arith.addf %79, %83 : vector<1x1024xf32>
    %c0_25 = arith.constant 0 : index
    %c8 = arith.constant 8 : index
    %c0_26 = arith.constant 0 : index
    %85 = vector.load %arg4[%c0_25, %c8, %c0_26] : memref<1x16x1024xf32, #tpu.memory_space<vmem>>, vector<1x1x1024xf32>
    %86 = vector.shape_cast %85 : vector<1x1x1024xf32> to vector<1x1024xf32>
    %87 = vector.shape_cast %84 : vector<1x1024xf32> to vector<1x1x1024xf32>
    tpu.vector_store %arg4[%c0_25, %c8, %c0_26], %87 {strides = array<i32>} : memref<1x16x1024xf32, #tpu.memory_space<vmem>>, vector<1x1x1024xf32>,
    %cst_27 = arith.constant 0.000000e+00 : f32
    %88 = vector.broadcast %cst_27 : f32 to vector<7x1024xf32>
    %c0_28 = arith.constant 0 : index
    %c9 = arith.constant 9 : index
    %c0_29 = arith.constant 0 : index
    %89 = vector.load %arg4[%c0_28, %c9, %c0_29] : memref<1x16x1024xf32, #tpu.memory_space<vmem>>, vector<1x7x1024xf32>
    %90 = vector.shape_cast %89 : vector<1x7x1024xf32> to vector<7x1024xf32>
    %91 = vector.shape_cast %88 : vector<7x1024xf32> to vector<1x7x1024xf32>
    tpu.vector_store %arg4[%c0_28, %c9, %c0_29], %91 {strides = array<i32>} : memref<1x16x1024xf32, #tpu.memory_space<vmem>>, vector<1x7x1024xf32>,
    return
  }
  func.func @transform_0(%arg0: i32) -> (i32, i32) {
    %c0_i32 = arith.constant 0 : i32
    %c0_i32_0 = arith.constant 0 : i32
    %c0_i32_1 = arith.constant 0 : i32
    return %c0_i32, %c0_i32_0 : i32, i32
  }
  func.func @transform_1(%arg0: i32) -> (i32, i32) {
    %c0_i32 = arith.constant 0 : i32
    %c0_i32_0 = arith.constant 0 : i32
    %c0_i32_1 = arith.constant 0 : i32
    return %c0_i32, %c0_i32_0 : i32, i32
  }
  func.func @transform_2(%arg0: i32) -> (i32, i32) {
    %c0_i32 = arith.constant 0 : i32
    %c0_i32_0 = arith.constant 0 : i32
    %c0_i32_1 = arith.constant 0 : i32
    return %c0_i32, %c0_i32_0 : i32, i32
  }
  func.func @transform_3(%arg0: i32) -> (i32, i32, i32) {
    %c0_i32 = arith.constant 0 : i32
    %c0_i32_0 = arith.constant 0 : i32
    %c0_i32_1 = arith.constant 0 : i32
    return %arg0, %c0_i32, %c0_i32_0 : i32, i32, i32
  }
}

</mosaic_0001>

<bundles_post_ra>
// kernel: model_lff_forward.1
= control target key start
LH: loop header
LB: loop body
LE: loop exit
PB: predicated region body
PF: predicated region fallthrough
CT: control target
= control target key end

     0   :  { %8 = vsyncpa [#allocation3], 0  ;;  %s4016_s12 = smov 0   ;;  %s5347_s0 = inlined_call_operand.vmem [shape: f32[2,3], index: 0, kind: input, shape index: {}]   ;;  %s5348_s1 = inlined_call_operand.vmem [shape: f32[32,8], index: 1, kind: input, shape index: {}]   ;;  %s5349_s2 = inlined_call_operand.vmem [shape: f32[4,40], index: 2, kind: input, shape index: {}]   ;;  %s5350_s3 = inlined_call_operand.vmem [shape: f32[2,16,1024], index: 3, kind: output, shape index: {}]  }
   0x1 LB: > { %s4022_s13 = sadd.s32 4294967295, %s3980_s12   ;;  %p3754_p0 = scmp.ge.s32.totalorder %s3980_s12, 1  ;;  %s3980_s12 = sphi %s4016_s12, %s14_s12  }
   0x2   : > { %p108_p1 = scmp.lt.s32.totalorder %s3980_s12, 3  ;;  %s120_s16 = sshll.u32 %s5347_s0, 4  ;;  %s121_s16 = int_to_ptr.vmem [resolvable:$true] %s120_s16 }
   0x3   : > { %p3870_p3 = scmp.eq.s32.totalorder %s4022_s13, 0  ;;  %s3982_s17 = smov [#allocation2]  }
   0x4   : > { %p109_p2 = pnand %p3754_p0, %p108_p1 }
   0x6   : > { %p3866_p4 = pneg %p109_p2  ;;  %139 = sbr.rel (%p109_p2) target bundleno = 741 (0x2e5), region = 32 }
   0x8   : > { %p3867_p5 = pnand %p3870_p3, %p3866_p4 }
   0xa   : > { %3869 = dma.vmem_to_smem (!%p3867_p5), %s121_s16, 32, %s3982_s17, [#allocation3]  }
   0xb   : > { %3975 = dma.done.wait (%p3870_p3), [#allocation3], 32  }
   0xc   : > { %3977 = vsyncadd (%p3870_p3), [#allocation3], 4294967264 }
   0xd   : > { %146 = sfence }
   0xe   : > { %s3808_s18 = sshll.u32 %s4022_s13, 7  ;;  %v165_v0 = vlaneseq  ;;  %p160_p6 = scmp.lt.s32.totalorder %s4022_s13, 1  ;;  %v2854_v5 = vld [vmem:[%s5348_s1 + $0x18] sm:$0xff]  ;;  %v4043_v6 = vld [vmem:[%s5348_s1 + $0x8] sm:$0xff]  ;;  %v2853_v16 = vld [vmem:[%s5348_s1 + $0x10] sm:$0xff] }
   0xf   : > { %s2857_s19 = sld [smem:[#allocation2 + %s3808_s18]]  ;;  %s2858_s20 = sadd.s32 1, %s3808_s18  ;;  %v4082_v43 = vld [vmem:[%s5348_s1] sm:$0xff] }
  0x10   : > { %s2859_s21 = sld [smem:[#allocation2 + %s2858_s20]]  ;;  %v4031_v1 = vand.u32 127, %v165_v0  ;;  %s2860_s22 = sadd.s32 2, %s3808_s18  ;;  %v4045_v7 = vshrl.u32 %v165_v0, 7  ;;  %v3986_v0 = vmov 683565275  }
  0x11   : > { %s2861_s27 = sld [smem:[#allocation2 + %s2860_s22]]  ;;  %s5372_s13 = smov (!%p160_p6, %s4022_s13), 1 }
  0x12   : > { %v176_v2 = vshra.s32 %v4031_v1, 5  ;;  %v200_v3 = vand.u32 31, %v4031_v1  ;;  %v169_v4 = vadd.s32 128, %v4031_v1  ;;  %v170_v8 = vadd.s32 256, %v4031_v1  ;;  %s3861_s30 = sshll.u32 %s5372_s13, 7  ;;  %s3983_s4 = smov 3  }
  0x13   : > { %vm224_vm0 = vcmp.eq.s32.totalorder %v4045_v7, 0  ;;  %s3984_s5 = smov 2   ;;  %s4060_s8 = scalar_lea.vmem %s5350_s3, %s3861_s30 }
  0x14   : > { %v184_v9 = vcvt.s32.f32 %v176_v2  ;;  %v208_v10 = vcvt.s32.f32 %v200_v3  ;;  %v177_v14 = vshra.s32 %v169_v4, 5  ;;  %v201_v15 = vand.u32 31, %v169_v4  ;;  %s3985_s11 = smov 1  }
  0x15   : > { %v2862_v11 = vstv %s2857_s19  ;;  %v178_v18 = vshra.s32 %v170_v8, 5  ;;  %v202_v22 = vand.u32 31, %v170_v8  ;;  %v3987_v3 = vmov 2475754826  }
  0x16   : > { %v2866_v12 = vmul.f32 %v2862_v11, %v2854_v5  ;;  %v2864_v13 = vmul.f32 %v2862_v11, %v4043_v6  ;;  %v2887_v17 = vstv %s2859_s21  ;;  %v192_v20 = vmul.f32 0.2026834, %v184_v9 }
  0x17   : > { %v2890_v19 = vmul.f32 %v2887_v17, %v2853_v16  ;;  %v216_v21 = vmul.f32 0.1013417, %v208_v10  ;;  %v2865_v23 = vmul.f32 %v2862_v11, %v2853_v16  ;;  %v185_v25 = vcvt.s32.f32 %v177_v14 }
  0x18   : > { %2877 = vrot.lane.b32.xlu0 %v2866_v12, %s3983_s4  ;;  %2873 = vrot.lane.b32.xlu1 %v2864_v13, %s3983_s4  ;;  %v209_v26 = vcvt.s32.f32 %v201_v15  ;;  %v2912_v27 = vstv %s2861_s27  ;;  %v186_v30 = vcvt.s32.f32 %v178_v18  ;;  %v2891_v31 = vmul.f32 %v2887_v17, %v2854_v5 }
  0x19   : > { %2900 = vrot.lane.b32.xlu2 %v2890_v19, %s3984_s5  ;;  %v4064_v24 = vsel %vm224_vm0, %v192_v20, %v216_v21  ;;  %v193_v32 = vmul.f32 0.2026834, %v185_v25  ;;  %v210_v34 = vcvt.s32.f32 %v202_v22  ;;  %v2916_v37 = vmul.f32 %v2912_v27, %v2854_v5 }
  0x1a   : > { %v233_v28 = vand.u32 2147483647, %v4064_v24  ;;  %v236_v29 = vand.u32 2139095040, %v4064_v24  ;;  %2811 = vst [vmem:[%s4060_s8] sm:$0x3] %v4064_v24  ;;  %v217_v33 = vmul.f32 0.1013417, %v209_v26  ;;  %v2863_v49 = vmul.f32 %v2862_v11, %v4082_v43 }
  0x1b   : > { %v194_v39 = vmul.f32 0.2026834, %v186_v30  ;;  %v218_v40 = vmul.f32 0.1013417, %v210_v34  ;;  %v2889_v50 = vmul.f32 %v2887_v17, %v4043_v6  ;;  %v2888_v52 = vmul.f32 %v2887_v17, %v4082_v43 }
  0x1c   : > { %v237_v35 = vshrl.u32 %v236_v29, 23  ;;  %v240_v36 = vand.u32 8388607, %v233_v28  ;;  %v4074_v38 = vsel %vm224_vm0, %v193_v32, %v217_v33  ;;  %v2914_v53 = vmul.f32 %v2912_v27, %v4043_v6 }
  0x1d   : > { %v391_v42 = vand.u32 2139095040, %v4074_v38  ;;  %2812 = vst [vmem:[%s4060_s8 + $0x8] sm:$0x3] %v4074_v38  ;;  %v4088_v47 = vsel %vm224_vm0, %v194_v39, %v218_v40  ;;  %v388_v48 = vand.u32 2147483647, %v4074_v38  ;;  %v2915_v56 = vmul.f32 %v2912_v27, %v2853_v16 }
  0x1e   : > { %v3760_v41 = vadd.s32 4294967169, %v237_v35  ;;  %v241_v44 = vor.u32 8388608, %v240_v36  ;;  %2813 = vst [vmem:[%s4060_s8 + $0x10] sm:$0x3] %v4088_v47  ;;  %v2913_v57 = vmul.f32 %v2912_v27, %v4082_v43  ;;  %v546_v62 = vand.u32 2139095040, %v4088_v47 }
  0x1f   : > { %v392_v46 = vshrl.u32 %v391_v42, 23  ;;  %v395_v60 = vand.u32 8388607, %v388_v48  ;;  %v3988_v5 = vmov 2131351028  }
  0x20   : > { %2875 = vrot.lane.b32.xlu0 %v2865_v23, %s3983_s4  ;;  %2902 = vrot.lane.b32.xlu1 %v2891_v31, %s3984_s5  ;;  %v243_v45 = vadd.s32 1, %v3760_v41  ;;  %v4098_v55 = vshll.u32 %v241_v44, 8  ;;  %v3989_v9 = vmov 2102212464   ;;  %v3990_v11 = vmov 920167782  }
  0x21   : > { %2927 = vrot.lane.b32.xlu2 %v2916_v37, %s3985_s11  ;;  %v3763_v51 = vadd.s32 4294967169, %v392_v46  ;;  %v3991_v20 = vmov 1326507024   ;;  %v396_v36 = vor.u32 8388608, %v395_v60  ;;  %v4140_v46 = vshrl.u32 %v546_v62, 23 }
  0x22   : > { %vm244_vm1 = vcmp.gt.s32.totalorder %v243_v45, 0  ;;  %v282_v13 = vand.u32 65535, %v4098_v55  ;;  %v283_v14 = vshrl.u32 %v4098_v55, 16 }
  0x23   : > { %v245_v54 = vsel %vm244_vm1, %v243_v45, 0  ;;  %v398_v61 = vadd.s32 1, %v3763_v51 }
  0x24   : > { %v4101_v58 = vshrl.u32 %v245_v54, 5  ;;  %v247_v59 = vand.u32 31, %v245_v54 }
  0x25   : > { %vm399_vm4 = vcmp.gt.s32.totalorder %v398_v61, 0 }
  0x26   : > { %v248_v63 = vsub.s32 32, %v247_v59  ;;  %v250_v2 = vshll.u32 %v3986_v0, %v247_v59  ;;  %v253_v4 = vshll.u32 %v3987_v3, %v247_v59  ;;  %v256_v8 = vshll.u32 %v3988_v5, %v247_v59 }
  0x27   : > { %v259_v10 = vshll.u32 %v3989_v9, %v247_v59  ;;  %v262_v12 = vshll.u32 %v3990_v11, %v247_v59  ;;  %vm265_vm2 = vcmp.lt.s32.totalorder %v4101_v58, 1  ;;  %vm268_vm3 = vcmp.lt.s32.totalorder %v4101_v58, 4 }
  0x28   : > { %2871 = vrot.lane.b32.xlu0 %v2863_v49, %s3983_s4  ;;  %2898 = vrot.lane.b32.xlu1 %v2889_v50, %s3984_s5  ;;  %v251_v15 = vshrl.u32 %v3987_v3, %v248_v63  ;;  %v254_v16 = vshrl.u32 %v3988_v5, %v248_v63  ;;  %v257_v17 = vshrl.u32 %v3989_v9, %v248_v63  ;;  %vm267_vm5 = vcmp.lt.s32.totalorder %v4101_v58, 3 }
  0x29   : > { %2925 = vrot.lane.b32.xlu2 %v2915_v56, %s3985_s11  ;;  %v249_v18 = vshrl.u32 %v3986_v0, %v248_v63  ;;  %v260_v19 = vshrl.u32 %v3990_v11, %v248_v63  ;;  %v263_v21 = vshrl.u32 %v3991_v20, %v248_v63  ;;  %v400_v29 = vsel %vm399_vm4, %v398_v61, 0 }
  0x2a   : > { %v252_v22 = vor.u32 %v251_v15, %v250_v2  ;;  %v255_v23 = vor.u32 %v254_v16, %v253_v4  ;;  %v258_v25 = vor.u32 %v257_v17, %v256_v8  ;;  %vm266_vm6 = vcmp.lt.s32.totalorder %v4101_v58, 2 }
  0x2b   : > { %v261_v26 = vor.u32 %v260_v19, %v259_v10  ;;  %v264_v27 = vor.u32 %v263_v21, %v262_v12  ;;  %v402_v41 = vand.u32 31, %v400_v29  ;;  %v4138_v45 = vshrl.u32 %v400_v29, 5 }
  0x2c   : > { %v270_v30 = vsel %vm268_vm3, %v258_v25, 2102212464  ;;  %v273_v31 = vsel %vm265_vm2, %v252_v22, %v255_v23  ;;  %v277_v32 = vsel %vm265_vm2, %v255_v23, %v258_v25  ;;  %v269_v33 = vsel %vm265_vm2, %v249_v18, %v252_v22 }
  0x2d   : > { %v274_v34 = vsel %vm268_vm3, %v261_v26, 920167782  ;;  %v278_v35 = vsel %vm268_vm3, %v264_v27, 1326507024  ;;  %v271_v37 = vsel %vm267_vm5, %v255_v23, %v270_v30  ;;  %v405_v56 = vshll.u32 %v3986_v0, %v402_v41 }
  0x2e   : > { %v275_v39 = vsel %vm267_vm5, %v258_v25, %v274_v34  ;;  %v279_v40 = vsel %vm267_vm5, %v261_v26, %v278_v35  ;;  %v4150_v59 = vshll.u32 %v396_v36, 8  ;;  %v408_v63 = vshll.u32 %v3987_v3, %v402_v41 }
  0x2f   : > { %v276_v42 = vsel %vm266_vm6, %v273_v31, %v275_v39  ;;  %v280_v44 = vsel %vm266_vm6, %v277_v32, %v279_v40  ;;  %vm420_vm7 = vcmp.lt.s32.totalorder %v4138_v45, 1  ;;  %v414_v40 = vshll.u32 %v3989_v9, %v402_v41 }
  0x30   : > { %2896 = vrot.lane.b32.xlu0 %v2888_v52, %s3984_s5  ;;  %2923 = vrot.lane.b32.xlu1 %v2914_v53, %s3985_s11  ;;  %v284_v49 = vand.u32 65535, %v280_v44  ;;  %v285_v50 = vshrl.u32 %v280_v44, 16  ;;  %v306_v51 = vand.u32 65535, %v276_v42  ;;  %v307_v54 = vshrl.u32 %v276_v42, 16 }
  0x31   : > { %2921 = vrot.lane.b32.xlu2 %v2913_v57, %s3985_s11  ;;  %v4145_v52 = vsel %vm266_vm6, %v269_v33, %v271_v37  ;;  %v4147_v53 = vsub.s32 32, %v402_v41  ;;  %v411_v57 = vshll.u32 %v3988_v5, %v402_v41  ;;  %v417_v44 = vshll.u32 %v3990_v11, %v402_v41 }
  0x32   : > { %v286_v60 = vmul.u32 %v284_v49, %v282_v13  ;;  %v287_v61 = vmul.u32 %v285_v50, %v282_v13  ;;  %v288_v62 = vmul.u32 %v284_v49, %v283_v14  ;;  %v308_v2 = vmul.u32 %v306_v51, %v282_v13 }
  0x33   : > { %v309_v4 = vmul.u32 %v307_v54, %v282_v13  ;;  %v310_v8 = vmul.u32 %v306_v51, %v283_v14  ;;  %v289_v10 = vmul.u32 %v285_v50, %v283_v14  ;;  %v311_v15 = vmul.u32 %v307_v54, %v283_v14 }
  0x34   : > { %v290_v58 = vshll.u32 %v287_v61, 16  ;;  %v292_v12 = vshll.u32 %v288_v62, 16  ;;  %v291_v16 = vshrl.u32 %v287_v61, 16  ;;  %v293_v17 = vshrl.u32 %v288_v62, 16 }
  0x35   : > { %v312_v18 = vshll.u32 %v309_v4, 16  ;;  %v314_v19 = vshll.u32 %v310_v8, 16  ;;  %v313_v22 = vshrl.u32 %v309_v4, 16  ;;  %v406_v23 = vshrl.u32 %v3987_v3, %v4147_v53 }
  0x36   : > { %vm294_vm8 = vc.u32 %v286_v60, %v290_v58  ;;  %v296_v21 = vadd.s32 %v290_v58, %v286_v60  ;;  %v3992_v13 = vmov 0   ;;  %v409_v14 = vshrl.u32 %v3988_v5, %v4147_v53 }
  0x37   : > { %v295_v25 = vsel %vm294_vm8, 1, %v3992_v13  ;;  %vm316_vm9 = vc.u32 %v308_v2, %v312_v18  ;;  %v318_v26 = vadd.s32 %v312_v18, %v308_v2  ;;  %v315_v29 = vshrl.u32 %v310_v8, 16 }
  0x38   : > { %v297_v27 = vadd.s32 %v295_v25, %v289_v10  ;;  %vm298_vm10 = vc.u32 %v296_v21, %v292_v12  ;;  %v317_v30 = vsel %vm316_vm9, 1, %v3992_v13  ;;  %v4162_v33 = vor.u32 %v406_v23, %v405_v56 }
  0x39   : > { %v299_v31 = vsel %vm298_vm10, 1, %v3992_v13  ;;  %v319_v32 = vadd.s32 %v317_v30, %v311_v15  ;;  %vm320_vm11 = vc.u32 %v318_v26, %v314_v19  ;;  %v4165_v36 = vor.u32 %v409_v14, %v408_v63 }
  0x3a   : > { %v301_v34 = vadd.s32 %v299_v31, %v297_v27  ;;  %v321_v35 = vsel %vm320_vm11, 1, %v3992_v13  ;;  %v412_v37 = vshrl.u32 %v3989_v9, %v4147_v53  ;;  %v415_v42 = vshrl.u32 %v3990_v11, %v4147_v53 }
  0x3b   : > { %v323_v39 = vadd.s32 %v321_v35, %v319_v32  ;;  %v4173_v50 = vadd.s32 %v318_v26, %v314_v19  ;;  %v418_v54 = vshrl.u32 %v3991_v20, %v4147_v53  ;;  %vm422_vm12 = vcmp.lt.s32.totalorder %v4138_v45, 3 }
  0x3c   : > { %v302_v49 = vadd.s32 %v301_v34, %v291_v16  ;;  %v413_v51 = vor.u32 %v412_v37, %v411_v57  ;;  %v416_v60 = vor.u32 %v415_v42, %v414_v40  ;;  %vm423_vm13 = vcmp.lt.s32.totalorder %v4138_v45, 4 }
  0x3d   : > { %v324_v56 = vadd.s32 %v323_v39, %v313_v22  ;;  %v419_v62 = vor.u32 %v418_v54, %v417_v44  ;;  %vm421_vm14 = vcmp.lt.s32.totalorder %v4138_v45, 2  ;;  %v428_v41 = vsel %vm420_vm7, %v4162_v33, %v4165_v36 }
  0x3e   : > { %v4179_v61 = vadd.s32 %v302_v49, %v293_v17  ;;  %v429_v2 = vsel %vm423_vm13, %v416_v60, 920167782  ;;  %v3766_v4 = vadd.s32 4294967169, %v4140_v46  ;;  %v326_v8 = vmul.u32 %v4098_v55, %v4145_v52 }
  0x3f   : > { %v325_v63 = vadd.s32 %v324_v56, %v315_v29  ;;  %v430_v57 = vsel %vm422_vm12, %v413_v51, %v429_v2  ;;  %v437_v10 = vand.u32 65535, %v4150_v59  ;;  %v432_v15 = vsel %vm420_vm7, %v4165_v36, %v413_v51 }
  0x40   : > { %vm328_vm15 = vc.u32 %v4179_v61, %v4173_v50  ;;  %v431_v12 = vsel %vm421_vm14, %v428_v41, %v430_v57  ;;  %v433_v46 = vsel %vm423_vm13, %v419_v62, 1326507024  ;;  %v438_v52 = vshrl.u32 %v4150_v59, 16 }
  0x41   : > { %v329_v58 = vadd.s32 1, %v325_v63  ;;  %v434_v55 = vsel %vm422_vm12, %v416_v60, %v433_v46  ;;  %v461_v16 = vand.u32 65535, %v431_v12  ;;  %v462_v17 = vshrl.u32 %v431_v12, 16 }
  0x42   : > { %v435_v19 = vsel %vm421_vm14, %v432_v15, %v434_v55  ;;  %v553_v14 = vadd.s32 1, %v3766_v4  ;;  %v404_v31 = vshrl.u32 %v3986_v0, %v4147_v53  ;;  %v425_v39 = vsel %vm423_vm13, %v413_v51, 2102212464 }
  0x43   : > { %v330_v18 = vsel %vm328_vm15, %v329_v58, %v325_v63  ;;  %v439_v22 = vand.u32 65535, %v435_v19  ;;  %v440_v23 = vshrl.u32 %v435_v19, 16  ;;  %v464_v25 = vmul.u32 %v462_v17, %v437_v10 }
  0x44   : > { %v331_v21 = vadd.s32 %v330_v18, %v326_v8  ;;  %v465_v26 = vmul.u32 %v461_v16, %v438_v52  ;;  %v463_v34 = vmul.u32 %v461_v16, %v437_v10  ;;  %v466_v49 = vmul.u32 %v462_v17, %v438_v52 }
  0x45   : > { %v441_v29 = vmul.u32 %v439_v22, %v437_v10  ;;  %v442_v30 = vmul.u32 %v440_v23, %v437_v10  ;;  %v443_v32 = vmul.u32 %v439_v22, %v438_v52  ;;  %v467_v35 = vshll.u32 %v464_v25, 16 }
  0x46   : > { %v332_v27 = vadd.s32 536870912, %v331_v21  ;;  %v444_v40 = vmul.u32 %v440_v23, %v438_v52  ;;  %v469_v54 = vshll.u32 %v465_v26, 16  ;;  %vm554_vm1 = vcmp.gt.s32.totalorder %v553_v14, 0 }
  0x47   : > { %v445_v42 = vshll.u32 %v442_v30, 16  ;;  %v447_v44 = vshll.u32 %v443_v32, 16  ;;  %v446_v60 = vshrl.u32 %v442_v30, 16  ;;  %v468_v53 = vshrl.u32 %v464_v25, 16 }
  0x48   : > { %v333_v37 = vshrl.u32 %v332_v27, 30  ;;  %vm471_vm3 = vc.u32 %v463_v34, %v467_v35  ;;  %v473_v41 = vadd.s32 %v467_v35, %v463_v34  ;;  %v448_v4 = vshrl.u32 %v443_v32, 16 }
  0x49   : > { %vm449_vm2 = vc.u32 %v441_v29, %v445_v42  ;;  %v451_v62 = vadd.s32 %v445_v42, %v441_v29  ;;  %v472_v57 = vsel %vm471_vm3, 1, %v3992_v13  ;;  %v555_v10 = vsel %vm554_vm1, %v553_v14, 0 }
  0x4a   : > { %v334_v56 = vshll.u32 %v333_v37, 30  ;;  %v450_v63 = vsel %vm449_vm2, 1, %v3992_v13  ;;  %vm475_vm5 = vc.u32 %v473_v41, %v469_v54  ;;  %v474_v15 = vadd.s32 %v472_v57, %v466_v49 }
  0x4b   : > { %v452_v8 = vadd.s32 %v450_v63, %v444_v40  ;;  %vm453_vm4 = vc.u32 %v451_v62, %v447_v44  ;;  %v424_v46 = vsel %vm420_vm7, %v404_v31, %v4162_v33  ;;  %v426_v55 = vsel %vm422_vm12, %v4165_v36, %v425_v39 }
  0x4c   : > { %v335_v2 = vsub.s32 %v331_v21, %v334_v56  ;;  %v454_v51 = vsel %vm453_vm4, 1, %v3992_v13  ;;  %v470_v52 = vshrl.u32 %v465_v26, 16  ;;  %v476_v16 = vsel %vm475_vm5, 1, %v3992_v13 }
  0x4d   : > { %v456_v12 = vadd.s32 %v454_v51, %v452_v8  ;;  %v478_v19 = vadd.s32 %v476_v16, %v474_v15  ;;  %v557_v21 = vand.u32 31, %v555_v10  ;;  %v4223_v23 = vadd.s32 %v473_v41, %v469_v54 }
  0x4e   : > { %vm336_vm6 = vcmp.lt.s32.totalorder %v335_v2, 0  ;;  %v337_v58 = vsub.s32 0, %v335_v2  ;;  %v543_v27 = vand.u32 2147483647, %v4088_v47  ;;  %v427_v29 = vsel %vm421_vm14, %v424_v46, %v426_v55 }
  0x4f   : > { %v457_v18 = vadd.s32 %v456_v12, %v446_v60  ;;  %v479_v14 = vadd.s32 %v478_v19, %v468_v53  ;;  %v357_v36 = vsub.s32 4, %v333_v37  ;;  %v558_v30 = vsub.s32 32, %v557_v21 }
  0x50   : > { %v338_v17 = vsel %vm336_vm6, %v337_v58, %v335_v2  ;;  %v327_v31 = vadd.s32 %v4173_v50, %v4179_v61  ;;  %v481_v34 = vmul.u32 %v4150_v59, %v427_v29  ;;  %v550_v39 = vand.u32 8388607, %v543_v27 }
  0x51   : > { %v339_v22 = vclz %v338_v17  ;;  %v4225_v25 = vadd.s32 %v457_v18, %v448_v4  ;;  %v480_v26 = vadd.s32 %v479_v14, %v470_v52  ;;  %vm235_vm9 = vcmp.lt.s32.totalorder %v4064_v24, 0 }
  0x52   : > { %v358_v44 = vsel %vm235_vm9, %v357_v36, %v333_v37  ;;  %v563_v61 = vshll.u32 %v3987_v3, %v557_v21  ;;  %v564_v49 = vshrl.u32 %v3988_v5, %v558_v30  ;;  %v566_v59 = vshll.u32 %v3988_v5, %v557_v21 }
  0x53   : > { %v3761_v33 = vadd.s32 4294967294, %v339_v22  ;;  %vm483_vm8 = vc.u32 %v4225_v25, %v4223_v23  ;;  %v484_v35 = vadd.s32 1, %v480_v26  ;;  %v567_v60 = vshrl.u32 %v3989_v9, %v558_v30 }
  0x54   : > { %vm4246_vm10 = vcmp.le.f32.partialorder %v233_v28, 0.7853982  ;;  %v551_v53 = vor.u32 8388608, %v550_v39  ;;  %v4250_v37 = vshrl.u32 %v555_v10, 5  ;;  %v572_v8 = vshll.u32 %v3990_v11, %v557_v21 }
  0x55   : > { %vm3762_vm7 = vcmp.lt.s32.totalorder %v3761_v33, 0  ;;  %v485_v50 = vsel %vm483_vm8, %v484_v35, %v480_v26  ;;  %v360_v4 = vsel %vm4246_vm10, 0, %v358_v44  ;;  %v4255_v57 = vor.u32 %v564_v49, %v563_v61 }
  0x56   : > { %v342_v32 = vsel %vm3762_vm7, 0, %v3761_v33  ;;  %v486_v63 = vadd.s32 %v485_v50, %v481_v34  ;;  %v569_v58 = vshll.u32 %v3989_v9, %v557_v21  ;;  %v573_v28 = vshrl.u32 %v3991_v20, %v558_v30 }
  0x57   : > { %v343_v45 = vsub.s32 32, %v342_v32  ;;  %v344_v40 = vshll.u32 %v335_v2, %v342_v32  ;;  %v347_v42 = vsub.s32 4294967266, %v342_v32  ;;  %v568_v46 = vor.u32 %v567_v60, %v566_v59 }
  0x58   : > { %v487_v51 = vadd.s32 536870912, %v486_v63  ;;  %v570_v10 = vshrl.u32 %v3990_v11, %v558_v30  ;;  %v574_v52 = vor.u32 %v573_v28, %v572_v8  ;;  %vm575_vm11 = vcmp.lt.s32.totalorder %v4250_v37, 1 }
  0x59   : > { %v345_v54 = vshrl.u32 %v327_v31, %v343_v45  ;;  %v348_v56 = vadd.s32 127, %v347_v42  ;;  %v560_v17 = vshll.u32 %v3986_v0, %v557_v21  ;;  %v561_v18 = vshrl.u32 %v3987_v3, %v558_v30 }
  0x5a   : > { %v4260_v55 = vshrl.u32 %v487_v51, 30  ;;  %vm578_vm12 = vcmp.lt.s32.totalorder %v4250_v37, 4  ;;  %v377_v19 = vadd.s32 3, %v360_v4  ;;  %vm577_vm13 = vcmp.lt.s32.totalorder %v4250_v37, 3 }
  0x5b   : > { %v346_v41 = vor.u32 %v345_v54, %v344_v40  ;;  %v349_v2 = vshll.u32 %v348_v56, 23  ;;  %v4268_v14 = vshll.u32 %v551_v53, 8  ;;  %v571_v29 = vor.u32 %v570_v10, %v569_v58 }
  0x5c   : > { %v489_v22 = vshll.u32 %v4260_v55, 30  ;;  %vm576_vm14 = vcmp.lt.s32.totalorder %v4250_v37, 2  ;;  %v587_v36 = vsel %vm575_vm11, %v4255_v57, %v568_v46  ;;  %v588_v26 = vsel %vm578_vm12, %v574_v52, 1326507024 }
  0x5d   : > { %v350_v12 = vor.u32 4788187, %v349_v2  ;;  %v353_v15 = vcvt.s32.f32 %v346_v41  ;;  %vm390_vm15 = vcmp.lt.s32.totalorder %v4074_v38, 0  ;;  %v559_v32 = vshrl.u32 %v3986_v0, %v558_v30 }
  0x5e   : > { %v4274_v21 = vsub.s32 %v486_v63, %v489_v22  ;;  %v562_v34 = vor.u32 %v561_v18, %v560_v17  ;;  %v589_v35 = vsel %vm577_vm13, %v571_v29, %v588_v26  ;;  %v4282_v39 = vand.u32 3, %v360_v4 }
  0x5f   : > { %v351_v16 = vand.u32 2147483647, %v350_v12  ;;  %v590_v40 = vsel %vm576_vm14, %v587_v36, %v589_v35  ;;  %v4290_v44 = vand.u32 3, %v377_v19  ;;  %v584_v30 = vsel %vm578_vm12, %v571_v29, 920167782 }
  0x60   : > { %vm491_vm1 = vcmp.lt.s32.totalorder %v4274_v21, 0  ;;  %v492_v45 = vsub.s32 0, %v4274_v21  ;;  %v4295_v50 = vand.u32 65535, %v4268_v14  ;;  %v595_v54 = vshrl.u32 %v590_v40, 16 }
  0x61   : > { %v354_v33 = vmul.f32 %v353_v15, %v351_v16  ;;  %v3993_v59 = vmov 0.0   ;;  %vm4308_vm2 = vcmp.le.f32.partialorder %v388_v48, 0.7853982  ;;  %v580_v62 = vsel %vm578_vm12, %v568_v46, 2102212464 }
  0x62   : > { %v493_v49 = vsel %vm491_vm1, %v492_v45, %v4274_v21  ;;  %3689 = vst [vmem:[%s4060_s8 + $0x40] sm:$0xfe] %v3993_v59  ;;  %v583_v53 = vsel %vm575_vm11, %v562_v34, %v4255_v57  ;;  %v512_v41 = vsub.s32 4, %v4260_v55  ;;  %v585_v2 = vsel %vm577_vm13, %v568_v46, %v584_v30 }
  0x63   : > { %v355_v31 = vxor.u32 2147483648, %v354_v33  ;;  %v494_v63 = vclz %v493_v49  ;;  %3690 = vst [vmem:[%s4060_s8 + $0x48] sm:$0xfe] %v3993_v59  ;;  %v4322_v48 = vshrl.u32 %v4268_v14, 16  ;;  %v594_v4 = vand.u32 65535, %v590_v40 }
  0x64   : > { %3691 = vst [vmem:[%s4060_s8 + $0x50] sm:$0xfe] %v3993_v59  ;;  %v482_v58 = vadd.s32 %v4223_v23, %v4225_v25  ;;  %v579_v12 = vsel %vm575_vm11, %v559_v32, %v562_v34  ;;  %v4331_v15 = vmul.u32 %v595_v54, %v4295_v50  ;;  %v581_v52 = vsel %vm577_vm13, %v4255_v57, %v580_v62 }
  0x65   : > { %v356_v42 = vsel %vm235_vm9, %v355_v31, %v354_v33  ;;  %3692 = vst [vmem:[%s4060_s8 + $0x58] sm:$0xfe] %v3993_v59  ;;  %v3764_v28 = vadd.s32 4294967294, %v494_v63  ;;  %v586_v16 = vsel %vm576_vm14, %v583_v53, %v585_v2  ;;  %vm383_vm3 = vcmp.eq.s32.totalorder %v4290_v44, 2 }
  0x66   : > { %v4300_v61 = vsel %vm4246_vm10, %v4064_v24, %v356_v42  ;;  %3693 = vst [vmem:[%s4060_s8 + $0x60] sm:$0xfe] %v3993_v59  ;;  %vm1622_vm4 = vcmp.eq.s32.totalorder %v4282_v39, 2  ;;  %v513_v23 = vsel %vm390_vm15, %v512_v41, %v4260_v55  ;;  %v596_v25 = vmul.u32 %v594_v4, %v4295_v50 }
  0x67   : > { %v361_v56 = vmul.f32 %v4300_v61, %v4300_v61  ;;  %3694 = vst [vmem:[%s4060_s8 + $0x68] sm:$0xfe] %v3993_v59  ;;  %vm3765_vm5 = vcmp.lt.s32.totalorder %v3764_v28, 0  ;;  %v4347_v17 = vmul.u32 %v594_v4, %v4322_v48  ;;  %v616_v22 = vand.u32 65535, %v586_v16 }
  0x68   : > { %3695 = vst [vmem:[%s4060_s8 + $0x70] sm:$0xfe] %v3993_v59  ;;  %v497_v19 = vsel %vm3765_vm5, 0, %v3764_v28  ;;  %vm380_vm6 = vcmp.eq.s32.totalorder %v4290_v44, 0  ;;  %vm1619_vm7 = vcmp.eq.s32.totalorder %v4282_v39, 0  ;;  %v600_v55 = vshll.u32 %v4331_v15, 16 }
  0x69   : > { %v362_v8 = vmul.f32 -0.001358992, %v361_v56  ;;  %v369_v51 = vmul.f32 -0.00019511016, %v361_v56  ;;  %3696 = vst [vmem:[%s4060_s8 + $0x78] sm:$0xfe] %v3993_v59  ;;  %v499_v29 = vshll.u32 %v4274_v21, %v497_v19  ;;  %v4359_v32 = vsel %vm576_vm14, %v579_v12, %v581_v52 }
  0x6a   : > { %v498_v33 = vsub.s32 32, %v497_v19  ;;  %v502_v36 = vsub.s32 4294967266, %v497_v19  ;;  %vm379_vm8 = vcmp.lt.s32.totalorder %v4290_v44, 2  ;;  %vm1618_vm9 = vcmp.lt.s32.totalorder %v4282_v39, 2 }
  0x6b   : > { %v363_v46 = vadd.f32 0.041655596, %v362_v8  ;;  %v370_v10 = vadd.f32 0.008332121, %v369_v51  ;;  %vm376_vm10 = vweird.f32 %v4064_v24  ;;  %v4364_v21 = vsel %vm4308_vm2, 0, %v513_v23 }
  0x6c   : > { %v500_v34 = vshrl.u32 %v482_v58, %v498_v33  ;;  %v503_v35 = vadd.s32 127, %v502_v36  ;;  %v599_v45 = vmul.u32 %v595_v54, %v4322_v48  ;;  %v601_v30 = vshrl.u32 %v4331_v15, 16 }
  0x6d   : > { %v364_v57 = vmul.f32 %v363_v46, %v361_v56  ;;  %v371_v18 = vmul.f32 %v370_v10, %v361_v56  ;;  %v602_v49 = vshll.u32 %v4347_v17, 16  ;;  %vm604_vm11 = vc.u32 %v596_v25, %v600_v55 }
  0x6e   : > { %v501_v59 = vor.u32 %v500_v34, %v499_v29  ;;  %v504_v37 = vshll.u32 %v503_v35, 23  ;;  %v4370_v63 = vmul.u32 %v616_v22, %v4322_v48  ;;  %v605_v41 = vsel %vm604_vm11, 1, %v3992_v13 }
  0x6f   : > { %v365_v26 = vadd.f32 -0.4999988, %v364_v57  ;;  %v372_v31 = vadd.f32 -0.16666654, %v371_v18  ;;  %v606_v2 = vadd.s32 %v600_v55, %v596_v25  ;;  %v607_v54 = vadd.s32 %v605_v41, %v599_v45 }
  0x70   : > { %v505_v4 = vor.u32 4788187, %v504_v37  ;;  %v508_v8 = vcvt.s32.f32 %v501_v59  ;;  %v617_v51 = vshrl.u32 %v586_v16, 16  ;;  %v618_v28 = vmul.u32 %v616_v22, %v4295_v50 }
  0x71   : > { %v366_v40 = vmul.f32 %v365_v26, %v361_v56  ;;  %v373_v42 = vmul.f32 %v372_v31, %v361_v56  ;;  %vm608_vm12 = vc.u32 %v606_v2, %v602_v49  ;;  %v603_v15 = vshrl.u32 %v4347_v17, 16 }
  0x72   : > { %v506_v12 = vand.u32 2147483647, %v505_v4  ;;  %v609_v46 = vsel %vm608_vm12, 1, %v3992_v13  ;;  %v619_v10 = vmul.u32 %v617_v51, %v4295_v50  ;;  %vm2793_vm13 = vcmask 1040384  }
  0x73   : > { %v367_v62 = vadd.f32 1.0, %v366_v40  ;;  %v374_v53 = vadd.f32 1.0, %v373_v42  ;;  %vm2802_vm14 = vcmask 1041408   ;;  %v621_v57 = vmul.u32 %v617_v51, %v4322_v48 }
  0x74   : > { %v509_v25 = vmul.f32 %v508_v8, %v506_v12  ;;  %v622_v18 = vshll.u32 %v619_v10, 16  ;;  %v624_v17 = vshll.u32 %v4370_v63, 16  ;;  %vm2970_vm1 = vcmask 1042432  }
  0x75   : > { %v375_v56 = vmul.f32 %v374_v53, %v4300_v61  ;;  %v384_v58 = vxor.u32 2147483648, %v367_v62  ;;  %v611_v61 = vadd.s32 %v609_v46, %v607_v54  ;;  %v623_v22 = vshrl.u32 %v619_v10, 16 }
  0x76   : > { %v171_v33 = vadd.s32 384, %v4031_v1  ;;  %v510_v48 = vxor.u32 2147483648, %v509_v25  ;;  %v628_v40 = vadd.s32 %v622_v18, %v618_v28  ;;  %vm531_vm12 = vweird.f32 %v4074_v38 }
  0x77   : > { %v381_v52 = vxor.u32 2147483648, %v375_v56  ;;  %v385_v23 = vsel %vm383_vm3, %v384_v58, %v375_v56  ;;  %v1624_v16 = vsel %vm1622_vm4, %v384_v58, %v375_v56  ;;  %vm2957_vm3 = vcmask 23552  }
  0x78   : > { %vm626_vm4 = vc.u32 %v618_v28, %v622_v18  ;;  %v612_v31 = vadd.s32 %v611_v61, %v601_v30  ;;  %v511_v44 = vsel %vm390_vm15, %v510_v48, %v509_v25  ;;  %v179_v49 = vshra.s32 %v171_v33, 5 }
  0x79   : > { %v382_v19 = vsel %vm380_vm6, %v367_v62, %v381_v52  ;;  %v1621_v50 = vsel %vm1619_vm7, %v367_v62, %v381_v52  ;;  %v627_v34 = vsel %vm626_vm4, 1, %v3992_v13  ;;  %v514_v39 = vsel %vm4308_vm2, %v4074_v38, %v511_v44 }
  0x7a   : > { %v386_v29 = vsel %vm379_vm8, %v382_v19, %v385_v23  ;;  %v1625_v36 = vsel %vm1618_vm9, %v1621_v50, %v1624_v16  ;;  %v629_v42 = vadd.s32 %v627_v34, %v621_v57  ;;  %v203_v59 = vand.u32 31, %v171_v33 }
  0x7b   : > { %v387_v55 = vsel %vm376_vm10, nan, %v386_v29  ;;  %v1626_v26 = vsel %vm376_vm10, nan, %v1625_v36  ;;  %v516_v24 = vmul.f32 %v514_v39, %v514_v39  ;;  %vm630_vm5 = vc.u32 %v628_v40, %v624_v17 }
  0x7c   : > { %v2713_v35 = vrot.slane %v1626_v26, 7  ;;  %v2745_v45 = vrot.slane %v387_v55, 7  ;;  %v625_v30 = vshrl.u32 %v4370_v63, 16  ;;  %v631_v53 = vsel %vm630_vm5, 1, %v3992_v13 }
  0x7d   : > { %v187_v41 = vcvt.s32.f32 %v179_v49  ;;  %v211_v2 = vcvt.s32.f32 %v203_v59  ;;  %v517_v8 = vmul.f32 -0.001358992, %v516_v24  ;;  %v524_v54 = vmul.f32 -0.00019511016, %v516_v24 }
  0x7e   : > { %v2729_v37 = vmul.f32 %v2713_v35, %v387_v55  ;;  %v2761_v62 = vmul.f32 %v2745_v45, %v387_v55  ;;  %v633_v51 = vadd.s32 %v631_v53, %v629_v42  ;;  %v4405_v56 = vadd.s32 %v612_v31, %v603_v15 }
  0x7f   : > { %v4407_v60 = vadd.s32 %v628_v40, %v624_v17  ;;  %v195_v58 = vmul.f32 0.2026834, %v187_v41  ;;  %v219_v28 = vmul.f32 0.1013417, %v211_v2  ;;  %v518_v46 = vadd.f32 0.041655596, %v517_v8 }
  0x80   : > { %v2777_v4 = vrot.slane %v2729_v37, 1  ;;  %v525_v10 = vadd.f32 0.008332121, %v524_v54  ;;  %v634_v63 = vadd.s32 %v633_v51, %v623_v22  ;;  %v532_v23 = vadd.s32 3, %v4364_v21 }
  0x81   : > { %v4414_v16 = vsel %vm224_vm0, %v195_v58, %v219_v28  ;;  %v519_v61 = vmul.f32 %v518_v46, %v516_v24  ;;  %v1771_v18 = vand.u32 3, %v4364_v21  ;;  %v636_v17 = vmul.u32 %v4268_v14, %v4359_v32 }
  0x82   : > { %v2794_v12 = vsel %vm2793_vm13, %v2777_v4, %v2761_v62  ;;  %v526_v25 = vmul.f32 %v525_v10, %v516_v24  ;;  %v635_v57 = vadd.s32 %v634_v63, %v625_v30  ;;  %2814 = vst [vmem:[%s4060_s8 + $0x18] sm:$0x3] %v4414_v16  ;;  %vm638_vm15 = vc.u32 %v4405_v56, %v4407_v60 }
  0x83   : > { %v2803_v52 = vsel %vm2802_vm14, %v2794_v12, %v2713_v35  ;;  %v701_v19 = vand.u32 2139095040, %v4414_v16  ;;  %v520_v50 = vadd.f32 -0.4999988, %v519_v61  ;;  %v533_v29 = vand.u32 3, %v532_v23 }
  0x84   : > { %v2827_v15 = vrot.slane %v2803_v52, 6  ;;  %3809 = vmatpush.msk.msra.mxu0 %vm2970_vm1, %v2803_v52  ;;  %v527_v22 = vadd.f32 -0.16666654, %v526_v25  ;;  %v639_v33 = vadd.s32 1, %v635_v57  ;;  %v698_v31 = vand.u32 2147483647, %v4414_v16 }
  0x85   : > { %3810 = vmatmul.msk.f32.vlgmr.msra.gmra.mxu0 %vm2957_vm3, %v4082_v43  ;;  %v702_v36 = vshrl.u32 %v701_v19, 23  ;;  %v521_v48 = vmul.f32 %v520_v50, %v516_v24  ;;  %vm1773_vm2 = vcmp.eq.s32.totalorder %v1771_v18, 0  ;;  %vm538_vm6 = vcmp.eq.s32.totalorder %v533_v29, 2  ;;  %v4456_v25 = vld [vmem:[%s5348_s1 + $0x10] sm:$0xff] }
  0x86   : > { %2843 = vst [vmem:[%s4060_s8] sm:$0x1c] %v2827_v15  ;;  %v528_v55 = vmul.f32 %v527_v22, %v516_v24  ;;  %v640_v26 = vsel %vm638_vm15, %v639_v33, %v635_v57  ;;  %vm1776_vm7 = vcmp.eq.s32.totalorder %v1771_v18, 2  ;;  %vm534_vm8 = vcmp.lt.s32.totalorder %v533_v29, 2 }
  0x87   : > { %v641_v21 = vadd.s32 %v640_v26, %v636_v17  ;;  %v3769_v34 = vadd.s32 4294967169, %v702_v36  ;;  %v522_v35 = vadd.f32 1.0, %v521_v48  ;;  %v705_v42 = vand.u32 8388607, %v698_v31 }
  0x88   : > { %v529_v14 = vadd.f32 1.0, %v528_v55  ;;  %vm535_vm9 = vcmp.eq.s32.totalorder %v533_v29, 0  ;;  %vm1772_vm10 = vcmp.lt.s32.totalorder %v1771_v18, 2  ;;  %v637_v10 = vadd.s32 %v4407_v60, %v4405_v56 }
  0x89   : > { %v642_v32 = vadd.s32 536870912, %v641_v21  ;;  %v708_v45 = vadd.s32 1, %v3769_v34  ;;  %v539_v40 = vxor.u32 2147483648, %v522_v35  ;;  %v706_v2 = vor.u32 8388608, %v705_v42 }
  0x8a   : > { %v530_v44 = vmul.f32 %v529_v14, %v514_v39  ;;  %vm545_vm5 = vcmp.lt.s32.totalorder %v4088_v47, 0  ;;  %vm4469_vm15 = vcmp.le.f32.partialorder %v543_v27, 0.7853982 }
  0x8b   : > { %v4431_v49 = vshrl.u32 %v642_v32, 30  ;;  %vm709_vm11 = vcmp.gt.s32.totalorder %v708_v45, 0  ;;  %v4448_v63 = vshll.u32 %v706_v2, 8 }
  0x8c   : > { %v536_v59 = vxor.u32 2147483648, %v530_v44  ;;  %v540_v37 = vsel %vm538_vm6, %v539_v40, %v530_v44  ;;  %v1778_v62 = vsel %vm1776_vm7, %v539_v40, %v530_v44  ;;  %v710_v24 = vsel %vm709_vm11, %v708_v45, 0 }
  0x8d   : > { %3811 = vmatmul.msk.f32.gmra.mxu0 %vm2957_vm3, %v4043_v6  ;;  %v644_v39 = vshll.u32 %v4431_v49, 30  ;;  %v712_v30 = vand.u32 31, %v710_v24  ;;  %v4442_v6 = vadd.s32 768, %v4031_v1  ;;  %v4460_v56 = vshrl.u32 %v710_v24, 5 }
  0x8e   : > { %v537_v53 = vsel %vm535_vm9, %v522_v35, %v536_v59  ;;  %v1775_v41 = vsel %vm1773_vm2, %v522_v35, %v536_v59  ;;  %v667_v14 = vsub.s32 4, %v4431_v49  ;;  %v4483_v32 = vand.u32 65535, %v4448_v63 }
  0x8f   : > { %v541_v4 = vsel %vm534_vm8, %v537_v53, %v540_v37  ;;  %v1779_v8 = vsel %vm1772_vm10, %v1775_v41, %v1778_v62  ;;  %v4439_v54 = vsub.s32 %v641_v21, %v644_v39  ;;  %v713_v28 = vsub.s32 32, %v712_v30  ;;  %v4497_v41 = vld [vmem:[%s5348_s1 + $0x18] sm:$0xff] }
  0x90   : > { %v542_v51 = vsel %vm531_vm12, nan, %v541_v4  ;;  %v1780_v58 = vsel %vm531_vm12, nan, %v1779_v8  ;;  %v182_v61 = vshra.s32 %v4442_v6, 5  ;;  %v715_v60 = vshll.u32 %v3986_v0, %v712_v30 }
  0x91   : > { %v2714_v12 = vrot.slane %v1780_v58, 7  ;;  %v2746_v38 = vrot.slane %v542_v51, 7  ;;  %vm646_vm4 = vcmp.lt.s32.totalorder %v4439_v54, 0  ;;  %v647_v46 = vsub.s32 0, %v4439_v54 }
  0x92   : > { %v206_v18 = vand.u32 31, %v4442_v6  ;;  %v716_v19 = vshrl.u32 %v3987_v3, %v713_v28  ;;  %v718_v50 = vshll.u32 %v3987_v3, %v712_v30  ;;  %v719_v22 = vshrl.u32 %v3988_v5, %v713_v28 }
  0x93   : > { %v2730_v52 = vmul.f32 %v2714_v12, %v542_v51  ;;  %v2762_v23 = vmul.f32 %v2746_v38, %v542_v51  ;;  %v648_v15 = vsel %vm646_vm4, %v647_v46, %v4439_v54  ;;  %v721_v36 = vshll.u32 %v3988_v5, %v712_v30 }
  0x94   : > { %v649_v57 = vclz %v648_v15  ;;  %v722_v48 = vshrl.u32 %v3989_v9, %v713_v28  ;;  %v724_v55 = vshll.u32 %v3989_v9, %v712_v30  ;;  %v725_v21 = vshrl.u32 %v3990_v11, %v713_v28 }
  0x95   : > { %3812 = vmatmul.msk.f32.gmra.mxu0 %vm2957_vm3, %v4456_v25  ;;  %v2778_v17 = vrot.slane %v2730_v52, 1  ;;  %v727_v34 = vshll.u32 %v3990_v11, %v712_v30  ;;  %v728_v35 = vshrl.u32 %v3991_v20, %v713_v28  ;;  %v717_v40 = vor.u32 %v716_v19, %v715_v60 }
  0x96   : > { %v3767_v29 = vadd.s32 4294967294, %v649_v57  ;;  %v4487_v42 = vshrl.u32 %v4448_v63, 16  ;;  %v720_v24 = vor.u32 %v719_v22, %v718_v50  ;;  %v723_v39 = vor.u32 %v722_v48, %v721_v36  ;;  %v4523_v48 = vld [vmem:[%s5348_s1 + $0x8] sm:$0xff] }
  0x97   : > { %v2795_v26 = vsel %vm2793_vm13, %v2778_v17, %v2762_v23  ;;  %v726_v30 = vor.u32 %v725_v21, %v724_v55  ;;  %v729_v53 = vor.u32 %v728_v35, %v727_v34  ;;  %vm730_vm6 = vcmp.lt.s32.totalorder %v4460_v56, 1 }
  0x98   : > { %v2804_v27 = vsel %vm2802_vm14, %v2795_v26, %v2714_v12  ;;  %vm3768_vm2 = vcmp.lt.s32.totalorder %v3767_v29, 0  ;;  %vm733_vm7 = vcmp.lt.s32.totalorder %v4460_v56, 4  ;;  %v714_v8 = vshrl.u32 %v3986_v0, %v713_v28 }
  0x99   : > { %v2828_v45 = vrot.slane %v2804_v27, 6  ;;  %3814 = vmatpush.msk.msra.mxu1 %vm2970_vm1, %v2804_v27  ;;  %v652_v44 = vsel %vm3768_vm2, 0, %v3767_v29  ;;  %vm731_vm8 = vcmp.lt.s32.totalorder %v4460_v56, 2  ;;  %vm732_vm9 = vcmp.lt.s32.totalorder %v4460_v56, 3 }
  0x9a   : > { %v653_v59 = vsub.s32 32, %v652_v44  ;;  %v654_v37 = vshll.u32 %v4439_v54, %v652_v44  ;;  %v657_v62 = vsub.s32 4294967266, %v652_v44  ;;  %3815 = vmatmul.msk.f32.vlgmr.msra.gmra.mxu1 %vm2957_vm3, %v4082_v43  ;;  %v668_v43 = vsel %vm545_vm5, %v667_v14, %v4431_v49 }
  0x9b   : > { %2844 = vst [vmem:[%s4060_s8 + $0x8] sm:$0x1c] %v2828_v45  ;;  %v190_v54 = vcvt.s32.f32 %v182_v61  ;;  %v735_v12 = vsel %vm733_vm7, %v723_v39, 2102212464  ;;  %v738_v38 = vsel %vm730_vm6, %v717_v40, %v720_v24  ;;  %v670_v46 = vsel %vm4469_vm15, 0, %v668_v43 }
  0x9c   : > { %v655_v2 = vshrl.u32 %v637_v10, %v653_v59  ;;  %v658_v4 = vadd.s32 127, %v657_v62  ;;  %v739_v10 = vsel %vm733_vm7, %v726_v30, 920167782  ;;  %v742_v49 = vsel %vm730_vm6, %v720_v24, %v723_v39 }
  0x9d   : > { %3813 = vmatmul.msk.f32.gmra.mxu0 %vm2957_vm3, %v4497_v41  ;;  %v743_v52 = vsel %vm733_vm7, %v729_v53, 1326507024  ;;  %v740_v15 = vsel %vm732_vm9, %v723_v39, %v739_v10  ;;  %v734_v61 = vsel %vm730_vm6, %v714_v8, %v717_v40  ;;  %v736_v60 = vsel %vm732_vm9, %v720_v24, %v735_v12 }
  0x9e   : > { %v656_v51 = vor.u32 %v655_v2, %v654_v37  ;;  %v659_v58 = vshll.u32 %v658_v4, 23  ;;  %v744_v57 = vsel %vm732_vm9, %v726_v30, %v743_v52  ;;  %v741_v17 = vsel %vm731_vm8, %v738_v38, %v740_v15 }
  0x9f   : > { %v745_v19 = vsel %vm731_vm8, %v742_v49, %v744_v57  ;;  %v771_v36 = vand.u32 65535, %v741_v17  ;;  %v687_v55 = vadd.s32 3, %v670_v46  ;;  %v4527_v26 = vand.u32 3, %v670_v46 }
  0xa0   : > { %v660_v28 = vor.u32 4788187, %v659_v58  ;;  %v663_v23 = vcvt.s32.f32 %v656_v51  ;;  %v749_v22 = vand.u32 65535, %v745_v19  ;;  %v750_v29 = vshrl.u32 %v745_v19, 16 }
  0xa1   : > { %v772_v21 = vshrl.u32 %v741_v17, 16  ;;  %v214_v34 = vcvt.s32.f32 %v206_v18  ;;  %v4536_v44 = vsel %vm731_vm8, %v734_v61, %v736_v60  ;;  %v775_v59 = vmul.u32 %v771_v36, %v4487_v42 }
  0xa2   : > { %v661_v50 = vand.u32 2147483647, %v660_v28  ;;  %3816 = vmatmul.msk.f32.gmra.mxu1 %vm2957_vm3, %v4523_v48  ;;  %v751_v27 = vmul.u32 %v749_v22, %v4483_v32  ;;  %v752_v14 = vmul.u32 %v750_v29, %v4483_v32  ;;  %v753_v45 = vmul.u32 %v749_v22, %v4487_v42 }
  0xa3   : > { %v774_v40 = vmul.u32 %v772_v21, %v4483_v32  ;;  %v198_v37 = vmul.f32 0.2026834, %v190_v54  ;;  %v754_v6 = vmul.u32 %v750_v29, %v4487_v42  ;;  %v773_v39 = vmul.u32 %v771_v36, %v4483_v32 }
  0xa4   : > { %v664_v35 = vmul.f32 %v663_v23, %v661_v50  ;;  %v755_v18 = vshll.u32 %v752_v14, 16  ;;  %v757_v24 = vshll.u32 %v753_v45, 16  ;;  %v222_v53 = vmul.f32 0.1013417, %v214_v34 }
  0xa5   : > { %v777_v30 = vshll.u32 %v774_v40, 16  ;;  %v175_v2 = vadd.s32 896, %v4031_v1  ;;  %v756_v4 = vshrl.u32 %v752_v14, 16  ;;  %v776_v51 = vmul.u32 %v772_v21, %v4487_v42 }
  0xa6   : > { %v665_v62 = vxor.u32 2147483648, %v664_v35  ;;  %vm759_vm10 = vc.u32 %v751_v27, %v755_v18  ;;  %v761_v43 = vadd.s32 %v755_v18, %v751_v27  ;;  %v779_v58 = vshll.u32 %v775_v59, 16 }
  0xa7   : > { %v760_v54 = vsel %vm759_vm10, 1, %v3992_v13  ;;  %v758_v12 = vshrl.u32 %v753_v45, 16  ;;  %vm781_vm12 = vc.u32 %v773_v39, %v777_v30  ;;  %v783_v10 = vadd.s32 %v777_v30, %v773_v39 }
  0xa8   : > { %v666_v56 = vsel %vm545_vm5, %v665_v62, %v664_v35  ;;  %v762_v38 = vadd.s32 %v760_v54, %v754_v6  ;;  %vm763_vm11 = vc.u32 %v761_v43, %v757_v24  ;;  %v4555_v33 = vsel %vm224_vm0, %v198_v37, %v222_v53 }
  0xa9   : > { %v669_v8 = vsel %vm4469_vm15, %v4088_v47, %v666_v56  ;;  %v764_v46 = vsel %vm763_vm11, 1, %v3992_v13  ;;  %v782_v28 = vsel %vm781_vm12, 1, %v3992_v13  ;;  %v778_v23 = vshrl.u32 %v774_v40, 16  ;;  %2817 = vst [vmem:[%s4060_s8 + $0x30] sm:$0x3] %v4555_v33 }
  0xaa   : > { %v671_v32 = vmul.f32 %v669_v8, %v669_v8  ;;  %3817 = vmatmul.msk.f32.gmra.mxu1 %vm2957_vm3, %v4456_v25  ;;  %v766_v42 = vadd.s32 %v764_v46, %v762_v38  ;;  %v780_v15 = vshrl.u32 %v775_v59, 16  ;;  %v784_v57 = vadd.s32 %v782_v28, %v776_v51 }
  0xab   : > { %vm785_vm4 = vc.u32 %v783_v10, %v779_v58  ;;  %v4561_v50 = vadd.s32 %v783_v10, %v779_v58  ;;  %v1166_v29 = vand.u32 2139095040, %v4555_v33  ;;  %v183_v36 = vshra.s32 %v175_v2, 5 }
  0xac   : > { %v672_v49 = vmul.f32 -0.001358992, %v671_v32  ;;  %v679_v52 = vmul.f32 -0.00019511016, %v671_v32  ;;  %v767_v17 = vadd.s32 %v766_v42, %v756_v4  ;;  %v786_v19 = vsel %vm785_vm4, 1, %v3992_v13 }
  0xad   : > { %v788_v22 = vadd.s32 %v786_v19, %v784_v57  ;;  %v207_v27 = vand.u32 31, %v175_v2  ;;  %v1167_v45 = vshrl.u32 %v1166_v29, 23  ;;  %v191_v40 = vcvt.s32.f32 %v183_v36 }
  0xae   : > { %v673_v61 = vadd.f32 0.041655596, %v672_v49  ;;  %v680_v60 = vadd.f32 0.008332121, %v679_v52  ;;  %v4564_v35 = vadd.s32 %v767_v17, %v758_v12  ;;  %v688_v62 = vand.u32 3, %v687_v55 }
  0xaf   : > { %v789_v14 = vadd.s32 %v788_v22, %v778_v23  ;;  %vm1927_vm5 = vcmp.eq.s32.totalorder %v4527_v26, 0  ;;  %v791_v18 = vmul.u32 %v4448_v63, %v4536_v44  ;;  %v3778_v24 = vadd.s32 4294967169, %v1167_v45 }
  0xb0   : > { %v674_v21 = vmul.f32 %v673_v61, %v671_v32  ;;  %v681_v34 = vmul.f32 %v680_v60, %v671_v32  ;;  %vm793_vm15 = vc.u32 %v4564_v35, %v4561_v50  ;;  %v215_v53 = vcvt.s32.f32 %v207_v27 }
  0xb1   : > { %v790_v6 = vadd.s32 %v789_v14, %v780_v15  ;;  %vm1930_vm2 = vcmp.eq.s32.totalorder %v4527_v26, 2  ;;  %v1173_v55 = vadd.s32 1, %v3778_v24  ;;  %v199_v56 = vmul.f32 0.2026834, %v191_v40 }
  0xb2   : > { %v675_v59 = vadd.f32 -0.4999988, %v674_v21  ;;  %v682_v37 = vadd.f32 -0.16666654, %v681_v34  ;;  %3818 = vmatmul.msk.f32.gmra.mxu1 %vm2957_vm3, %v4497_v41  ;;  %vm689_vm6 = vcmp.lt.s32.totalorder %v688_v62, 2  ;;  %vm693_vm7 = vcmp.eq.s32.totalorder %v688_v62, 2 }
  0xb3   : > { %v794_v2 = vadd.s32 1, %v790_v6  ;;  %v223_v54 = vmul.f32 0.1013417, %v215_v53  ;;  %v1163_v63 = vand.u32 2147483647, %v4555_v33  ;;  %vm1174_vm8 = vcmp.gt.s32.totalorder %v1173_v55, 0 }
  0xb4   : > { %v676_v39 = vmul.f32 %v675_v59, %v671_v32  ;;  %v683_v30 = vmul.f32 %v682_v37, %v671_v32  ;;  %v1175_v12 = vsel %vm1174_vm8, %v1173_v55, 0  ;;  %vm690_vm9 = vcmp.eq.s32.totalorder %v688_v62, 0 }
  0xb5   : > { %v795_v51 = vsel %vm793_vm15, %v794_v2, %v790_v6  ;;  %vm1926_vm10 = vcmp.lt.s32.totalorder %v4527_v26, 2  ;;  %v1177_v38 = vand.u32 31, %v1175_v12  ;;  %v4578_v46 = vsel %vm224_vm0, %v199_v56, %v223_v54 }
  0xb6   : > { %v677_v4 = vadd.f32 1.0, %v676_v39  ;;  %v684_v43 = vadd.f32 1.0, %v683_v30  ;;  %v796_v32 = vadd.s32 %v795_v51, %v791_v18  ;;  %2818 = vst [vmem:[%s4060_s8 + $0x38] sm:$0x3] %v4578_v46  ;;  %vm686_vm11 = vweird.f32 %v4088_v47 }
  0xb7   : > { %v4587_v28 = vsub.s32 32, %v1177_v38  ;;  %v4593_v61 = vshrl.u32 %v1175_v12, 5  ;;  %v1180_v47 = vshll.u32 %v3986_v0, %v1177_v38  ;;  %v1183_v19 = vshll.u32 %v3987_v3, %v1177_v38 }
  0xb8   : > { %v685_v44 = vmul.f32 %v684_v43, %v669_v8  ;;  %v694_v58 = vxor.u32 2147483648, %v677_v4  ;;  %v797_v42 = vadd.s32 536870912, %v796_v32  ;;  %v1170_v8 = vand.u32 8388607, %v1163_v63 }
  0xb9   : > { %v1189_v21 = vshll.u32 %v3989_v9, %v1177_v38  ;;  %v1181_v14 = vshrl.u32 %v3987_v3, %v4587_v28  ;;  %v1186_v45 = vshll.u32 %v3988_v5, %v1177_v38  ;;  %v1184_v26 = vshrl.u32 %v3988_v5, %v4587_v28 }
  0xba   : > { %v691_v10 = vxor.u32 2147483648, %v685_v44  ;;  %v695_v49 = vsel %vm693_vm7, %v694_v58, %v685_v44  ;;  %v1932_v52 = vsel %vm1930_vm2, %v694_v58, %v685_v44  ;;  %v4591_v57 = vshrl.u32 %v797_v42, 30  ;;  %v4635_v42 = vld [vmem:[%s5348_s1] sm:$0xff] }
  0xbb   : > { %v1187_v59 = vshrl.u32 %v3989_v9, %v4587_v28  ;;  %v1190_v37 = vshrl.u32 %v3990_v11, %v4587_v28  ;;  %v1171_v24 = vor.u32 8388608, %v1170_v8  ;;  %v4611_v53 = vor.u32 %v1181_v14, %v1180_v47 }
  0xbc   : > { %v692_v23 = vsel %vm690_vm9, %v677_v4, %v691_v10  ;;  %v1929_v15 = vsel %vm1927_vm5, %v677_v4, %v691_v10  ;;  %v799_v36 = vshll.u32 %v4591_v57, 30  ;;  %v1192_v2 = vshll.u32 %v3990_v11, %v1177_v38 }
  0xbd   : > { %v696_v60 = vsel %vm689_vm6, %v692_v23, %v695_v49  ;;  %v1933_v17 = vsel %vm1926_vm10, %v1929_v15, %v1932_v52  ;;  %v1191_v39 = vor.u32 %v1190_v37, %v1189_v21  ;;  %v1193_v55 = vshrl.u32 %v3991_v20, %v4587_v28 }
  0xbe   : > { %v697_v22 = vsel %vm686_vm11, nan, %v696_v60  ;;  %v1934_v29 = vsel %vm686_vm11, nan, %v1933_v17  ;;  %v800_v40 = vsub.s32 %v796_v32, %v799_v36  ;;  %v4616_v4 = vor.u32 %v1184_v26, %v1183_v19 }
  0xbf   : > { %v2715_v34 = vrot.slane %v1934_v29, 7  ;;  %v2747_v27 = vrot.slane %v697_v22, 7  ;;  %v1188_v43 = vor.u32 %v1187_v59, %v1186_v45  ;;  %vm1198_vm4 = vcmp.lt.s32.totalorder %v4593_v61, 4 }
  0xc0   : > { %vm801_vm12 = vcmp.lt.s32.totalorder %v800_v40, 0  ;;  %v802_v18 = vsub.s32 0, %v800_v40  ;;  %v1194_v44 = vor.u32 %v1193_v55, %v1192_v2  ;;  %vm1195_vm5 = vcmp.lt.s32.totalorder %v4593_v61, 1 }
  0xc1   : > { %v2731_v62 = vmul.f32 %v2715_v34, %v697_v22  ;;  %v2763_v6 = vmul.f32 %v2747_v27, %v697_v22  ;;  %vm1197_vm15 = vcmp.lt.s32.totalorder %v4593_v61, 3  ;;  %v1204_v32 = vsel %vm1198_vm4, %v1191_v39, 920167782 }
  0xc2   : > { %v803_v56 = vsel %vm801_vm12, %v802_v18, %v800_v40  ;;  %v4625_v12 = vshll.u32 %v1171_v24, 8  ;;  %vm1196_vm2 = vcmp.lt.s32.totalorder %v4593_v61, 2  ;;  %v792_v49 = vadd.s32 %v4561_v50, %v4564_v35 }
  0xc3   : > { %v2779_v30 = vrot.slane %v2731_v62, 1  ;;  %v804_v51 = vclz %v803_v56  ;;  %v822_v52 = vsub.s32 4, %v4591_v57  ;;  %v1207_v8 = vsel %vm1195_vm5, %v4616_v4, %v1188_v43 }
  0xc4   : > { %v1208_v23 = vsel %vm1198_vm4, %v1194_v44, 1326507024  ;;  %v1203_v50 = vsel %vm1195_vm5, %v4611_v53, %v4616_v4  ;;  %v1205_v35 = vsel %vm1197_vm15, %v1188_v43, %v1204_v32  ;;  %vm700_vm7 = vcmp.lt.s32.totalorder %v4414_v16, 0 }
  0xc5   : > { %v2796_v54 = vsel %vm2793_vm13, %v2779_v30, %v2763_v6  ;;  %v3770_v10 = vadd.s32 4294967294, %v804_v51  ;;  %v1209_v15 = vsel %vm1197_vm15, %v1191_v39, %v1208_v23  ;;  %v1212_v47 = vand.u32 65535, %v4625_v12 }
  0xc6   : > { %v2805_v58 = vsel %vm2802_vm14, %v2796_v54, %v2715_v34  ;;  %v1210_v17 = vsel %vm1196_vm2, %v1207_v8, %v1209_v15  ;;  %v1213_v36 = vshrl.u32 %v4625_v12, 16  ;;  %v823_v21 = vsel %vm700_vm7, %v822_v52, %v4591_v57 }
  0xc7   : > { %v2829_v38 = vrot.slane %v2805_v58, 6  ;;  %3819 = vmatpush.msk.msra.mxu2 %vm2970_vm1, %v2805_v58  ;;  %vm3771_vm6 = vcmp.lt.s32.totalorder %v3770_v10, 0  ;;  %v1206_v34 = vsel %vm1196_vm2, %v1203_v50, %v1205_v35  ;;  %v1214_v27 = vand.u32 65535, %v1210_v17 }
  0xc8   : > { %3820 = vmatmul.msk.f32.vlgmr.msra.gmra.mxu2 %vm2957_vm3, %v4635_v42  ;;  %v807_v60 = vsel %vm3771_vm6, 0, %v3770_v10  ;;  %v1215_v14 = vshrl.u32 %v1210_v17, 16  ;;  %v1236_v59 = vand.u32 65535, %v1206_v34  ;;  %vm4665_vm8 = vcmp.le.f32.partialorder %v698_v31, 0.7853982 }
  0xc9   : > { %2845 = vst [vmem:[%s4060_s8 + $0x10] sm:$0x1c] %v2829_v38  ;;  %v808_v19 = vsub.s32 32, %v807_v60  ;;  %v809_v22 = vshll.u32 %v800_v40, %v807_v60  ;;  %v812_v29 = vsub.s32 4294967266, %v807_v60  ;;  %v1179_v40 = vshrl.u32 %v3986_v0, %v4587_v28 }
  0xca   : > { %v1216_v62 = vmul.u32 %v1214_v27, %v1212_v47  ;;  %v1217_v6 = vmul.u32 %v1215_v14, %v1212_v47  ;;  %v4673_v24 = vsel %vm4665_vm8, 0, %v823_v21  ;;  %v1218_v39 = vmul.u32 %v1214_v27, %v1213_v36 }
  0xcb   : > { %v810_v45 = vshrl.u32 %v792_v49, %v808_v19  ;;  %v813_v26 = vadd.s32 127, %v812_v29  ;;  %v1200_v30 = vsel %vm1198_vm4, %v1188_v43, 2102212464  ;;  %v1219_v2 = vmul.u32 %v1215_v14, %v1213_v36 }
  0xcc   : > { %v1220_v31 = vshll.u32 %v1217_v6, 16  ;;  %v1237_v55 = vshrl.u32 %v1206_v34, 16  ;;  %v1222_v54 = vshll.u32 %v1218_v39, 16  ;;  %v1238_v51 = vmul.u32 %v1236_v59, %v1212_v47 }
  0xcd   : > { %v811_v57 = vor.u32 %v810_v45, %v809_v22  ;;  %v814_v18 = vshll.u32 %v813_v26, 23  ;;  %v1240_v32 = vmul.u32 %v1236_v59, %v1213_v36  ;;  %v1199_v10 = vsel %vm1195_vm5, %v1179_v40, %v4611_v53 }
  0xce   : > { %vm1224_vm9 = vc.u32 %v1216_v62, %v1220_v31  ;;  %v1226_v44 = vadd.s32 %v1220_v31, %v1216_v62  ;;  %v1239_v58 = vmul.u32 %v1237_v55, %v1212_v47  ;;  %v1221_v43 = vshrl.u32 %v1217_v6, 16 }
  0xcf   : > { %v815_v56 = vor.u32 4788187, %v814_v18  ;;  %v818_v28 = vcvt.s32.f32 %v811_v57  ;;  %v1225_v49 = vsel %vm1224_vm9, 1, %v3992_v13  ;;  %v1241_v8 = vmul.u32 %v1237_v55, %v1213_v36 }
  0xd0   : > { %3821 = vmatmul.msk.f32.gmra.mxu2 %vm2957_vm3, %v4523_v48  ;;  %v1227_v52 = vadd.s32 %v1225_v49, %v1219_v2  ;;  %vm1228_vm10 = vc.u32 %v1226_v44, %v1222_v54  ;;  %v1242_v23 = vshll.u32 %v1239_v58, 16  ;;  %v1201_v35 = vsel %vm1197_vm15, %v4616_v4, %v1200_v30 }
  0xd1   : > { %v816_v38 = vand.u32 2147483647, %v815_v56  ;;  %v1229_v15 = vsel %vm1228_vm10, 1, %v3992_v13  ;;  %v1244_v60 = vshll.u32 %v1240_v32, 16  ;;  %v1223_v17 = vshrl.u32 %v1218_v39, 16 }
  0xd2   : > { %v1231_v47 = vadd.s32 %v1229_v15, %v1227_v52  ;;  %vm1246_vm11 = vc.u32 %v1238_v51, %v1242_v23  ;;  %v1248_v19 = vadd.s32 %v1242_v23, %v1238_v51  ;;  %v1321_v29 = vand.u32 2139095040, %v4578_v46 }
  0xd3   : > { %v819_v50 = vmul.f32 %v818_v28, %v816_v38  ;;  %v1247_v22 = vsel %vm1246_vm11, 1, %v3992_v13  ;;  %v172_v36 = vadd.s32 512, %v4031_v1  ;;  %v1243_v34 = vshrl.u32 %v1239_v58, 16 }
  0xd4   : > { %v1232_v21 = vadd.s32 %v1231_v47, %v1221_v43  ;;  %v1249_v27 = vadd.s32 %v1247_v22, %v1241_v8  ;;  %vm1250_vm12 = vc.u32 %v1248_v19, %v1244_v60  ;;  %v1202_v14 = vsel %vm1196_vm2, %v1199_v10, %v1201_v35 }
  0xd5   : > { %v820_v53 = vxor.u32 2147483648, %v819_v50  ;;  %v1245_v45 = vshrl.u32 %v1240_v32, 16  ;;  %v1251_v26 = vsel %vm1250_vm12, 1, %v3992_v13  ;;  %v4700_v40 = vadd.s32 %v1248_v19, %v1244_v60 }
  0xd6   : > { %v1253_v62 = vadd.s32 %v1251_v26, %v1249_v27  ;;  %v1322_v6 = vshrl.u32 %v1321_v29, 23  ;;  %v4702_v18 = vadd.s32 %v1232_v21, %v1223_v17  ;;  %v180_v39 = vshra.s32 %v172_v36, 5 }
  0xd7   : > { %v821_v4 = vsel %vm700_vm7, %v820_v53, %v819_v50  ;;  %v204_v30 = vand.u32 31, %v172_v36  ;;  %v842_v56 = vadd.s32 3, %v4673_v24  ;;  %v1256_v37 = vmul.u32 %v4625_v12, %v1202_v14 }
  0xd8   : > { %3822 = vmatmul.msk.f32.gmra.mxu2 %vm2957_vm3, %v4456_v25  ;;  %v824_v59 = vsel %vm4665_vm8, %v4414_v16, %v821_v4  ;;  %v1254_v2 = vadd.s32 %v1253_v62, %v1243_v34  ;;  %v3781_v31 = vadd.s32 4294967169, %v1322_v6  ;;  %v188_v28 = vcvt.s32.f32 %v180_v39 }
  0xd9   : > { %v826_v57 = vmul.f32 %v824_v59, %v824_v59  ;;  %v212_v44 = vcvt.s32.f32 %v204_v30  ;;  %vm1258_vm4 = vc.u32 %v4702_v18, %v4700_v40  ;;  %v1318_v38 = vand.u32 2147483647, %v4578_v46 }
  0xda   : > { %v1255_v54 = vadd.s32 %v1254_v2, %v1245_v45  ;;  %v1328_v51 = vadd.s32 1, %v3781_v31  ;;  %v196_v43 = vmul.f32 0.2026834, %v188_v28  ;;  %v2079_v12 = vand.u32 3, %v4673_v24 }
  0xdb   : > { %v827_v61 = vmul.f32 -0.001358992, %v826_v57  ;;  %v834_v55 = vmul.f32 -0.00019511016, %v826_v57  ;;  %v220_v49 = vmul.f32 0.1013417, %v212_v44  ;;  %vm841_vm15 = vweird.f32 %v4414_v16 }
  0xdc   : > { %v1259_v10 = vadd.s32 1, %v1255_v54  ;;  %vm1329_vm5 = vcmp.gt.s32.totalorder %v1328_v51, 0  ;;  %v843_v50 = vand.u32 3, %v842_v56  ;;  %v1325_v53 = vand.u32 8388607, %v1318_v38 }
  0xdd   : > { %v828_v58 = vadd.f32 0.041655596, %v827_v61  ;;  %v835_v32 = vadd.f32 0.008332121, %v834_v55  ;;  %v1330_v23 = vsel %vm1329_vm5, %v1328_v51, 0  ;;  %v4714_v19 = vsel %vm224_vm0, %v196_v43, %v220_v49 }
  0xde   : > { %v1260_v35 = vsel %vm1258_vm4, %v1259_v10, %v1255_v54  ;;  %v1332_v15 = vand.u32 31, %v1330_v23  ;;  %2815 = vst [vmem:[%s4060_s8 + $0x20] sm:$0x3] %v4714_v19  ;;  %vm2081_vm2 = vcmp.eq.s32.totalorder %v2079_v12, 0  ;;  %vm844_vm6 = vcmp.lt.s32.totalorder %v843_v50, 2 }
  0xdf   : > { %v829_v52 = vmul.f32 %v828_v58, %v826_v57  ;;  %v836_v8 = vmul.f32 %v835_v32, %v826_v57  ;;  %v1261_v47 = vadd.s32 %v1260_v35, %v1256_v37  ;;  %vm845_vm7 = vcmp.eq.s32.totalorder %v843_v50, 0 }
  0xe0   : > { %3823 = vmatmul.msk.f32.gmra.mxu2 %vm2957_vm3, %v4497_v41  ;;  %v4719_v22 = vsub.s32 32, %v1332_v15  ;;  %vm848_vm8 = vcmp.eq.s32.totalorder %v843_v50, 2  ;;  %vm2084_vm9 = vcmp.eq.s32.totalorder %v2079_v12, 2  ;;  %vm2080_vm10 = vcmp.lt.s32.totalorder %v2079_v12, 2 }
  0xe1   : > { %v830_v60 = vadd.f32 -0.4999988, %v829_v52  ;;  %v837_v17 = vadd.f32 -0.16666654, %v836_v8  ;;  %v1262_v36 = vadd.s32 536870912, %v1261_v47  ;;  %v1326_v4 = vor.u32 8388608, %v1325_v53 }
  0xe2   : > { %v4725_v14 = vshrl.u32 %v1330_v23, 5  ;;  %v1335_v45 = vshll.u32 %v3986_v0, %v1332_v15  ;;  %v1336_v26 = vshrl.u32 %v3987_v3, %v4719_v22  ;;  %v1338_v39 = vshll.u32 %v3987_v3, %v1332_v15 }
  0xe3   : > { %v831_v24 = vmul.f32 %v830_v60, %v826_v57  ;;  %v838_v29 = vmul.f32 %v837_v17, %v826_v57  ;;  %v4723_v27 = vshrl.u32 %v1262_v36, 30  ;;  %v1344_v30 = vshll.u32 %v3989_v9, %v1332_v15 }
  0xe4   : > { %v1345_v2 = vshrl.u32 %v3990_v11, %v4719_v22  ;;  %v1347_v31 = vshll.u32 %v3990_v11, %v1332_v15  ;;  %v1348_v61 = vshrl.u32 %v3991_v20, %v4719_v22  ;;  %v4740_v54 = vor.u32 %v1336_v26, %v1335_v45 }
  0xe5   : > { %v832_v21 = vadd.f32 1.0, %v831_v24  ;;  %v839_v34 = vadd.f32 1.0, %v838_v29  ;;  %v1264_v57 = vshll.u32 %v4723_v27, 30  ;;  %v1339_v37 = vshrl.u32 %v3988_v5, %v4719_v22 }
  0xe6   : > { %v1341_v51 = vshll.u32 %v3988_v5, %v1332_v15  ;;  %v1342_v44 = vshrl.u32 %v3989_v9, %v4719_v22  ;;  %v1346_v52 = vor.u32 %v1345_v2, %v1344_v30  ;;  %v1349_v8 = vor.u32 %v1348_v61, %v1347_v31 }
  0xe7   : > { %v840_v62 = vmul.f32 %v839_v34, %v824_v59  ;;  %v849_v6 = vxor.u32 2147483648, %v832_v21  ;;  %v1265_v28 = vsub.s32 %v1261_v47, %v1264_v57  ;;  %vm1353_vm12 = vcmp.lt.s32.totalorder %v4725_v14, 4 }
  0xe8   : > { %v4756_v53 = vor.u32 %v1339_v37, %v1338_v39  ;;  %vm1165_vm4 = vcmp.lt.s32.totalorder %v4555_v33, 0  ;;  %v1343_v12 = vor.u32 %v1342_v44, %v1341_v51  ;;  %vm1350_vm5 = vcmp.lt.s32.totalorder %v4725_v14, 1 }
  0xe9   : > { %v846_v55 = vxor.u32 2147483648, %v840_v62  ;;  %v850_v56 = vsel %vm848_vm8, %v849_v6, %v840_v62  ;;  %v2086_v59 = vsel %vm2084_vm9, %v849_v6, %v840_v62  ;;  %vm1266_vm11 = vcmp.lt.s32.totalorder %v1265_v28, 0 }
  0xea   : > { %v1267_v10 = vsub.s32 0, %v1265_v28  ;;  %v1359_v16 = vsel %vm1353_vm12, %v1346_v52, 920167782  ;;  %v1257_v36 = vadd.s32 %v4700_v40, %v4702_v18  ;;  %v1363_v34 = vsel %vm1353_vm12, %v1349_v8, 1326507024 }
  0xeb   : > { %v847_v58 = vsel %vm845_vm7, %v832_v21, %v846_v55  ;;  %v2083_v32 = vsel %vm2081_vm2, %v832_v21, %v846_v55  ;;  %vm1352_vm2 = vcmp.lt.s32.totalorder %v4725_v14, 3  ;;  %v1287_v21 = vsub.s32 4, %v4723_v27 }
  0xec   : > { %v851_v43 = vsel %vm844_vm6, %v847_v58, %v850_v56  ;;  %v2087_v49 = vsel %vm2080_vm10, %v2083_v32, %v2086_v59  ;;  %v1268_v15 = vsel %vm1266_vm11, %v1267_v10, %v1265_v28  ;;  %v4768_v45 = vshll.u32 %v1326_v4, 8 }
  0xed   : > { %v852_v23 = vsel %vm841_vm15, nan, %v851_v43  ;;  %v2088_v35 = vsel %vm841_vm15, nan, %v2087_v49  ;;  %v1269_v47 = vclz %v1268_v15  ;;  %vm1351_vm6 = vcmp.lt.s32.totalorder %v4725_v14, 2 }
  0xee   : > { %v2716_v60 = vrot.slane %v2088_v35, 7  ;;  %v2748_v17 = vrot.slane %v852_v23, 7  ;;  %v1358_v62 = vsel %vm1350_vm5, %v4740_v54, %v4756_v53  ;;  %v1360_v40 = vsel %vm1352_vm2, %v1343_v12, %v1359_v16 }
  0xef   : > { %v3779_v29 = vadd.s32 4294967294, %v1269_v47  ;;  %v1362_v18 = vsel %vm1350_vm5, %v4756_v53, %v1343_v12  ;;  %v1364_v4 = vsel %vm1352_vm2, %v1346_v52, %v1363_v34  ;;  %v1288_v61 = vsel %vm1165_vm4, %v1287_v21, %v4723_v27 }
  0xf0   : > { %v2732_v50 = vmul.f32 %v2716_v60, %v852_v23  ;;  %v2764_v24 = vmul.f32 %v2748_v17, %v852_v23  ;;  %v1334_v55 = vshrl.u32 %v3986_v0, %v4719_v22  ;;  %v1367_v56 = vand.u32 65535, %v4768_v45 }
  0xf1   : > { %vm3780_vm15 = vcmp.lt.s32.totalorder %v3779_v29, 0  ;;  %vm4797_vm7 = vcmp.le.f32.partialorder %v1163_v63, 0.7853982  ;;  %v1365_v22 = vsel %vm1351_vm6, %v1362_v18, %v1364_v4  ;;  %v1368_v44 = vshrl.u32 %v4768_v45, 16 }
  0xf2   : > { %v2780_v26 = vrot.slane %v2732_v50, 1  ;;  %v1272_v6 = vsel %vm3780_vm15, 0, %v3779_v29  ;;  %v1369_v10 = vand.u32 65535, %v1365_v22  ;;  %v1370_v43 = vshrl.u32 %v1365_v22, 16 }
  0xf3   : > { %v1273_v39 = vsub.s32 32, %v1272_v6  ;;  %v1274_v30 = vshll.u32 %v1265_v28, %v1272_v6  ;;  %v1277_v2 = vsub.s32 4294967266, %v1272_v6  ;;  %v1361_v28 = vsel %vm1351_vm6, %v1358_v62, %v1360_v40 }
  0xf4   : > { %v2797_v57 = vsel %vm2793_vm13, %v2780_v26, %v2764_v24  ;;  %v1290_v49 = vsel %vm4797_vm7, 0, %v1288_v61  ;;  %v1354_v63 = vsel %vm1350_vm5, %v1334_v55, %v4740_v54  ;;  %v1391_v52 = vand.u32 65535, %v1361_v28 }
  0xf5   : > { %v2806_v31 = vsel %vm2802_vm14, %v2797_v57, %v2716_v60  ;;  %v1275_v37 = vshrl.u32 %v1257_v36, %v1273_v39  ;;  %v1278_v51 = vadd.s32 127, %v1277_v2  ;;  %v1392_v8 = vshrl.u32 %v1361_v28, 16 }
  0xf6   : > { %v2830_v59 = vrot.slane %v2806_v31, 6  ;;  %3824 = vmatpush.msk.msra.mxu3 %vm2970_vm1, %v2806_v31  ;;  %v1371_v15 = vmul.u32 %v1369_v10, %v1367_v56  ;;  %v1372_v60 = vmul.u32 %v1370_v43, %v1367_v56  ;;  %v1355_v17 = vsel %vm1353_vm12, %v1343_v12, 2102212464 }
  0xf7   : > { %3825 = vmatmul.msk.f32.vlgmr.msra.gmra.mxu3 %vm2957_vm3, %v4635_v42  ;;  %v1276_v58 = vor.u32 %v1275_v37, %v1274_v30  ;;  %v1279_v32 = vshll.u32 %v1278_v51, 23  ;;  %v1373_v47 = vmul.u32 %v1369_v10, %v1368_v44  ;;  %v1393_v50 = vmul.u32 %v1391_v52, %v1367_v56 }
  0xf8   : > { %2846 = vst [vmem:[%s4060_s8 + $0x18] sm:$0x1c] %v2830_v59  ;;  %v1394_v24 = vmul.u32 %v1392_v8, %v1367_v56  ;;  %v1374_v16 = vmul.u32 %v1370_v43, %v1368_v44  ;;  %v1375_v36 = vshll.u32 %v1372_v60, 16  ;;  %v1395_v21 = vmul.u32 %v1391_v52, %v1368_v44 }
  0xf9   : > { %v1280_v23 = vor.u32 4788187, %v1279_v32  ;;  %v1283_v35 = vcvt.s32.f32 %v1276_v58  ;;  %v1377_v34 = vshll.u32 %v1373_v47, 16  ;;  %v1396_v26 = vmul.u32 %v1392_v8, %v1368_v44 }
  0xfa   : > { %v1397_v62 = vshll.u32 %v1394_v24, 16  ;;  %v856_v54 = vand.u32 2139095040, %v4714_v19  ;;  %v1356_v40 = vsel %vm1352_vm2, %v4756_v53, %v1355_v17  ;;  %vm1379_vm8 = vc.u32 %v1371_v15, %v1375_v36 }
  0xfb   : > { %v1281_v29 = vand.u32 2147483647, %v1280_v23  ;;  %v1381_v18 = vadd.s32 %v1375_v36, %v1371_v15  ;;  %v1376_v12 = vshrl.u32 %v1372_v60, 16  ;;  %v1380_v4 = vsel %vm1379_vm8, 1, %v3992_v13 }
  0xfc   : > { %v1399_v57 = vshll.u32 %v1395_v21, 16  ;;  %vm1401_vm9 = vc.u32 %v1393_v50, %v1397_v62  ;;  %v1382_v30 = vadd.s32 %v1380_v4, %v1374_v16  ;;  %v1403_v61 = vadd.s32 %v1397_v62, %v1393_v50 }
  0xfd   : > { %v1284_v6 = vmul.f32 %v1283_v35, %v1281_v29  ;;  %vm1383_vm10 = vc.u32 %v1381_v18, %v1377_v34  ;;  %v1402_v2 = vsel %vm1401_vm9, 1, %v3992_v13  ;;  %v857_v53 = vshrl.u32 %v856_v54, 23 }
  0xfe   : > { %v1384_v31 = vsel %vm1383_vm10, 1, %v3992_v13  ;;  %v1404_v55 = vadd.s32 %v1402_v2, %v1396_v26  ;;  %v1378_v59 = vshrl.u32 %v1373_v47, 16  ;;  %v853_v51 = vand.u32 2147483647, %v4714_v19 }
  0xff   : > { %3826 = vmatmul.msk.f32.gmra.mxu3 %vm2957_vm3, %v4523_v48  ;;  %v1285_v39 = vxor.u32 2147483648, %v1284_v6  ;;  %v1386_v37 = vadd.s32 %v1384_v31, %v1382_v30  ;;  %v1398_v28 = vshrl.u32 %v1394_v24, 16  ;;  %vm1405_vm11 = vc.u32 %v1403_v61, %v1399_v57 }
 0x100   : > { %v3772_v22 = vadd.s32 4294967169, %v857_v53  ;;  %v1307_v58 = vadd.s32 3, %v1290_v49  ;;  %v1406_v10 = vsel %vm1405_vm11, 1, %v3992_v13  ;;  %v1357_v43 = vsel %vm1351_vm6, %v1354_v63, %v1356_v40 }
 0x101   : > { %v1286_v56 = vsel %vm1165_vm4, %v1285_v39, %v1284_v6  ;;  %v1387_v32 = vadd.s32 %v1386_v37, %v1376_v12  ;;  %v1400_v52 = vshrl.u32 %v1395_v21, 16  ;;  %v1408_v8 = vadd.s32 %v1406_v10, %v1404_v55 }
 0x102   : > { %v1289_v48 = vsel %vm4797_vm7, %v4555_v33, %v1286_v56  ;;  %v863_v23 = vadd.s32 1, %v3772_v22  ;;  %v4832_v27 = vadd.s32 %v1403_v61, %v1399_v57  ;;  %v4834_v17 = vand.u32 3, %v1290_v49 }
 0x103   : > { %v1291_v44 = vmul.f32 %v1289_v48, %v1289_v48  ;;  %v4830_v60 = vadd.s32 %v1387_v32, %v1378_v59  ;;  %v1409_v47 = vadd.s32 %v1408_v8, %v1398_v28  ;;  %v860_v50 = vand.u32 8388607, %v853_v51 }
 0x104   : > { %vm864_vm12 = vcmp.gt.s32.totalorder %v863_v23, 0  ;;  %v1308_v24 = vand.u32 3, %v1307_v58  ;;  %v1411_v16 = vmul.u32 %v4768_v45, %v1357_v43  ;;  %v173_v21 = vadd.s32 640, %v4031_v1 }
 0x105   : > { %v1292_v35 = vmul.f32 -0.001358992, %v1291_v44  ;;  %v1299_v15 = vmul.f32 -0.00019511016, %v1291_v44  ;;  %v1410_v29 = vadd.s32 %v1409_v47, %v1400_v52  ;;  %v865_v36 = vsel %vm864_vm12, %v863_v23, 0 }
 0x106   : > { %vm1413_vm4 = vc.u32 %v4830_v60, %v4832_v27  ;;  %v867_v26 = vand.u32 31, %v865_v36  ;;  %vm2543_vm5 = vcmp.eq.s32.totalorder %v4834_v17, 0  ;;  %vm2546_vm2 = vcmp.eq.s32.totalorder %v4834_v17, 2 }
 0x107   : > { %3827 = vmatmul.msk.f32.gmra.mxu3 %vm2957_vm3, %v4456_v25  ;;  %v1293_v14 = vadd.f32 0.041655596, %v1292_v35  ;;  %v1300_v63 = vadd.f32 0.008332121, %v1299_v15  ;;  %v1414_v25 = vadd.s32 1, %v1410_v29  ;;  %v861_v62 = vor.u32 8388608, %v860_v50 }
 0x108   : > { %vm1309_vm15 = vcmp.lt.s32.totalorder %v1308_v24, 2  ;;  %vm2542_vm6 = vcmp.lt.s32.totalorder %v4834_v17, 2  ;;  %vm1306_vm7 = vweird.f32 %v4555_v33  ;;  %vm1310_vm8 = vcmp.eq.s32.totalorder %v1308_v24, 0 }
 0x109   : > { %v1294_v34 = vmul.f32 %v1293_v14, %v1291_v44  ;;  %v1301_v49 = vmul.f32 %v1300_v63, %v1291_v44  ;;  %vm1313_vm9 = vcmp.eq.s32.totalorder %v1308_v24, 2  ;;  %v1415_v1 = vsel %vm1413_vm4, %v1414_v25, %v1410_v29 }
 0x10a   : > { %v4848_v45 = vsub.s32 32, %v867_v26  ;;  %v1416_v12 = vadd.s32 %v1415_v1, %v1411_v16  ;;  %v181_v4 = vshra.s32 %v173_v21, 5  ;;  %v870_v57 = vshll.u32 %v3986_v0, %v867_v26 }
 0x10b   : > { %v1295_v54 = vadd.f32 -0.4999988, %v1294_v34  ;;  %v1302_v6 = vadd.f32 -0.16666654, %v1301_v49  ;;  %v873_v39 = vshll.u32 %v3987_v3, %v867_v26  ;;  %v4852_v30 = vshll.u32 %v861_v62, 8 }
 0x10c   : > { %v205_v2 = vand.u32 31, %v173_v21  ;;  %v1417_v55 = vadd.s32 536870912, %v1416_v12  ;;  %v876_v53 = vshll.u32 %v3988_v5, %v867_v26  ;;  %v871_v56 = vshrl.u32 %v3987_v3, %v4848_v45 }
 0x10d   : > { %v1296_v40 = vmul.f32 %v1295_v54, %v1291_v44  ;;  %v1303_v18 = vmul.f32 %v1302_v6, %v1291_v44  ;;  %v874_v59 = vshrl.u32 %v3988_v5, %v4848_v45  ;;  %v877_v37 = vshrl.u32 %v3989_v9, %v4848_v45 }
 0x10e   : > { %v879_v28 = vshll.u32 %v3989_v9, %v867_v26  ;;  %v4864_v58 = vshrl.u32 %v1417_v55, 30  ;;  %v4868_v32 = vshrl.u32 %v865_v36, 5  ;;  %v882_v10 = vshll.u32 %v3990_v11, %v867_v26 }
 0x10f   : > { %3828 = vmatmul.msk.f32.gmra.mxu3 %vm2957_vm3, %v4497_v41  ;;  %v1297_v31 = vadd.f32 1.0, %v1296_v40  ;;  %v1304_v61 = vadd.f32 1.0, %v1303_v18  ;;  %v880_v41 = vshrl.u32 %v3990_v11, %v4848_v45  ;;  %v883_v43 = vshrl.u32 %v3991_v20, %v4848_v45 }
 0x110   : > { %v189_v52 = vcvt.s32.f32 %v181_v4  ;;  %v1419_v35 = vshll.u32 %v4864_v58, 30  ;;  %v4877_v15 = vor.u32 %v871_v56, %v870_v57  ;;  %v4879_v47 = vor.u32 %v874_v59, %v873_v39 }
 0x111   : > { %v1305_v22 = vmul.f32 %v1304_v61, %v1289_v48  ;;  %v1314_v44 = vxor.u32 2147483648, %v1297_v31  ;;  %v4881_v50 = vor.u32 %v877_v37, %v876_v53  ;;  %v213_v14 = vcvt.s32.f32 %v205_v2 }
 0x112   : > { %v1420_v16 = vsub.s32 %v1416_v12, %v1419_v35  ;;  %v881_v36 = vor.u32 %v880_v41, %v879_v28  ;;  %v884_v49 = vor.u32 %v883_v43, %v882_v10  ;;  %vm888_vm10 = vcmp.lt.s32.totalorder %v4868_v32, 4 }
 0x113   : > { %v1311_v8 = vxor.u32 2147483648, %v1305_v22  ;;  %v1315_v23 = vsel %vm1313_vm9, %v1314_v44, %v1305_v22  ;;  %v2548_v48 = vsel %vm2546_vm2, %v1314_v44, %v1305_v22  ;;  %vm885_vm12 = vcmp.lt.s32.totalorder %v4868_v32, 1 }
 0x114   : > { %vm1421_vm11 = vcmp.lt.s32.totalorder %v1420_v16, 0  ;;  %v1422_v62 = vsub.s32 0, %v1420_v16  ;;  %vm887_vm4 = vcmp.lt.s32.totalorder %v4868_v32, 3  ;;  %v894_v17 = vsel %vm888_vm10, %v881_v36, 920167782 }
 0x115   : > { %v1312_v63 = vsel %vm1310_vm8, %v1297_v31, %v1311_v8  ;;  %v2545_v29 = vsel %vm2543_vm5, %v1297_v31, %v1311_v8  ;;  %v197_v1 = vmul.f32 0.2026834, %v189_v52  ;;  %v221_v40 = vmul.f32 0.1013417, %v213_v14 }
 0x116   : > { %v1316_v21 = vsel %vm1309_vm15, %v1312_v63, %v1315_v23  ;;  %v2549_v34 = vsel %vm2542_vm6, %v2545_v29, %v2548_v48  ;;  %v1423_v24 = vsel %vm1421_vm11, %v1422_v62, %v1420_v16  ;;  %vm886_vm5 = vcmp.lt.s32.totalorder %v4868_v32, 2 }
 0x117   : > { %v1317_v26 = vsel %vm1306_vm7, nan, %v1316_v21  ;;  %v2550_v25 = vsel %vm1306_vm7, nan, %v2549_v34  ;;  %v1424_v4 = vclz %v1423_v24  ;;  %v893_v33 = vsel %vm885_vm12, %v4877_v15, %v4879_v47 }
 0x118   : > { %v2719_v54 = vrot.slane %v2550_v25, 7  ;;  %v2751_v6 = vrot.slane %v1317_v26, 7  ;;  %v895_v57 = vsel %vm887_vm4, %v4881_v50, %v894_v17  ;;  %v897_v39 = vsel %vm885_vm12, %v4879_v47, %v4881_v50 }
 0x119   : > { %v898_v2 = vsel %vm888_vm10, %v884_v49, 1326507024  ;;  %v3782_v61 = vadd.s32 4294967294, %v1424_v4  ;;  %v1412_v53 = vadd.s32 %v4832_v27, %v4830_v60  ;;  %v902_v56 = vand.u32 65535, %v4852_v30 }
 0x11a   : > { %v2735_v18 = vmul.f32 %v2719_v54, %v1317_v26  ;;  %v2767_v12 = vmul.f32 %v2751_v6, %v1317_v26  ;;  %v899_v55 = vsel %vm887_vm4, %v881_v36, %v898_v2  ;;  %v4919_v59 = vsel %vm224_vm0, %v197_v1, %v221_v40  ;;  %v4954_v2 = vld [vmem:[%s5348_s1 + $0x8] sm:$0xff] }
 0x11b   : > { %vm3783_vm2 = vcmp.lt.s32.totalorder %v3782_v61, 0  ;;  %v896_v28 = vsel %vm886_vm5, %v893_v33, %v895_v57  ;;  %v900_v22 = vsel %vm886_vm5, %v897_v39, %v899_v55  ;;  %2816 = vst [vmem:[%s4060_s8 + $0x28] sm:$0x3] %v4919_v59  ;;  %v903_v44 = vshrl.u32 %v4852_v30, 16 }
 0x11c   : > { %v2783_v31 = vrot.slane %v2735_v18, 1  ;;  %v1427_v27 = vsel %vm3783_vm2, 0, %v3782_v61  ;;  %v904_v7 = vand.u32 65535, %v900_v22  ;;  %v869_v8 = vshrl.u32 %v3986_v0, %v4848_v45 }
 0x11d   : > { %v1428_v10 = vsub.s32 32, %v1427_v27  ;;  %v1429_v43 = vshll.u32 %v1420_v16, %v1427_v27  ;;  %v1432_v52 = vsub.s32 4294967266, %v1427_v27  ;;  %v905_v23 = vshrl.u32 %v900_v22, 16 }
 0x11e   : > { %v2800_v37 = vsel %vm2793_vm13, %v2783_v31, %v2767_v12  ;;  %v927_v48 = vshrl.u32 %v896_v28, 16  ;;  %v926_v63 = vand.u32 65535, %v896_v28  ;;  %vm1320_vm0 = vcmp.lt.s32.totalorder %v4578_v46, 0 }
 0x11f   : > { %v2809_v60 = vsel %vm2802_vm14, %v2800_v37, %v2719_v54  ;;  %v1430_v35 = vshrl.u32 %v1412_v53, %v1428_v10  ;;  %v1433_v14 = vadd.s32 127, %v1432_v52  ;;  %v906_v29 = vmul.u32 %v904_v7, %v902_v56 }
 0x120   : > { %v2833_v41 = vrot.slane %v2809_v60, 6  ;;  %3839 = vmatpush.msk.msrb.mxu2 %vm2970_vm1, %v2809_v60  ;;  %v907_v36 = vmul.u32 %v905_v23, %v902_v56  ;;  %vm4939_vm15 = vcmp.le.f32.partialorder %v1318_v38, 0.7853982  ;;  %v1442_v34 = vsub.s32 4, %v4864_v58 }
 0x121   : > { %3840 = vmatmul.msk.f32.vlgmr.msrb.gmra.mxu2 %vm2957_vm3, %v4635_v42  ;;  %v1431_v45 = vor.u32 %v1430_v35, %v1429_v43  ;;  %v1434_v21 = vshll.u32 %v1433_v14, 23  ;;  %v908_v49 = vmul.u32 %v904_v7, %v903_v44  ;;  %v889_v42 = vsel %vm885_vm12, %v869_v8, %v4877_v15 }
 0x122   : > { %2849 = vst [vmem:[%s4060_s8 + $0x30] sm:$0x1c] %v2833_v41  ;;  %v909_v26 = vmul.u32 %v905_v23, %v903_v44  ;;  %v910_v25 = vshll.u32 %v907_v36, 16  ;;  %v929_v62 = vmul.u32 %v927_v48, %v902_v56  ;;  %v928_v17 = vmul.u32 %v926_v63, %v902_v56 }
 0x123   : > { %v1435_v54 = vor.u32 4788187, %v1434_v21  ;;  %v1438_v6 = vcvt.s32.f32 %v1431_v45  ;;  %v912_v24 = vshll.u32 %v908_v49, 16  ;;  %v890_v38 = vsel %vm888_vm10, %v4881_v50, 2102212464 }
 0x124   : > { %vm914_vm6 = vc.u32 %v906_v29, %v910_v25  ;;  %v916_v1 = vadd.s32 %v910_v25, %v906_v29  ;;  %v930_v40 = vmul.u32 %v926_v63, %v903_v44  ;;  %v931_v4 = vmul.u32 %v927_v48, %v903_v44 }
 0x125   : > { %v1436_v18 = vand.u32 2147483647, %v1435_v54  ;;  %v915_v12 = vsel %vm914_vm6, 1, %v3992_v13  ;;  %v932_v33 = vshll.u32 %v929_v62, 16  ;;  %v911_v15 = vshrl.u32 %v907_v36, 16  ;;  %v4984_v36 = vld [vmem:[%s5348_s1 + $0x10] sm:$0xff] }
 0x126   : > { %v917_v57 = vadd.s32 %v915_v12, %v909_v26  ;;  %vm918_vm7 = vc.u32 %v916_v1, %v912_v24  ;;  %v934_v39 = vshll.u32 %v930_v40, 16  ;;  %v1443_v31 = vsel %vm1320_vm0, %v1442_v34, %v4864_v58 }
 0x127   : > { %v1439_v50 = vmul.f32 %v1438_v6, %v1436_v18  ;;  %v919_v61 = vsel %vm918_vm7, 1, %v3992_v13  ;;  %vm936_vm8 = vc.u32 %v928_v17, %v932_v33  ;;  %v891_v55 = vsel %vm887_vm4, %v4879_v47, %v890_v38 }
 0x128   : > { %v921_v53 = vadd.s32 %v919_v61, %v917_v57  ;;  %v937_v56 = vsel %vm936_vm8, 1, %v3992_v13  ;;  %v938_v37 = vadd.s32 %v932_v33, %v928_v17  ;;  %v913_v22 = vshrl.u32 %v908_v49, 16 }
 0x129   : > { %3841 = vmatmul.msk.f32.gmra.mxu2 %vm2957_vm3, %v4954_v2  ;;  %v1440_v28 = vxor.u32 2147483648, %v1439_v50  ;;  %v939_v60 = vadd.s32 %v937_v56, %v931_v4  ;;  %v1011_v27 = vand.u32 2139095040, %v4919_v59  ;;  %v933_v7 = vshrl.u32 %v929_v62, 16 }
 0x12a   : > { %v922_v44 = vadd.s32 %v921_v53, %v911_v15  ;;  %vm940_vm9 = vc.u32 %v938_v37, %v934_v39  ;;  %v1445_v41 = vsel %vm4939_vm15, 0, %v1443_v31  ;;  %v892_v52 = vsel %vm886_vm5, %v889_v42, %v891_v55  ;;  %v5000_v15 = vld [vmem:[%s5348_s1 + $0x18] sm:$0xff] }
 0x12b   : > { %v1441_v58 = vsel %vm1320_vm0, %v1440_v28, %v1439_v50  ;;  %v941_v47 = vsel %vm940_vm9, 1, %v3992_v13  ;;  %v1012_v10 = vshrl.u32 %v1011_v27, 23  ;;  %v935_v8 = vshrl.u32 %v930_v40, 16 }
 0x12c   : > { %v1444_v43 = vsel %vm4939_vm15, %v4578_v46, %v1441_v58  ;;  %v943_v23 = vadd.s32 %v941_v47, %v939_v60  ;;  %v4977_v35 = vadd.s32 %v922_v44, %v913_v22  ;;  %v4979_v14 = vadd.s32 %v938_v37, %v934_v39 }
 0x12d   : > { %v1446_v48 = vmul.f32 %v1444_v43, %v1444_v43  ;;  %v3775_v63 = vadd.s32 4294967169, %v1012_v10  ;;  %v1462_v21 = vadd.s32 3, %v1445_v41  ;;  %v946_v49 = vmul.u32 %v4852_v30, %v892_v52 }
 0x12e   : > { %v944_v29 = vadd.s32 %v943_v23, %v933_v7  ;;  %vm948_vm10 = vc.u32 %v4977_v35, %v4979_v14  ;;  %v1008_v62 = vand.u32 2147483647, %v4919_v59  ;;  %v2695_v17 = vand.u32 3, %v1445_v41 }
 0x12f   : > { %v1447_v16 = vmul.f32 -0.001358992, %v1446_v48  ;;  %v1454_v32 = vmul.f32 -0.00019511016, %v1446_v48  ;;  %v1018_v45 = vadd.s32 1, %v3775_v63  ;;  %v1463_v1 = vand.u32 3, %v1462_v21 }
 0x130   : > { %v945_v34 = vadd.s32 %v944_v29, %v935_v8  ;;  %vm1461_vm12 = vweird.f32 %v4578_v46  ;;  %v1015_v30 = vand.u32 8388607, %v1008_v62  ;;  %vm2697_vm4 = vcmp.eq.s32.totalorder %v2695_v17, 0 }
 0x131   : > { %3842 = vmatmul.msk.f32.gmra.mxu2 %vm2957_vm3, %v4984_v36  ;;  %v1448_v42 = vadd.f32 0.041655596, %v1447_v16  ;;  %v1455_v26 = vadd.f32 0.008332121, %v1454_v32  ;;  %vm1019_vm11 = vcmp.gt.s32.totalorder %v1018_v45, 0  ;;  %vm1464_vm5 = vcmp.lt.s32.totalorder %v1463_v1, 2 }
 0x132   : > { %v949_v25 = vadd.s32 1, %v945_v34  ;;  %v1020_v54 = vsel %vm1019_vm11, %v1018_v45, 0  ;;  %vm1465_vm2 = vcmp.eq.s32.totalorder %v1463_v1, 0  ;;  %vm2696_vm0 = vcmp.lt.s32.totalorder %v2695_v17, 2 }
 0x133   : > { %v1449_v6 = vmul.f32 %v1448_v42, %v1446_v48  ;;  %v1456_v24 = vmul.f32 %v1455_v26, %v1446_v48  ;;  %v1022_v38 = vand.u32 31, %v1020_v54  ;;  %vm2700_vm15 = vcmp.eq.s32.totalorder %v2695_v17, 2 }
 0x134   : > { %v950_v40 = vsel %vm948_vm10, %v949_v25, %v945_v34  ;;  %vm1468_vm6 = vcmp.eq.s32.totalorder %v1463_v1, 2  ;;  %v1016_v53 = vor.u32 8388608, %v1015_v30  ;;  %v5006_v56 = vshrl.u32 %v1020_v54, 5 }
 0x135   : > { %v1450_v18 = vadd.f32 -0.4999988, %v1449_v6  ;;  %v1457_v12 = vadd.f32 -0.16666654, %v1456_v24  ;;  %v951_v4 = vadd.s32 %v950_v40, %v946_v49  ;;  %v4995_v33 = vsub.s32 32, %v1022_v38 }
 0x136   : > { %v1025_v37 = vshll.u32 %v3986_v0, %v1022_v38  ;;  %v1028_v44 = vshll.u32 %v3987_v3, %v1022_v38  ;;  %v1034_v7 = vshll.u32 %v3989_v9, %v1022_v38  ;;  %v1037_v41 = vshll.u32 %v3990_v11, %v1022_v38 }
 0x137   : > { %v1451_v57 = vmul.f32 %v1450_v18, %v1446_v48  ;;  %v1458_v39 = vmul.f32 %v1457_v12, %v1446_v48  ;;  %v952_v50 = vadd.s32 536870912, %v951_v4  ;;  %v1026_v28 = vshrl.u32 %v3987_v3, %v4995_v33 }
 0x138   : > { %v1035_v58 = vshrl.u32 %v3990_v11, %v4995_v33  ;;  %v1038_v47 = vshrl.u32 %v3991_v20, %v4995_v33  ;;  %v1029_v3 = vshrl.u32 %v3988_v5, %v4995_v33  ;;  %v1031_v48 = vshll.u32 %v3988_v5, %v1022_v38 }
 0x139   : > { %3843 = vmatmul.msk.f32.gmra.mxu2 %vm2957_vm3, %v5000_v15  ;;  %v1452_v31 = vadd.f32 1.0, %v1451_v57  ;;  %v1459_v61 = vadd.f32 1.0, %v1458_v39  ;;  %v5004_v55 = vshrl.u32 %v952_v50, 30  ;;  %v5020_v23 = vor.u32 %v1026_v28, %v1025_v37 }
 0x13a   : > { %v1032_v63 = vshrl.u32 %v3989_v9, %v4995_v33  ;;  %v1036_v45 = vor.u32 %v1035_v58, %v1034_v7  ;;  %v1039_v21 = vor.u32 %v1038_v47, %v1037_v41  ;;  %vm1043_vm8 = vcmp.lt.s32.totalorder %v5006_v56, 4  ;;  %v5076_v7 = vld [vmem:[%s5348_s1] sm:$0xff] }
 0x13b   : > { %v1460_v22 = vmul.f32 %v1459_v61, %v1444_v43  ;;  %v1469_v60 = vxor.u32 2147483648, %v1452_v31  ;;  %v954_v27 = vshll.u32 %v5004_v55, 30  ;;  %v5036_v25 = vor.u32 %v1029_v3, %v1028_v44 }
 0x13c   : > { %v5038_v54 = vor.u32 %v1032_v63, %v1031_v48  ;;  %vm1040_vm9 = vcmp.lt.s32.totalorder %v5006_v56, 1  ;;  %vm1042_vm10 = vcmp.lt.s32.totalorder %v5006_v56, 3  ;;  %v1049_v46 = vsel %vm1043_vm8, %v1036_v45, 920167782 }
 0x13d   : > { %v1466_v10 = vxor.u32 2147483648, %v1460_v22  ;;  %v1470_v52 = vsel %vm1468_vm6, %v1469_v60, %v1460_v22  ;;  %v2702_v8 = vsel %vm2700_vm15, %v1469_v60, %v1460_v22  ;;  %v955_v43 = vsub.s32 %v951_v4, %v954_v27 }
 0x13e   : > { %v947_v38 = vadd.s32 %v4979_v14, %v4977_v35  ;;  %v1053_v1 = vsel %vm1043_vm8, %v1039_v21, 1326507024  ;;  %v5048_v40 = vshll.u32 %v1016_v53, 8  ;;  %v1048_v12 = vsel %vm1040_vm9, %v5020_v23, %v5036_v25 }
 0x13f   : > { %v1467_v11 = vsel %vm1465_vm2, %v1452_v31, %v1466_v10  ;;  %v2699_v29 = vsel %vm2697_vm4, %v1452_v31, %v1466_v10  ;;  %vm956_vm7 = vcmp.lt.s32.totalorder %v955_v43, 0  ;;  %v957_v20 = vsub.s32 0, %v955_v43 }
 0x140   : > { %v1471_v16 = vsel %vm1464_vm5, %v1467_v11, %v1470_v52  ;;  %v2703_v32 = vsel %vm2696_vm0, %v2699_v29, %v2702_v8  ;;  %v1050_v30 = vsel %vm1042_vm10, %v5038_v54, %v1049_v46  ;;  %v1052_v35 = vsel %vm1040_vm9, %v5036_v25, %v5038_v54 }
 0x141   : > { %v1472_v34 = vsel %vm1461_vm12, nan, %v1471_v16  ;;  %v2704_v5 = vsel %vm1461_vm12, nan, %v2703_v32  ;;  %v958_v49 = vsel %vm956_vm7, %v957_v20, %v955_v43  ;;  %vm1041_vm12 = vcmp.lt.s32.totalorder %v5006_v56, 2 }
 0x142   : > { %v2720_v9 = vrot.slane %v2704_v5, 7  ;;  %v2752_v42 = vrot.slane %v1472_v34, 7  ;;  %v959_v26 = vclz %v958_v49  ;;  %v1054_v14 = vsel %vm1042_vm10, %v1036_v45, %v1053_v1 }
 0x143   : > { %v1057_v53 = vand.u32 65535, %v5048_v40  ;;  %v1051_v60 = vsel %vm1041_vm12, %v1048_v12, %v1050_v30  ;;  %v1055_v27 = vsel %vm1041_vm12, %v1052_v35, %v1054_v14  ;;  %v1058_v44 = vshrl.u32 %v5048_v40, 16 }
 0x144   : > { %v2736_v6 = vmul.f32 %v2720_v9, %v1472_v34  ;;  %v2768_v24 = vmul.f32 %v2752_v42, %v1472_v34  ;;  %v3773_v17 = vadd.s32 4294967294, %v959_v26  ;;  %v1059_v47 = vand.u32 65535, %v1055_v27 }
 0x145   : > { %v1060_v10 = vshrl.u32 %v1055_v27, 16  ;;  %vm5083_vm4 = vcmp.le.f32.partialorder %v853_v51, 0.7853982  ;;  %v1081_v8 = vand.u32 65535, %v1051_v60  ;;  %vm855_vm5 = vcmp.lt.s32.totalorder %v4714_v19, 0 }
 0x146   : > { %v2784_v18 = vrot.slane %v2736_v6, 1  ;;  %vm3774_vm11 = vcmp.lt.s32.totalorder %v3773_v17, 0  ;;  %v1061_v63 = vmul.u32 %v1059_v47, %v1057_v53  ;;  %v1063_v29 = vmul.u32 %v1059_v47, %v1058_v44 }
 0x147   : > { %v962_v4 = vsel %vm3774_vm11, 0, %v3773_v17  ;;  %v1062_v11 = vmul.u32 %v1060_v10, %v1057_v53  ;;  %v1083_v20 = vmul.u32 %v1081_v8, %v1057_v53  ;;  %v1064_v45 = vmul.u32 %v1060_v10, %v1058_v44 }
 0x148   : > { %v2801_v57 = vsel %vm2793_vm13, %v2784_v18, %v2768_v24  ;;  %v963_v39 = vsub.s32 32, %v962_v4  ;;  %v964_v50 = vshll.u32 %v955_v43, %v962_v4  ;;  %v967_v31 = vsub.s32 4294967266, %v962_v4 }
 0x149   : > { %v2810_v61 = vsel %vm2802_vm14, %v2801_v57, %v2720_v9  ;;  %v1082_v43 = vshrl.u32 %v1051_v60, 16  ;;  %v1065_v21 = vshll.u32 %v1062_v11, 16  ;;  %v1085_v34 = vmul.u32 %v1081_v8, %v1058_v44 }
 0x14a   : > { %v2834_v37 = vrot.slane %v2810_v61, 6  ;;  %3844 = vmatpush.msk.msrb.mxu3 %vm2970_vm1, %v2810_v61  ;;  %v965_v28 = vshrl.u32 %v947_v38, %v963_v39  ;;  %v968_v22 = vadd.s32 127, %v967_v31  ;;  %v1024_v51 = vshrl.u32 %v3986_v0, %v4995_v33 }
 0x14b   : > { %3845 = vmatmul.msk.f32.vlgmr.msrb.gmra.mxu3 %vm2957_vm3, %v5076_v7  ;;  %v1084_v16 = vmul.u32 %v1082_v43, %v1057_v53  ;;  %v1067_v5 = vshll.u32 %v1063_v29, 16  ;;  %v1086_v49 = vmul.u32 %v1082_v43, %v1058_v44  ;;  %v977_v26 = vsub.s32 4, %v5004_v55 }
 0x14c   : > { %2850 = vst [vmem:[%s4060_s8 + $0x38] sm:$0x1c] %v2834_v37  ;;  %v966_v58 = vor.u32 %v965_v28, %v964_v50  ;;  %v969_v41 = vshll.u32 %v968_v22, 23  ;;  %vm1069_vm2 = vc.u32 %v1061_v63, %v1065_v21  ;;  %v1071_v6 = vadd.s32 %v1065_v21, %v1061_v63 }
 0x14d   : > { %v1087_v9 = vshll.u32 %v1084_v16, 16  ;;  %v1066_v24 = vshrl.u32 %v1062_v11, 16  ;;  %v1070_v17 = vsel %vm1069_vm2, 1, %v3992_v13  ;;  %v1089_v46 = vshll.u32 %v1085_v34, 16 }
 0x14e   : > { %v970_v3 = vor.u32 4788187, %v969_v41  ;;  %v973_v48 = vcvt.s32.f32 %v966_v58  ;;  %v1072_v1 = vadd.s32 %v1070_v17, %v1064_v45  ;;  %vm1073_vm15 = vc.u32 %v1071_v6, %v1067_v5 }
 0x14f   : > { %vm1091_vm0 = vc.u32 %v1083_v20, %v1087_v9  ;;  %v1045_v33 = vsel %vm1043_vm8, %v5038_v54, 2102212464  ;;  %v1074_v18 = vsel %vm1073_vm15, 1, %v3992_v13  ;;  %v1093_v12 = vadd.s32 %v1087_v9, %v1083_v20 }
 0x150   : > { %v971_v32 = vand.u32 2147483647, %v970_v3  ;;  %v1092_v0 = vsel %vm1091_vm0, 1, %v3992_v13  ;;  %v978_v35 = vsel %vm855_vm5, %v977_v26, %v5004_v55  ;;  %v1068_v14 = vshrl.u32 %v1063_v29, 16 }
 0x151   : > { %v1094_v4 = vadd.s32 %v1092_v0, %v1086_v49  ;;  %v1076_v57 = vadd.s32 %v1074_v18, %v1072_v1  ;;  %v1044_v54 = vsel %vm1040_vm9, %v1024_v51, %v5020_v23  ;;  %v1088_v50 = vshrl.u32 %v1084_v16, 16  ;;  %v2878_v49 = vpop.permute.xlu0 %2877 }
 0x152   : > { %v974_v42 = vmul.f32 %v973_v48, %v971_v32  ;;  %vm1095_vm6 = vc.u32 %v1093_v12, %v1089_v46  ;;  %v1046_v61 = vsel %vm1042_vm10, %v5036_v25, %v1045_v33  ;;  %v980_v37 = vsel %vm5083_vm4, 0, %v978_v35 }
 0x153   : > { %3846 = vmatmul.msk.f32.gmra.mxu3 %vm2957_vm3, %v4954_v2  ;;  %v1077_v53 = vadd.s32 %v1076_v57, %v1066_v24  ;;  %v1096_v55 = vsel %vm1095_vm6, 1, %v3992_v13  ;;  %v1090_v28 = vshrl.u32 %v1085_v34, 16  ;;  %v1097_v58 = vadd.s32 %v1093_v12, %v1089_v46  ;;  %v2901_v24 = vpop.permute.xlu2 %2900 }
 0x154   : > { %v975_v38 = vxor.u32 2147483648, %v974_v42  ;;  %v1098_v22 = vadd.s32 %v1096_v55, %v1094_v4  ;;  %v1047_v23 = vsel %vm1041_vm12, %v1044_v54, %v1046_v61  ;;  %v997_v10 = vadd.s32 3, %v980_v37 }
 0x155   : > { %v1078_v44 = vadd.s32 %v1077_v53, %v1068_v14  ;;  %v1101_v43 = vmul.u32 %v5048_v40, %v1047_v23  ;;  %v2233_v29 = vand.u32 3, %v980_v37  ;;  %vm1010_vm15 = vcmp.lt.s32.totalorder %v4919_v59, 0 }
 0x156   : > { %v976_v30 = vsel %vm855_vm5, %v975_v38, %v974_v42  ;;  %v1099_v41 = vadd.s32 %v1098_v22, %v1088_v50  ;;  %v998_v11 = vand.u32 3, %v997_v10  ;;  %vm996_vm5 = vweird.f32 %v4714_v19 }
 0x157   : > { %v979_v39 = vsel %vm5083_vm4, %v4714_v19, %v976_v30  ;;  %vm1103_vm7 = vc.u32 %v1078_v44, %v1097_v58  ;;  %vm2238_vm9 = vcmp.eq.s32.totalorder %v2233_v29, 2  ;;  %vm2234_vm12 = vcmp.lt.s32.totalorder %v2233_v29, 2 }
 0x158   : > { %v981_v31 = vmul.f32 %v979_v39, %v979_v39  ;;  %v1100_v13 = vadd.s32 %v1099_v41, %v1090_v28  ;;  %vm1003_vm8 = vcmp.eq.s32.totalorder %v998_v11, 2  ;;  %vm999_vm10 = vcmp.lt.s32.totalorder %v998_v11, 2  ;;  %v2874_v28 = vpop.permute.xlu1 %2873 }
 0x159   : > { %vm1000_vm11 = vcmp.eq.s32.totalorder %v998_v11, 0  ;;  %vm2235_vm4 = vcmp.eq.s32.totalorder %v2233_v29, 0  ;;  %v1102_v61 = vadd.s32 %v1097_v58, %v1078_v44  ;;  %v3994_v11 = vmov 6  }
 0x15a   : > { %v982_v60 = vmul.f32 -0.001358992, %v981_v31  ;;  %v989_v27 = vmul.f32 -0.00019511016, %v981_v31  ;;  %v1104_v3 = vadd.s32 1, %v1100_v13  ;;  %3895 = vset.pattern.permute.xlu1 %v3994_v11  ;;  %3894 = vset.pattern.permute.xlu0 %v3994_v11 }
 0x15b   : > { %3847 = vmatmul.msk.f32.gmra.mxu3 %vm2957_vm3, %v4984_v36  ;;  %v2928_v53 = vpop.permute.xlu2 %2927  ;;  %3896 = vset.pattern.permute.xlu2 %v3994_v11  ;;  %vm1009_vm6 = vcmp.le.f32.partialorder %v1008_v62, 0.7853982  ;;  %v2884_v62 = vadd.f32 %v4954_v2, %v2874_v28 }
 0x15c   : > { %v983_v25 = vadd.f32 0.041655596, %v982_v60  ;;  %v990_v47 = vadd.f32 0.008332121, %v989_v27  ;;  %v1105_v56 = vsel %vm1103_vm7, %v1104_v3, %v1100_v13  ;;  %v2886_v3 = vadd.f32 %v5000_v15, %v2878_v49 }
 0x15d   : > { %v1106_v32 = vadd.s32 %v1105_v56, %v1101_v43 }
 0x15e   : > { %v984_v8 = vmul.f32 %v983_v25, %v981_v31  ;;  %v991_v52 = vmul.f32 %v990_v47, %v981_v31 }
 0x15f   : > { %v1107_v34 = vadd.s32 536870912, %v1106_v32 }
 0x160   : > { %v985_v48 = vadd.f32 -0.4999988, %v984_v8  ;;  %v992_v63 = vadd.f32 -0.16666654, %v991_v52  ;;  %v2903_v56 = vpop.permute.xlu1 %2902 }
 0x161   : > { %v5123_v5 = vshrl.u32 %v1107_v34, 30 }
 0x162   : > { %v986_v20 = vmul.f32 %v985_v48, %v981_v31  ;;  %v993_v16 = vmul.f32 %v992_v63, %v981_v31  ;;  %v2876_v31 = vpop.permute.xlu0 %2875 }
 0x163   : > { %3848 = vmatmul.msk.f32.gmra.mxu3 %vm2957_vm3, %v5000_v15  ;;  %v1109_v6 = vshll.u32 %v5123_v5, 30  ;;  %v2885_v44 = vadd.f32 %v4984_v36, %v2876_v31  ;;  %v2926_v43 = vpop.permute.xlu2 %2925 }
 0x164   : > { %v987_v45 = vadd.f32 1.0, %v986_v20  ;;  %v994_v21 = vadd.f32 1.0, %v993_v16  ;;  %v1132_v20 = vsub.s32 4, %v5123_v5  ;;  %v2911_v16 = vadd.f32 %v2903_v56, %v2886_v3  ;;  %v3033_v3 = vpop.f32.mrf.mxu1 }
 0x165   : > { %v1110_v38 = vsub.s32 %v1106_v32, %v1109_v6  ;;  %v2910_v13 = vadd.f32 %v2901_v24, %v2885_v44 }
 0x166   : > { %v995_v51 = vmul.f32 %v994_v21, %v979_v39  ;;  %v1004_v40 = vxor.u32 2147483648, %v987_v45  ;;  %v2936_v34 = vadd.f32 %v2928_v53, %v2911_v16 }
 0x167   : > { %vm1111_vm2 = vcmp.lt.s32.totalorder %v1110_v38, 0  ;;  %v1112_v12 = vsub.s32 0, %v1110_v38  ;;  %v2935_v48 = vadd.f32 %v2926_v43, %v2910_v13 }
 0x168   : > { %v1001_v9 = vxor.u32 2147483648, %v995_v51  ;;  %v1005_v42 = vsel %vm1003_vm8, %v1004_v40, %v995_v51  ;;  %v2240_v26 = vsel %vm2238_vm9, %v1004_v40, %v995_v51  ;;  %2954 = vperm.xlu0 %3894, %v2936_v34  }
 0x169   : > { %v1113_v35 = vsel %vm1111_vm2, %v1112_v12, %v1110_v38  ;;  %2949 = vperm.xlu1 %3895, %v2935_v48   ;;  %v3062_v48 = vpop.f32.mrf.mxu2 }
 0x16a   : > { %v1002_v17 = vsel %vm1000_vm11, %v987_v45, %v1001_v9  ;;  %v2237_v46 = vsel %vm2235_vm4, %v987_v45, %v1001_v9  ;;  %v1114_v39 = vclz %v1113_v35  ;;  %v2872_v10 = vpop.permute.xlu0 %2871  ;;  %v1133_v9 = vsel %vm1010_vm15, %v1132_v20, %v5123_v5 }
 0x16b   : > { %v1006_v1 = vsel %vm999_vm10, %v1002_v17, %v1005_v42  ;;  %v2241_v0 = vsel %vm2234_vm12, %v2237_v46, %v2240_v26  ;;  %v2883_v32 = vadd.f32 %v5076_v7, %v2872_v10  ;;  %v2922_v49 = vpop.permute.xlu2 %2921  ;;  %v1135_v24 = vsel %vm1009_vm6, 0, %v1133_v9 }
 0x16c   : > { %v1007_v33 = vsel %vm996_vm5, nan, %v1006_v1  ;;  %v2242_v18 = vsel %vm996_vm5, nan, %v2241_v0  ;;  %v3776_v50 = vadd.s32 4294967294, %v1114_v39  ;;  %vm1151_vm4 = vweird.f32 %v4919_v59 }
 0x16d   : > { %v2717_v4 = vrot.slane %v2242_v18, 7  ;;  %v2749_v30 = vrot.slane %v1007_v33, 7 }
 0x16e   : > { %vm3777_vm0 = vcmp.lt.s32.totalorder %v3776_v50, 0 }
 0x16f   : > { %v2733_v14 = vmul.f32 %v2717_v4, %v1007_v33  ;;  %v2765_v57 = vmul.f32 %v2749_v30, %v1007_v33  ;;  %v1117_v37 = vsel %vm3777_vm0, 0, %v3776_v50  ;;  %v1152_v33 = vadd.s32 3, %v1135_v24 }
 0x170   : > { %v1118_v60 = vsub.s32 32, %v1117_v37  ;;  %v1119_v27 = vshll.u32 %v1110_v38, %v1117_v37  ;;  %v1122_v23 = vsub.s32 4294967266, %v1117_v37  ;;  %v2899_v38 = vpop.permute.xlu1 %2898 }
 0x171   : > { %v2781_v54 = vrot.slane %v2733_v14, 1  ;;  %v2909_v12 = vadd.f32 %v2899_v38, %v2884_v62  ;;  %v1153_v35 = vand.u32 3, %v1152_v33  ;;  %v2387_v14 = vand.u32 3, %v1135_v24  ;;  %v3065_v56 = vpop.f32.mrf.mxu2 }
 0x172   : > { %v1120_v41 = vshrl.u32 %v1102_v61, %v1118_v60  ;;  %v1123_v25 = vadd.s32 127, %v1122_v23  ;;  %v2897_v21 = vpop.permute.xlu0 %2896 }
 0x173   : > { %v2798_v19 = vsel %vm2793_vm13, %v2781_v54, %v2765_v57  ;;  %v2908_v51 = vadd.f32 %v2897_v21, %v2883_v32  ;;  %vm1158_vm7 = vcmp.eq.s32.totalorder %v1153_v35, 2  ;;  %vm2392_vm8 = vcmp.eq.s32.totalorder %v2387_v14, 2 }
 0x174   : > { %v2807_v55 = vsel %vm2802_vm14, %v2798_v19, %v2717_v4  ;;  %v1121_v58 = vor.u32 %v1120_v41, %v1119_v27  ;;  %v1124_v47 = vshll.u32 %v1123_v25, 23  ;;  %vm1155_vm9 = vcmp.eq.s32.totalorder %v1153_v35, 0 }
 0x175   : > { %v2831_v22 = vrot.slane %v2807_v55, 6  ;;  %3829 = vmatpush.msk.msrb.mxu0 %vm2970_vm1, %v2807_v55  ;;  %v2933_v26 = vadd.f32 %v2922_v49, %v2908_v51  ;;  %vm2388_vm10 = vcmp.lt.s32.totalorder %v2387_v14, 2  ;;  %vm2389_vm11 = vcmp.eq.s32.totalorder %v2387_v14, 0 }
 0x176   : > { %3830 = vmatmul.msk.f32.vlgmr.msrb.gmra.mxu0 %vm2957_vm3, %v5076_v7  ;;  %v1125_v8 = vor.u32 4788187, %v1124_v47  ;;  %v1128_v52 = vcvt.s32.f32 %v1121_v58  ;;  %vm1154_vm12 = vcmp.lt.s32.totalorder %v1153_v35, 2 }
 0x177   : > { %2847 = vst [vmem:[%s4060_s8 + $0x20] sm:$0x1c] %v2831_v22  ;;  %2939 = vperm.xlu1 %3895, %v2933_v26  }
 0x178   : > { %v1126_v63 = vand.u32 2147483647, %v1125_v8  ;;  %v2924_v54 = vpop.permute.xlu1 %2923 }
 0x179   : > { %v2934_v50 = vadd.f32 %v2924_v54, %v2909_v12  ;;  %v3068_v32 = vpop.f32.mrf.mxu2 }
 0x17a   : > { %v1129_v29 = vmul.f32 %v1128_v52, %v1126_v63  ;;  %v3091_v63 = vpop.f32.mrf.mxu3 }
 0x17b   : > { %2944 = vperm.xlu2 %3896, %v2934_v50  }
 0x17c   : > { %v1130_v45 = vxor.u32 2147483648, %v1129_v29 }
 0x17e   : > { %3831 = vmatmul.msk.f32.gmra.mxu0 %vm2957_vm3, %v4954_v2  ;;  %v1131_v40 = vsel %vm1010_vm15, %v1130_v45, %v1129_v29  ;;  %v3036_v29 = vpop.f32.mrf.mxu1 }
 0x17f   : > { %v1134_v42 = vsel %vm1009_vm6, %v4919_v59, %v1131_v40  ;;  %v3004_v59 = vpop.f32.mrf.mxu0 }
 0x180   : > { %v1136_v6 = vmul.f32 %v1134_v42, %v1134_v42 }
 0x181   : > { %v3071_v51 = vpop.f32.mrf.mxu2 }
 0x182   : > { %v1137_v17 = vmul.f32 -0.001358992, %v1136_v6  ;;  %v1144_v46 = vmul.f32 -0.00019511016, %v1136_v6  ;;  %v3094_v20 = vpop.f32.mrf.mxu3 }
 0x184   : > { %v1138_v1 = vadd.f32 0.041655596, %v1137_v17  ;;  %v1145_v0 = vadd.f32 0.008332121, %v1144_v46 }
 0x186   : > { %3832 = vmatmul.msk.f32.gmra.mxu0 %vm2957_vm3, %v4984_v36  ;;  %v1139_v18 = vmul.f32 %v1138_v1, %v1136_v6  ;;  %v1146_v5 = vmul.f32 %v1145_v0, %v1136_v6 }
 0x187   : > { %v3007_v11 = vpop.f32.mrf.mxu0 }
 0x188   : > { %v1140_v4 = vadd.f32 -0.4999988, %v1139_v18  ;;  %v1147_v30 = vadd.f32 -0.16666654, %v1146_v5 }
 0x18a   : > { %v1141_v57 = vmul.f32 %v1140_v4, %v1136_v6  ;;  %v1148_v39 = vmul.f32 %v1147_v30, %v1136_v6  ;;  %v3097_v45 = vpop.f32.mrf.mxu3 }
 0x18c   : > { %v1142_v31 = vadd.f32 1.0, %v1141_v57  ;;  %v1149_v19 = vadd.f32 1.0, %v1148_v39 }
 0x18e   : > { %3833 = vmatmul.msk.f32.gmra.mxu0 %vm2957_vm3, %v5000_v15  ;;  %v1150_v61 = vmul.f32 %v1149_v19, %v1134_v42  ;;  %v1159_v53 = vxor.u32 2147483648, %v1142_v31 }
 0x18f   : > { %v3010_v16 = vpop.f32.mrf.mxu0 }
 0x190   : > { %v1156_v55 = vxor.u32 2147483648, %v1150_v61  ;;  %v1160_v37 = vsel %vm1158_vm7, %v1159_v53, %v1150_v61  ;;  %v2394_v28 = vsel %vm2392_vm8, %v1159_v53, %v1150_v61 }
 0x192   : > { %v1157_v22 = vsel %vm1155_vm9, %v1142_v31, %v1156_v55  ;;  %v2391_v60 = vsel %vm2389_vm11, %v1142_v31, %v1156_v55  ;;  %v3100_v40 = vpop.f32.mrf.mxu3 }
 0x193   : > { %v1161_v27 = vsel %vm1154_vm12, %v1157_v22, %v1160_v37  ;;  %v2395_v23 = vsel %vm2388_vm10, %v2391_v60, %v2394_v28 }
 0x194   : > { %v1162_v41 = vsel %vm1151_vm4, nan, %v1161_v27  ;;  %v2396_v25 = vsel %vm1151_vm4, nan, %v2395_v23 }
 0x195   : > { %v2718_v44 = vrot.slane %v2396_v25, 7  ;;  %v2750_v58 = vrot.slane %v1162_v41, 7 }
 0x197   : > { %v2734_v47 = vmul.f32 %v2718_v44, %v1162_v41  ;;  %v2766_v10 = vmul.f32 %v2750_v58, %v1162_v41  ;;  %v3013_v21 = vpop.f32.mrf.mxu0 }
 0x199   : > { %v2782_v13 = vrot.slane %v2734_v47, 1 }
 0x19b   : > { %v2799_v8 = vsel %vm2793_vm13, %v2782_v13, %v2766_v10  ;;  %vm3256_vm13 = vcmask 261120  }
 0x19c   : > { %v2808_v52 = vsel %vm2802_vm14, %v2799_v8, %v2718_v44  ;;  %v5189_v44 = vld [vmem:[%s5349_s2] sm:$0xf] }
 0x19d   : > { %v2832_v43 = vrot.slane %v2808_v52, 6  ;;  %3834 = vmatpush.msk.msrb.mxu1 %vm2970_vm1, %v2808_v52 }
 0x19e   : > { %3835 = vmatmul.msk.f32.vlgmr.msrb.gmra.mxu1 %vm2957_vm3, %v5076_v7  ;;  %v3039_v7 = vpop.f32.mrf.mxu1 }
 0x19f   : > { %2848 = vst [vmem:[%s4060_s8 + $0x28] sm:$0x1c] %v2832_v43 }
 0x1a4   : > { %v3178_v41 = vpop.f32.mrf.mxu2 }
 0x1a6   : > { %3836 = vmatmul.msk.f32.gmra.mxu1 %vm2957_vm3, %v4954_v2  ;;  %v3042_v34 = vpop.f32.mrf.mxu1 }
 0x1ac   : > { %v3181_v47 = vpop.f32.mrf.mxu2 }
 0x1ae   : > { %3837 = vmatmul.msk.f32.gmra.mxu1 %vm2957_vm3, %v4984_v36 }
 0x1b4   : > { %v3184_v8 = vpop.f32.mrf.mxu2 }
 0x1b6   : > { %3838 = vmatmul.msk.f32.gmra.mxu1 %vm2957_vm3, %v5000_v15 }
 0x1ce   : > { %v3207_v25 = vpop.f32.mrf.mxu3 }
 0x1d5   : > { %v5166_v49 = vpop.permute.xlu2 %2944 }
 0x1d6   : > { %v3008_v9 = vadd.f32 %v3007_v11, %v5166_v49  ;;  %v3037_v42 = vadd.f32 %v3036_v29, %v5166_v49  ;;  %v3066_v35 = vadd.f32 %v3065_v56, %v5166_v49  ;;  %v3095_v14 = vadd.f32 %v3094_v20, %v5166_v49  ;;  %v3210_v10 = vpop.f32.mrf.mxu3  ;;  %v3187_v20 = vpop.f32.mrf.mxu2 }
 0x1d8   : > { %v3227_v61 = vmax.f32 %v3008_v9, 0.0  ;;  %v3228_v53 = vmax.f32 %v3037_v42, 0.0  ;;  %v3229_v55 = vmax.f32 %v3066_v35, 0.0  ;;  %v3230_v37 = vmax.f32 %v3095_v14, 0.0 }
 0x1da   : > { %v5170_v26 = vpop.permute.xlu0 %2954 }
 0x1db   : > { %v5162_v2 = vpop.permute.xlu1 %2949  ;;  %v3014_v6 = vadd.f32 %v3013_v21, %v5170_v26  ;;  %v3043_v24 = vadd.f32 %v3042_v34, %v5170_v26  ;;  %v3072_v17 = vadd.f32 %v3071_v51, %v5170_v26  ;;  %v3101_v46 = vadd.f32 %v3100_v40, %v5170_v26 }
 0x1dc   : > { %v3040_v36 = vadd.f32 %v3039_v7, %v5162_v2  ;;  %v3011_v15 = vadd.f32 %v3010_v16, %v5162_v2  ;;  %v3069_v62 = vadd.f32 %v3068_v32, %v5162_v2  ;;  %v3098_v1 = vadd.f32 %v3097_v45, %v5162_v2 }
 0x1dd   : > { %v3243_v18 = vmax.f32 %v3014_v6, 0.0  ;;  %v3244_v5 = vmax.f32 %v3043_v24, 0.0  ;;  %v3245_v12 = vmax.f32 %v3072_v17, 0.0  ;;  %v3246_v4 = vmax.f32 %v3101_v46, 0.0 }
 0x1de   : > { %v3236_v38 = vmax.f32 %v3040_v36, 0.0  ;;  %v3235_v33 = vmax.f32 %v3011_v15, 0.0  ;;  %v3237_v54 = vmax.f32 %v3069_v62, 0.0  ;;  %v3238_v50 = vmax.f32 %v3098_v1, 0.0 }
 0x1df   : > { %3271 = vmatpush.msra.mxu0 %v3243_v18  ;;  %3291 = vmatpush.msra.mxu1 %v3244_v5  ;;  %v3185_v7 = vadd.f32 %v3184_v8, %v5162_v2  ;;  %v3188_v45 = vadd.f32 %v3187_v20, %v5170_v26  ;;  %v3182_v36 = vadd.f32 %v3181_v47, %v5166_v49 }
 0x1e0   : > { %3311 = vmatpush.msra.mxu2 %v3245_v12  ;;  %3331 = vmatpush.msra.mxu3 %v3246_v4  ;;  %v3211_v15 = vadd.f32 %v3210_v10, %v5166_v49 }
 0x1e1   : > { %3272 = vmatpush.msra.mxu0 %v3235_v33  ;;  %3292 = vmatpush.msra.mxu1 %v3236_v38  ;;  %v3249_v51 = vmax.f32 %v3188_v45, 0.0  ;;  %v3241_v6 = vmax.f32 %v3185_v7, 0.0  ;;  %v3233_v17 = vmax.f32 %v3182_v36, 0.0  ;;  %v3995_v38 = vmov 32  }
 0x1e2   : > { %3312 = vmatpush.msra.mxu2 %v3237_v54  ;;  %3332 = vmatpush.msra.mxu3 %v3238_v50  ;;  %v3234_v46 = vmax.f32 %v3211_v15, 0.0 }
 0x1e3   : > { %3273 = vmatpush.msra.mxu0 %v3227_v61  ;;  %3293 = vmatpush.msra.mxu1 %v3228_v53 }
 0x1e4   : > { %3313 = vmatpush.msra.mxu2 %v3229_v55  ;;  %3333 = vmatpush.msra.mxu3 %v3230_v37 }
 0x1e5   : > { %3897 = vset.pattern.permute.xlu2 %v3995_v38  ;;  %3898 = vset.pattern.permute.xlu0 %v3995_v38 }
 0x1e6   : > { %3253 = vperm.xlu2 %3897, %v5189_v44  }
 0x1e9   : > { %v5178_v0 = vpop.permute.xlu1 %2939 }
 0x1ea   : > { %v3005_v57 = vadd.f32 %v3004_v59, %v5178_v0  ;;  %v3034_v39 = vadd.f32 %v3033_v3, %v5178_v0  ;;  %v3063_v31 = vadd.f32 %v3062_v48, %v5178_v0  ;;  %v3092_v19 = vadd.f32 %v3091_v63, %v5178_v0  ;;  %v3213_v59 = vpop.f32.mrf.mxu3 }
 0x1eb   : > { %v3214_v32 = vadd.f32 %v3213_v59, %v5162_v2  ;;  %v3179_v9 = vadd.f32 %v3178_v41, %v5178_v0  ;;  %v3208_v42 = vadd.f32 %v3207_v25, %v5178_v0 }
 0x1ec   : > { %v3219_v28 = vmax.f32 %v3005_v57, 0.0  ;;  %v3220_v22 = vmax.f32 %v3034_v39, 0.0  ;;  %v3221_v60 = vmax.f32 %v3063_v31, 0.0  ;;  %v3222_v27 = vmax.f32 %v3092_v19, 0.0 }
 0x1ed   : > { %v3242_v24 = vmax.f32 %v3214_v32, 0.0  ;;  %v3225_v62 = vmax.f32 %v3179_v9, 0.0  ;;  %v3226_v1 = vmax.f32 %v3208_v42, 0.0 }
 0x1ee   : > { %3274 = vmatpush.msra.mxu0 %v3219_v28  ;;  %3294 = vmatpush.msra.mxu1 %v3220_v22 }
 0x1ef   : > { %3314 = vmatpush.msra.mxu2 %v3221_v60  ;;  %3334 = vmatpush.msra.mxu3 %v3222_v27 }
 0x1f0   : > { %3849 = vmatmul.msk.f32.vlgmr.msra.gmra.mxu0 %vm3256_vm13, %v5189_v44  ;;  %3850 = vmatmul.msk.f32.vlgmr.msra.gmra.mxu1 %vm3256_vm13, %v5189_v44 }
 0x1f1   : > { %3851 = vmatmul.msk.f32.vlgmr.msra.gmra.mxu2 %vm3256_vm13, %v5189_v44  ;;  %3852 = vmatmul.msk.f32.vlgmr.msra.gmra.mxu3 %vm3256_vm13, %v5189_v44 }
 0x1f2   : > { %v3216_v16 = vpop.f32.mrf.mxu3  ;;  %3391 = vmatpush.msrb.mxu2 %v3249_v51 }
 0x1f3   : > { %v3120_v30 = vpop.f32.mrf.mxu0  ;;  %v3217_v21 = vadd.f32 %v3216_v16, %v5170_v26 }
 0x1f4   : > { %v3121_v63 = vadd.f32 %v3120_v30, %v5178_v0  ;;  %3392 = vmatpush.msrb.mxu2 %v3241_v6 }
 0x1f5   : > { %v3250_v40 = vmax.f32 %v3217_v21, 0.0 }
 0x1f6   : > { %v3223_v56 = vmax.f32 %v3121_v63, 0.0  ;;  %3393 = vmatpush.msrb.mxu2 %v3233_v17 }
 0x1f7   : > { %3411 = vmatpush.msrb.mxu3 %v3250_v40 }
 0x1f8   : > { %3394 = vmatpush.msrb.mxu2 %v3225_v62 }
 0x1f9   : > { %3412 = vmatpush.msrb.mxu3 %v3242_v24  ;;  %3855 = vmatmul.msk.f32.vlgmr.msrb.gmra.mxu2 %vm3256_vm13, %v5189_v44 }
 0x1fb   : > { %v3123_v23 = vpop.f32.mrf.mxu0  ;;  %3413 = vmatpush.msrb.mxu3 %v3234_v46 }
 0x1fc   : > { %v3124_v3 = vadd.f32 %v3123_v23, %v5166_v49 }
 0x1fd   : > { %3414 = vmatpush.msrb.mxu3 %v3226_v1 }
 0x1fe   : > { %v3231_v29 = vmax.f32 %v3124_v3, 0.0  ;;  %3856 = vmatmul.msk.f32.vlgmr.msrb.gmra.mxu3 %vm3256_vm13, %v5189_v44 }
 0x203   : > { %v3126_v58 = vpop.f32.mrf.mxu0 }
 0x204   : > { %v3127_v52 = vadd.f32 %v3126_v58, %v5162_v2 }
 0x206   : > { %v3239_v11 = vmax.f32 %v3127_v52, 0.0 }
 0x20b   : > { %v3129_v13 = vpop.f32.mrf.mxu0 }
 0x20c   : > { %v3130_v43 = vadd.f32 %v3129_v13, %v5170_v26 }
 0x20e   : > { %v3247_v48 = vmax.f32 %v3130_v43, 0.0 }
 0x210   : > { %3351 = vmatpush.msrb.mxu0 %v3247_v48 }
 0x212   : > { %3352 = vmatpush.msrb.mxu0 %v3239_v11 }
 0x214   : > { %3353 = vmatpush.msrb.mxu0 %v3231_v29 }
 0x216   : > { %3354 = vmatpush.msrb.mxu0 %v3223_v56 }
 0x217   : > { %3853 = vmatmul.msk.f32.vlgmr.msrb.gmra.mxu0 %vm3256_vm13, %v5189_v44 }
 0x21b   : > { %v3149_v34 = vpop.f32.mrf.mxu1 }
 0x21c   : > { %v3150_v14 = vadd.f32 %v3149_v34, %v5178_v0 }
 0x21e   : > { %v3224_v54 = vmax.f32 %v3150_v14, 0.0 }
 0x223   : > { %v3152_v33 = vpop.f32.mrf.mxu1 }
 0x224   : > { %v3153_v30 = vadd.f32 %v3152_v33, %v5166_v49 }
 0x226   : > { %v3232_v39 = vmax.f32 %v3153_v30, 0.0 }
 0x22b   : > { %v3155_v18 = vpop.f32.mrf.mxu1 }
 0x22c   : > { %v3156_v12 = vadd.f32 %v3155_v18, %v5162_v2 }
 0x22e   : > { %v3240_v57 = vmax.f32 %v3156_v12, 0.0 }
 0x233   : > { %v3158_v5 = vpop.f32.mrf.mxu1 }
 0x234   : > { %v3159_v4 = vadd.f32 %v3158_v5, %v5170_v26 }
 0x236   : > { %v3248_v35 = vmax.f32 %v3159_v4, 0.0 }
 0x238   : > { %3371 = vmatpush.msrb.mxu1 %v3248_v35 }
 0x23a   : > { %3372 = vmatpush.msrb.mxu1 %v3240_v57 }
 0x23c   : > { %3373 = vmatpush.msrb.mxu1 %v3232_v39 }
 0x23e   : > { %3374 = vmatpush.msrb.mxu1 %v3224_v54 }
 0x23f   : > { %3854 = vmatmul.msk.f32.vlgmr.msrb.gmra.mxu1 %vm3256_vm13, %v5189_v44 }
 0x240   : > { %v5224_v50 = vpop.permute.xlu2 %3253 }
 0x26d   : > { %v3276_v2 = vpop.f32.mrf.mxu0  ;;  %v3296_v31 = vpop.f32.mrf.mxu1 }
 0x26e   : > { %v5227_v26 = vadd.f32 %v3276_v2, %v5224_v50  ;;  %v5230_v49 = vadd.f32 %v3296_v31, %v5224_v50 }
 0x270   : > { %v3419_v0 = vand.u32 2147483647, %v5227_v26  ;;  %v3420_v19 = vand.u32 2147483647, %v5230_v49  ;;  %v3635_v59 = vmax.f32 %v5227_v26, 0.0  ;;  %v3636_v11 = vmax.f32 %v5230_v49, 0.0 }
 0x271   : > { %vm3579_vm7 = vcmp.ge.f32.partialorder %v5227_v26, 0.0  ;;  %vm3580_vm8 = vcmp.ge.f32.partialorder %v5230_v49, 0.0 }
 0x272   : > { %v3427_v61 = vsub.f32 0.0, %v3419_v0  ;;  %v3428_v53 = vsub.f32 0.0, %v3420_v19 }
 0x274   : > { %v3435_v55 = vmul.f32 1.442695, %v3427_v61  ;;  %v3437_v37 = vmul.f32 1.442695, %v3428_v53  ;;  %v3316_v28 = vpop.f32.mrf.mxu2  ;;  %v3336_v22 = vpop.f32.mrf.mxu3 }
 0x275   : > { %v5235_v60 = vadd.f32 %v3316_v28, %v5224_v50  ;;  %v5238_v27 = vadd.f32 %v3336_v22, %v5224_v50 }
 0x276   : > { %3899 = vpow2.f32 %v3435_v55 }
 0x277   : > { %3901 = vpow2.f32 %v3437_v37  ;;  %v3421_v23 = vand.u32 2147483647, %v5235_v60  ;;  %v3422_v41 = vand.u32 2147483647, %v5238_v27  ;;  %v3637_v19 = vmax.f32 %v5235_v60, 0.0 }
 0x278   : > { %v3638_v61 = vmax.f32 %v5238_v27, 0.0 }
 0x279   : > { %v3429_v25 = vsub.f32 0.0, %v3421_v23  ;;  %v3430_v58 = vsub.f32 0.0, %v3422_v41 }
 0x27b   : > { %v3439_v8 = vmul.f32 1.442695, %v3429_v25  ;;  %v3441_v52 = vmul.f32 1.442695, %v3430_v58 }
 0x27c   : > { %v3900_v44 = vpop.eup %3899 }
 0x27d   : > { %v5242_v47 = vpop.eup %3901  ;;  %v3451_v10 = vadd.f32 1.0, %v3900_v44 }
 0x27e   : > { %v3452_v13 = vadd.f32 1.0, %v5242_v47 }
 0x27f   : > { %3903 = vrcp.f32 %v3451_v10  ;;  %vm3464_vm14 = vweird.f32 %v3451_v10  ;;  %v3468_v20 = vand.u32 2147483647, %v3451_v10  ;;  %v3470_v16 = vand.u32 2147483648, %v3451_v10 }
 0x280   : > { %3905 = vlog2.f32 %v3451_v10  ;;  %vm3479_vm1 = vweird.f32 %v3452_v13  ;;  %v3483_v34 = vand.u32 2147483647, %v3452_v13  ;;  %v3485_v51 = vand.u32 2147483648, %v3452_v13 }
 0x281   : > { %3907 = vrcp.f32 %v3452_v13  ;;  %v3471_v38 = vor.u32 1.1754944e-38, %v3470_v16  ;;  %vm3469_vm0 = vcmp.eq.f32.partialorder %v3468_v20, 8.507059e+37 }
 0x282   : > { %3909 = vlog2.f32 %v3452_v13  ;;  %v3486_v5 = vor.u32 1.1754944e-38, %v3485_v51  ;;  %vm3484_vm6 = vcmp.eq.f32.partialorder %v3483_v34, 8.507059e+37 }
 0x283   : > { %3911 = vpow2.f32 %v3439_v8 }
 0x284   : > { %3913 = vpow2.f32 %v3441_v52 }
 0x285   : > { %v3904_v43 = vpop.eup %3903 }
 0x286   : > { %v3906_v48 = vpop.eup %3905  ;;  %v3460_v63 = vmul.f32 %v3904_v43, %v3451_v10  ;;  %vm3465_vm3 = vweird.f32 %v3904_v43 }
 0x287   : > { %v3908_v56 = vpop.eup %3907  ;;  %v3644_v7 = vmul.f32 0.6931472, %v3906_v48  ;;  %vm5259_vm2 = vmor %vm3464_vm14, %vm3465_vm3  ;;  %vm3581_vm3 = vcmp.ge.f32.partialorder %v5235_v60, 0.0 }
 0x288   : > { %v3910_v32 = vpop.eup %3909  ;;  %v3461_v45 = vsub.f32 1.0, %v3460_v63  ;;  %v3475_v21 = vmul.f32 %v3908_v56, %v3452_v13  ;;  %vm3480_vm5 = vweird.f32 %v3908_v56 }
 0x289   : > { %v5250_v36 = vpop.eup %3911  ;;  %v3659_v15 = vadd.f32 %v3644_v7, %v3635_v59  ;;  %v3646_v40 = vmul.f32 0.6931472, %v3910_v32  ;;  %vm3481_vm15 = vmor %vm3479_vm1, %vm3480_vm5  ;;  %v3396_v59 = vpop.f32.mrf.mxu2  ;;  %vm3582_vm5 = vcmp.ge.f32.partialorder %v5238_v27, 0.0 }
 0x28a   : > { %v5253_v42 = vpop.eup %3913  ;;  %v3462_v6 = vmul.f32 %v3904_v43, %v3461_v45  ;;  %v3476_v24 = vsub.f32 1.0, %v3475_v21  ;;  %v5256_v17 = vadd.f32 1.0, %v5250_v36 }
 0x28b   : > { %3675 = vst [vmem:[#allocation1] sm:$0xff] %v3659_v15  ;;  %v3660_v62 = vadd.f32 %v3646_v40, %v3636_v11  ;;  %v5264_v1 = vadd.f32 1.0, %v5253_v42  ;;  %v5295_v11 = vadd.f32 %v3396_v59, %v5224_v50 }
 0x28c   : > { %v3463_v33 = vadd.f32 %v3904_v43, %v3462_v6  ;;  %v3477_v18 = vmul.f32 %v3908_v56, %v3476_v24  ;;  %3915 = vrcp.f32 %v5256_v17  ;;  %vm3494_vm9 = vweird.f32 %v5256_v17 }
 0x28d   : > { %3676 = vst [vmem:[#allocation1 + $0x9] sm:$0xff] %v3660_v62  ;;  %3917 = vlog2.f32 %v5256_v17  ;;  %v3498_v28 = vand.u32 2147483647, %v5256_v17  ;;  %v3500_v22 = vand.u32 2147483648, %v5256_v17  ;;  %vm3509_vm11 = vweird.f32 %v5264_v1 }
 0x28e   : > { %v3467_v4 = vsel %vm5259_vm2, %v3904_v43, %v3463_v33  ;;  %v3478_v30 = vadd.f32 %v3908_v56, %v3477_v18  ;;  %3919 = vrcp.f32 %v5264_v1  ;;  %v3513_v10 = vand.u32 2147483647, %v5264_v1 }
 0x28f   : > { %v3472_v35 = vsel %vm3469_vm0, %v3471_v38, %v3467_v4  ;;  %3921 = vlog2.f32 %v5264_v1  ;;  %v3515_v13 = vand.u32 2147483648, %v5264_v1  ;;  %v3501_v63 = vor.u32 1.1754944e-38, %v3500_v22 }
 0x290   : > { %v3587_v14 = vmul.f32 %v3900_v44, %v3472_v35  ;;  %v3482_v57 = vsel %vm3481_vm15, %v3908_v56, %v3478_v30  ;;  %vm3499_vm13 = vcmp.eq.f32.partialorder %v3498_v28, 8.507059e+37  ;;  %v3425_v15 = vand.u32 2147483647, %v5295_v11 }
 0x291   : > { %v3487_v39 = vsel %vm3484_vm6, %v3486_v5, %v3482_v57  ;;  %v3516_v21 = vor.u32 1.1754944e-38, %v3515_v13  ;;  %vm3514_vm1 = vcmp.eq.f32.partialorder %v3513_v10, 8.507059e+37 }
 0x292   : > { %v3916_v2 = vpop.eup %3915  ;;  %v3595_v31 = vsel %vm3579_vm7, %v3472_v35, %v3587_v14  ;;  %v3588_v0 = vmul.f32 %v5242_v47, %v3487_v39  ;;  %v3433_v38 = vsub.f32 0.0, %v3425_v15 }
 0x293   : > { %v3918_v53 = vpop.eup %3917  ;;  %v3611_v55 = vrot.slane %v3595_v31, 3  ;;  %v3490_v26 = vmul.f32 %v3916_v2, %v5256_v17  ;;  %vm3495_vm10 = vweird.f32 %v3916_v2 }
 0x294   : > { %v3356_v3 = vpop.f32.mrf.mxu0  ;;  %v3920_v37 = vpop.eup %3919  ;;  %v3596_v49 = vsel %vm3580_vm8, %v3487_v39, %v3588_v0  ;;  %v3648_v23 = vmul.f32 0.6931472, %v3918_v53  ;;  %vm5290_vm4 = vmor %vm3494_vm9, %vm3495_vm10  ;;  %v3447_v5 = vmul.f32 1.442695, %v3433_v38 }
 0x295   : > { %v5248_v29 = vadd.f32 %v3356_v3, %v5224_v50  ;;  %3627 = vst [vmem:[%s4060_s8] sm:$0xe0] %v3611_v55  ;;  %v3612_v41 = vrot.slane %v3596_v49, 3  ;;  %v3491_v25 = vsub.f32 1.0, %v3490_v26  ;;  %v3505_v44 = vmul.f32 %v3920_v37, %v5264_v1  ;;  %v3922_v58 = vpop.eup %3921  ;;  %v3416_v3 = vpop.f32.mrf.mxu3 }
 0x296   : > { %v3661_v47 = vadd.f32 %v3648_v23, %v3637_v19  ;;  %vm3510_vm12 = vweird.f32 %v3920_v37  ;;  %v3650_v43 = vmul.f32 0.6931472, %v3922_v58  ;;  %v5298_v56 = vadd.f32 %v3416_v3, %v5224_v50 }
 0x297   : > { %v3423_v9 = vand.u32 2147483647, %v5248_v29  ;;  %3628 = vst [vmem:[%s4060_s8 + $0x8] sm:$0xe0] %v3612_v41  ;;  %v3492_v8 = vmul.f32 %v3916_v2, %v3491_v25  ;;  %v3506_v52 = vsub.f32 1.0, %v3505_v44  ;;  %vm5302_vm14 = vmor %vm3509_vm11, %vm3510_vm12  ;;  %v3639_v57 = vmax.f32 %v5248_v29, 0.0 }
 0x298   : > { %3677 = vst [vmem:[#allocation1 + $0x12] sm:$0xff] %v3661_v47  ;;  %v3662_v32 = vadd.f32 %v3650_v43, %v3638_v61  ;;  %vm3583_vm7 = vcmp.ge.f32.partialorder %v5248_v29, 0.0 }
 0x299   : > { %v3431_v12 = vsub.f32 0.0, %v3423_v9  ;;  %v3493_v16 = vadd.f32 %v3916_v2, %v3492_v8  ;;  %v3507_v7 = vmul.f32 %v3920_v37, %v3506_v52  ;;  %v3426_v9 = vand.u32 2147483647, %v5298_v56 }
 0x29a   : > { %3678 = vst [vmem:[#allocation1 + $0x1b] sm:$0xff] %v3662_v32 }
 0x29b   : > { %v3443_v54 = vmul.f32 1.442695, %v3431_v12  ;;  %v3497_v51 = vsel %vm5290_vm4, %v3916_v2, %v3493_v16  ;;  %v3508_v40 = vadd.f32 %v3920_v37, %v3507_v7  ;;  %v3434_v62 = vsub.f32 0.0, %v3426_v9 }
 0x29c   : > { %v3502_v6 = vsel %vm3499_vm13, %v3501_v63, %v3497_v51  ;;  %v3642_v7 = vmax.f32 %v5298_v56, 0.0 }
 0x29d   : > { %3923 = vpow2.f32 %v3443_v54  ;;  %v3589_v24 = vmul.f32 %v5250_v36, %v3502_v6  ;;  %v3512_v17 = vsel %vm5302_vm14, %v3920_v37, %v3508_v40  ;;  %v3449_v12 = vmul.f32 1.442695, %v3434_v62 }
 0x29e   : > { %v3517_v46 = vsel %vm3514_vm1, %v3516_v21, %v3512_v17  ;;  %vm3585_vm1 = vcmp.ge.f32.partialorder %v5295_v11, 0.0 }
 0x29f   : > { %v3597_v1 = vsel %vm3581_vm3, %v3502_v6, %v3589_v24  ;;  %v3590_v33 = vmul.f32 %v5253_v42, %v3517_v46  ;;  %vm3586_vm3 = vcmp.ge.f32.partialorder %v5298_v56, 0.0 }
 0x2a0   : > { %v3613_v18 = vrot.slane %v3597_v1, 3 }
 0x2a1   : > { %v3598_v4 = vsel %vm3582_vm5, %v3517_v46, %v3590_v33 }
 0x2a2   : > { %3629 = vst [vmem:[%s4060_s8 + $0x10] sm:$0xe0] %v3613_v18  ;;  %v3614_v30 = vrot.slane %v3598_v4, 3 }
 0x2a3   : > { %v3924_v20 = vpop.eup %3923 }
 0x2a4   : > { %v3455_v34 = vadd.f32 1.0, %v3924_v20  ;;  %3630 = vst [vmem:[%s4060_s8 + $0x18] sm:$0xe0] %v3614_v30 }
 0x2a6   : > { %3925 = vrcp.f32 %v3455_v34  ;;  %v3530_v60 = vand.u32 2147483648, %v3455_v34  ;;  %vm3524_vm2 = vweird.f32 %v3455_v34  ;;  %v3528_v42 = vand.u32 2147483647, %v3455_v34 }
 0x2a7   : > { %3927 = vlog2.f32 %v3455_v34 }
 0x2a8   : > { %3929 = vpow2.f32 %v3447_v5  ;;  %v3531_v0 = vor.u32 1.1754944e-38, %v3530_v60  ;;  %vm3529_vm6 = vcmp.eq.f32.partialorder %v3528_v42, 8.507059e+37 }
 0x2a9   : > { %3931 = vpow2.f32 %v3449_v12 }
 0x2ac   : > { %v3926_v36 = vpop.eup %3925 }
 0x2ad   : > { %v3928_v35 = vpop.eup %3927  ;;  %v3520_v14 = vmul.f32 %v3926_v36, %v3455_v34  ;;  %vm3525_vm0 = vweird.f32 %v3926_v36 }
 0x2ae   : > { %v3652_v39 = vmul.f32 0.6931472, %v3928_v35  ;;  %v5319_v31 = vpop.eup %3929  ;;  %vm3526_vm15 = vmor %vm3524_vm2, %vm3525_vm0 }
 0x2af   : > { %v3521_v54 = vsub.f32 1.0, %v3520_v14  ;;  %v5321_v19 = vpop.eup %3931  ;;  %v3457_v53 = vadd.f32 1.0, %v5319_v31 }
 0x2b0   : > { %v3663_v27 = vadd.f32 %v3652_v39, %v3639_v57  ;;  %v3458_v26 = vadd.f32 1.0, %v5321_v19 }
 0x2b1   : > { %v3522_v2 = vmul.f32 %v3926_v36, %v3521_v54  ;;  %3933 = vrcp.f32 %v3457_v53  ;;  %v3560_v59 = vand.u32 2147483648, %v3457_v53  ;;  %vm3554_vm9 = vweird.f32 %v3457_v53 }
 0x2b2   : > { %3679 = vst [vmem:[#allocation1 + $0x24] sm:$0xff] %v3663_v27  ;;  %3935 = vlog2.f32 %v3457_v53  ;;  %v3575_v34 = vand.u32 2147483648, %v3458_v26  ;;  %v3573_v40 = vand.u32 2147483647, %v3458_v26  ;;  %vm3569_vm4 = vweird.f32 %v3458_v26 }
 0x2b3   : > { %v3523_v61 = vadd.f32 %v3926_v36, %v3522_v2  ;;  %3937 = vrcp.f32 %v3458_v26  ;;  %v3561_v21 = vor.u32 1.1754944e-38, %v3560_v59 }
 0x2b4   : > { %3939 = vlog2.f32 %v3458_v26  ;;  %v3576_v38 = vor.u32 1.1754944e-38, %v3575_v34  ;;  %vm3574_vm14 = vcmp.eq.f32.partialorder %v3573_v40, 8.507059e+37 }
 0x2b5   : > { %v3527_v37 = vsel %vm3526_vm15, %v3926_v36, %v3523_v61 }
 0x2b6   : > { %v3532_v28 = vsel %vm3529_vm6, %v3531_v0, %v3527_v37 }
 0x2b7   : > { %v3591_v22 = vmul.f32 %v3924_v20, %v3532_v28  ;;  %v3934_v58 = vpop.eup %3933  ;;  %v3558_v20 = vand.u32 2147483647, %v3457_v53 }
 0x2b8   : > { %v3936_v10 = vpop.eup %3935  ;;  %v3550_v13 = vmul.f32 %v3934_v58, %v3457_v53  ;;  %vm3555_vm8 = vweird.f32 %v3934_v58 }
 0x2b9   : > { %v3599_v41 = vsel %vm3583_vm7, %v3532_v28, %v3591_v22  ;;  %v3656_v8 = vmul.f32 0.6931472, %v3936_v10  ;;  %v3938_v52 = vpop.eup %3937  ;;  %vm3556_vm10 = vmor %vm3554_vm9, %vm3555_vm8  ;;  %vm3559_vm12 = vcmp.eq.f32.partialorder %v3558_v20, 8.507059e+37 }
 0x2ba   : > { %v3615_v44 = vrot.slane %v3599_v41, 3  ;;  %v3551_v43 = vsub.f32 1.0, %v3550_v13  ;;  %v3565_v48 = vmul.f32 %v3938_v52, %v3458_v26  ;;  %v3940_v29 = vpop.eup %3939  ;;  %vm3570_vm11 = vweird.f32 %v3938_v52 }
 0x2bb   : > { %v3658_v32 = vmul.f32 0.6931472, %v3940_v29  ;;  %vm3571_vm13 = vmor %vm3569_vm4, %vm3570_vm11 }
 0x2bc   : > { %v3376_v55 = vpop.f32.mrf.mxu1  ;;  %3631 = vst [vmem:[%s4060_s8 + $0x20] sm:$0xe0] %v3615_v44  ;;  %v3552_v63 = vmul.f32 %v3934_v58, %v3551_v43  ;;  %v3566_v16 = vsub.f32 1.0, %v3565_v48 }
 0x2bd   : > { %v5326_v49 = vadd.f32 %v3376_v55, %v5224_v50  ;;  %v3641_v50 = vmax.f32 %v5295_v11, 0.0  ;;  %v3666_v9 = vadd.f32 %v3658_v32, %v3642_v7 }
 0x2be   : > { %v3553_v45 = vadd.f32 %v3934_v58, %v3552_v63  ;;  %v3567_v51 = vmul.f32 %v3938_v52, %v3566_v16 }
 0x2bf   : > { %v3424_v23 = vand.u32 2147483647, %v5326_v49  ;;  %v3665_v3 = vadd.f32 %v3656_v8, %v3641_v50  ;;  %3682 = vst [vmem:[#allocation1 + $0x3f] sm:$0xff] %v3666_v9  ;;  %v3640_v57 = vmax.f32 %v5326_v49, 0.0  ;;  %vm3584_vm6 = vcmp.ge.f32.partialorder %v5326_v49, 0.0 }
 0x2c0   : > { %v3557_v24 = vsel %vm3556_vm10, %v3934_v58, %v3553_v45  ;;  %v3568_v46 = vadd.f32 %v3938_v52, %v3567_v51 }
 0x2c1   : > { %v3432_v25 = vsub.f32 0.0, %v3424_v23  ;;  %3681 = vst [vmem:[#allocation1 + $0x36] sm:$0xff] %v3665_v3  ;;  %v3562_v17 = vsel %vm3559_vm12, %v3561_v21, %v3557_v24 }
 0x2c2   : > { %v3593_v62 = vmul.f32 %v5319_v31, %v3562_v17  ;;  %v3572_v1 = vsel %vm3571_vm13, %v3938_v52, %v3568_v46 }
 0x2c3   : > { %v3445_v47 = vmul.f32 1.442695, %v3432_v25  ;;  %v3577_v33 = vsel %vm3574_vm14, %v3576_v38, %v3572_v1 }
 0x2c4   : > { %v3601_v18 = vsel %vm3585_vm1, %v3562_v17, %v3593_v62  ;;  %v3594_v5 = vmul.f32 %v5321_v19, %v3577_v33 }
 0x2c5   : > { %3941 = vpow2.f32 %v3445_v47  ;;  %v3617_v12 = vrot.slane %v3601_v18, 3 }
 0x2c6   : > { %v3602_v4 = vsel %vm3586_vm3, %v3577_v33, %v3594_v5 }
 0x2c7   : > { %3633 = vst [vmem:[%s4060_s8 + $0x30] sm:$0xe0] %v3617_v12  ;;  %v3618_v30 = vrot.slane %v3602_v4, 3 }
 0x2c9   : > { %3634 = vst [vmem:[%s4060_s8 + $0x38] sm:$0xe0] %v3618_v30 }
 0x2cb   : > { %v3942_v15 = vpop.eup %3941 }
 0x2cc   : > { %v3456_v6 = vadd.f32 1.0, %v3942_v15 }
 0x2ce   : > { %3943 = vrcp.f32 %v3456_v6  ;;  %v3545_v60 = vand.u32 2147483648, %v3456_v6  ;;  %vm3539_vm5 = vweird.f32 %v3456_v6  ;;  %v3543_v11 = vand.u32 2147483647, %v3456_v6 }
 0x2cf   : > { %3945 = vlog2.f32 %v3456_v6 }
 0x2d0   : > { %v3546_v27 = vor.u32 1.1754944e-38, %v3545_v60  ;;  %vm3544_vm15 = vcmp.eq.f32.partialorder %v3543_v11, 8.507059e+37 }
 0x2d4   : > { %v3944_v36 = vpop.eup %3943 }
 0x2d5   : > { %v3946_v35 = vpop.eup %3945  ;;  %v3535_v14 = vmul.f32 %v3944_v36, %v3456_v6  ;;  %vm3540_vm2 = vweird.f32 %v3944_v36 }
 0x2d6   : > { %v3654_v39 = vmul.f32 0.6931472, %v3946_v35  ;;  %vm3541_vm0 = vmor %vm3539_vm5, %vm3540_vm2 }
 0x2d7   : > { %v3536_v54 = vsub.f32 1.0, %v3535_v14 }
 0x2d8   : > { %v3664_v42 = vadd.f32 %v3654_v39, %v3640_v57 }
 0x2d9   : > { %v3537_v56 = vmul.f32 %v3944_v36, %v3536_v54 }
 0x2da   : > { %3680 = vst [vmem:[#allocation1 + $0x2d] sm:$0xff] %v3664_v42 }
 0x2db   : > { %v3538_v2 = vadd.f32 %v3944_v36, %v3537_v56 }
 0x2dd   : > { %v3542_v31 = vsel %vm3541_vm0, %v3944_v36, %v3538_v2 }
 0x2de   : > { %v3547_v0 = vsel %vm3544_vm15, %v3546_v27, %v3542_v31 }
 0x2df   : > { %v3592_v19 = vmul.f32 %v3942_v15, %v3547_v0 }
 0x2e1   : > { %v3600_v61 = vsel %vm3584_vm6, %v3547_v0, %v3592_v19  ;;  %v3684_v53 = vld [vmem:[#allocation1 + $0x3] ss:$9 sm:$0xff] }
 0x2e2   : > { %v3616_v55 = vrot.slane %v3600_v61, 3  ;;  %3857 = vst [vmem:[%s4060_s8 + $0x40] ss:$8 sm:$0xf] %v3684_v53 }
 0x2e3   : > { %3858 = vst [vmem:[%s4060_s8 + $0x40] ss:$8 sm:$0xf0] %v3684_v53 }
 0x2e4   : > { %3632 = vst [vmem:[%s4060_s8 + $0x28] sm:$0xe0] %v3616_v55 }
 0x2e5 PF: > { %s14_s12 = sadd.s32 1, %s3980_s12  }
 0x2e6   : > { %p11_p7 = scmp.ge.s32.totalorder %s14_s12, 4  }
 0x2e8   :  { %13 = sbr.rel (!%p11_p7) target bundleno = 1 (0x1), region = 66 }
 0x2ed   :  { %3718 = vsyncpa [#allocation3], 1 }
 0x2ee   :  { %3720 = vsyncpa [#allocation3 + $0x1], 1 }

</bundles_post_ra>
